<compile_context>
chip_gen: v6e
topology: v6e:2x2x1
jax: 0.10.0
libtpu: 0.0.40
codegen_flags: <defaults>
</compile_context>

<pallas_src>
import jax
import jax.numpy as jnp
from jax import lax
from jax.experimental import pallas as pl
from jax.experimental.pallas import tpu as pltpu

# ---------------- configuration (small, consistent with EEGNet.forward) -------
C   = 16     # input_channels (EEG electrodes)
NC  = 4      # num_classes
K1  = 8      # kernel_length (stage-1 temporal conv)
F1  = 8      # num_filters
P   = 4      # pool_size
K3  = 16     # separable-conv temporal kernel width (hard-coded 16 in module)
T   = 128    # time steps
B   = 4      # batch
EPS = 1e-5   # BatchNorm eps (PyTorch default)

T2  = T // P            # time after first avg-pool   (32)
T3  = T2 // P           # time after second avg-pool  (8)
P1L = (K1 - 1) // 2     # left 'same' pad, stage 1    (3)
P3L = (K3 - 1) // 2     # left 'same' pad, stage 3    (7)

B_HALF = B // 2         # batches handled per grid step (2)
RH     = B_HALF * 4 * F1   # rows carried per grid step (64): bh*32 + i

# column layout of the packed per-row constant slab `rc` (RH, NCOL)
COL_W1 = 0              # [0, K1)        stage-1 taps (BN1*BN2 scale folded)
COL_W3 = K1             # [K1, K1+K3)    stage-3 taps (BN3 scale folded)
COL_T2 = K1 + K3        # BN1+BN2 shift (pushed through the spatial conv)
COL_T3 = K1 + K3 + 1    # BN3 shift
COL_BC = K1 + K3 + 2    # classifier bias (rows [0, B_HALF*NC))
NCOL   = K1 + K3 + 3


# ------------------------------- Pallas kernel --------------------------------
def eegnet_kernel(x_ref, w2_ref, rc_ref, tc_ref, q_ref, wc_ref, out_ref):
    # Spatial (depthwise) contraction first: one block-diagonal MXU matmul
    # over the two batches of this half (commutes with the stage-1 temporal
    # conv; BN1 folded into taps / shifts).
    z = jnp.dot(w2_ref[...], x_ref[...],
                preferred_element_type=jnp.float32)              # (RH, T)

    # --- stage 1: temporal conv (1,K1), 'same' pad via lane rolls + masks -----
    acc = z * rc_ref[:, P1L:P1L + 1]                             # center tap: mask all-ones
    for k in range(K1):
        if k == P1L:
            continue
        zk = pltpu.roll(z, (P1L - k) % T, axis=1)                # zk[:, t] = z[:, t + k - P1L]
        acc = acc + zk * tc_ref[k:k + 1, :] * rc_ref[:, k:k + 1]
    y2 = acc + rc_ref[:, COL_T2:COL_T2 + 1]                      # folded BN1+BN2 shift
    y2 = jnp.where(y2 > 0, y2, jnp.exp(y2) - 1.0)                # ELU (exp(+big) discarded)

    # --- avg-pool(P) + zero placement for the stage-3 'same' pad: one matmul --
    y2p = jnp.dot(y2, q_ref[...], preferred_element_type=jnp.float32)   # (RH, T)

    # --- stage 3: depthwise temporal conv (1,K3) via rolls (buffer pre-zeroed) -
    acc3 = y2p * rc_ref[:, COL_W3:COL_W3 + 1]                    # k = 0: no roll
    for k in range(1, K3):
        yk = pltpu.roll(y2p, (-k) % T, axis=1)                   # yk[:, t] = y2p[:, t + k]
        acc3 = acc3 + yk * rc_ref[:, COL_W3 + k:COL_W3 + k + 1]
    y3 = acc3 + rc_ref[:, COL_T3:COL_T3 + 1]                     # BN3 shift
    y3 = jnp.where(y3 > 0, y3, jnp.exp(y3) - 1.0)                # ELU

    # --- classifier: block-diag matmul over channels, then folded pool2+mean ---
    tmp = jnp.dot(wc_ref[...], y3, preferred_element_type=jnp.float32)  # (B_HALF*NC, T)
    out_ref[...] = (jnp.sum(tmp * tc_ref[K1:K1 + 1, :], axis=1, keepdims=True)
                    + rc_ref[0:B_HALF * NC, COL_BC:COL_BC + 1])


# ------------------------------ wrapper / glue ---------------------------------
def bn_fold(bn):
    gamma, beta, mean, var = bn
    s = gamma / jnp.sqrt(var + EPS)
    return s, beta - mean * s


def build_kernel_constants(params):
    i = jnp.arange(4 * F1)
    jidx = i // 2           # stage-2 output channel feeding row i
    fidx = i // 4           # stage-1 temporal filter feeding row i

    s1, t1 = bn_fold(params['bn1'])
    s2, t2 = bn_fold(params['bn2'])
    s3, t3 = bn_fold(params['bn3'])

    w1 = params['w1'].astype(jnp.float32)   # (F1, K1)
    w2 = params['w2'].astype(jnp.float32)   # (2F1, C)
    w3 = params['w3'].astype(jnp.float32)   # (4F1, K3)

    eyeh = jnp.eye(B_HALF, dtype=jnp.float32)

    # spatial depthwise conv with the stage-3 channel duplication folded in,
    # block-diagonal over the B_HALF batches handled per grid step
    w2h = jnp.kron(eyeh, w2[jidx, :])                                     # (RH, B_HALF*C)

    # stage-1 taps with BN1 and BN2 scales folded in
    w1k = jnp.tile(w1[fidx, :] * (s1[fidx] * s2[jidx])[:, None], (B_HALF, 1))   # (RH, K1)
    # BN2 shift + BN1 shift pushed through the spatial conv (row sums of w2)
    t2col = jnp.tile(t2[jidx] + s2[jidx] * t1[fidx] * jnp.sum(w2, axis=1)[jidx],
                     (B_HALF,))[:, None]                                  # (RH, 1)
    # stage-3 taps (BN3 scale folded) and BN3 shift
    w3k = jnp.tile(w3 * s3[:, None], (B_HALF, 1))                         # (RH, K3)
    t3col = jnp.tile(t3, (B_HALF,))[:, None]                              # (RH, 1)
    # classifier bias padded to RH rows (rows >= B_HALF*NC are unused)
    bccol = jnp.zeros((RH, 1), jnp.float32).at[:B_HALF * NC, 0].set(
        jnp.tile(params['bc'].astype(jnp.float32), (B_HALF,)))
    rc = jnp.concatenate([w1k, w3k, t2col, t3col, bccol], axis=1)         # (RH, NCOL)

    # 'same'-padding masks for the stage-1 taps (also kill roll wrap-around)
    t_idx = jnp.arange(T)
    m1 = jnp.stack([((t_idx + k - P1L >= 0) & (t_idx + k - P1L < T)).astype(jnp.float32)
                    for k in range(K1)])                                  # (K1, T)
    # pool2 + global time-mean folded into one averaging row (exact: T2 % P == 0)
    avg = jnp.zeros((1, T), jnp.float32).at[0, :T2].set(1.0 / T2)         # (1, T)
    tc = jnp.concatenate([m1, avg], axis=0)                               # (K1+1, T)

    # avg-pool(P) + left zero-pad (P3L) placement for the stage-3 'same' conv
    q = jnp.zeros((T, T), jnp.float32).at[t_idx, P3L + t_idx // P].set(1.0 / P)

    # classifier, block-diagonal over the B_HALF batches per step
    wch = jnp.kron(eyeh, params['wc'].astype(jnp.float32))                # (B_HALF*NC, RH)

    return w2h, rc, tc, q, wch


def eegnet_forward_pallas(x, params):
    w2h, rc, tc, q, wch = build_kernel_constants(params)
    x2d = x.reshape(B * C, T).astype(jnp.float32)

    in_specs = [
        pl.BlockSpec((B_HALF * C, T), lambda i: (i, 0)),       # x   (per batch half)
        pl.BlockSpec((RH, B_HALF * C), lambda i: (0, 0)),      # w2h (shared, resident)
        pl.BlockSpec((RH, NCOL), lambda i: (0, 0)),            # rc  (shared)
        pl.BlockSpec((K1 + 1, T), lambda i: (0, 0)),           # tc  (shared)
        pl.BlockSpec((T, T), lambda i: (0, 0)),                # q   (shared)
        pl.BlockSpec((B_HALF * NC, RH), lambda i: (0, 0)),     # wch (shared)
    ]

    out = pl.pallas_call(
        eegnet_kernel,
        out_shape=jax.ShapeDtypeStruct((B * NC, 1), jnp.float32),
        grid_spec=pltpu.PrefetchScalarGridSpec(
            num_scalar_prefetch=0,
            grid=(B // B_HALF,),                 # 2 batch halves
            in_specs=in_specs,
            out_specs=pl.BlockSpec((B_HALF * NC, 1), lambda i: (i, 0)),
        ),
        compiler_params=pltpu.CompilerParams(dimension_semantics=("parallel",)),
    )(x2d, w2h, rc, tc, q, wch)
    return out.reshape(B, NC)


# ----------------------------- pure-JAX reference ------------------------------
def _elu(x):
    return jnp.where(x > 0, x, jnp.exp(jnp.minimum(x, 0.0)) - 1.0)


def reference_forward(x, params):
    bx = x.shape[0]
    y = x[:, None, :, :]                                              # NCHW, H=EEG chan, W=time
    y = lax.conv_general_dilated(
        y, params['w1'].reshape(F1, 1, 1, K1), (1, 1),
        ((0, 0), (P1L, K1 - 1 - P1L)), dimension_numbers=('NCHW', 'OIHW', 'NCHW'))
    s, t = bn_fold(params['bn1'])
    y = y * s.reshape(1, -1, 1, 1) + t.reshape(1, -1, 1, 1)

    y = lax.conv_general_dilated(
        y, params['w2'].reshape(2 * F1, 1, C, 1), (1, 1),
        ((0, 0), (0, 0)), dimension_numbers=('NCHW', 'OIHW', 'NCHW'),
        feature_group_count=F1)
    s, t = bn_fold(params['bn2'])
    y = _elu(y * s.reshape(1, -1, 1, 1) + t.reshape(1, -1, 1, 1))
    y = y.reshape(bx, 2 * F1, 1, T2, P).mean(axis=-1)

    y = lax.conv_general_dilated(
        y, params['w3'].reshape(4 * F1, 1, 1, K3), (1, 1),
        ((0, 0), (P3L, K3 - 1 - P3L)), dimension_numbers=('NCHW', 'OIHW', 'NCHW'),
        feature_group_count=2 * F1)
    s, t = bn_fold(params['bn3'])
    y = _elu(y * s.reshape(1, -1, 1, 1) + t.reshape(1, -1, 1, 1))
    y = y.reshape(bx, 4 * F1, 1, T3, P).mean(axis=-1)

    y = y.mean(axis=3).reshape(bx, -1)                                # (B, 4F1)
    return y @ params['wc'].T + params['bc'][None, :]


# ------------------------------------ main --------------------------------------
def init_params(key):
    ks = jax.random.split(key, 17)
    bn_dims = {1: F1, 6: 2 * F1, 11: 4 * F1}

    def bn(i):
        return (1.0 + 0.1 * jax.random.normal(ks[i], (bn_dims[i],)),
                0.1 * jax.random.normal(ks[i + 1], (bn_dims[i],)),
                0.1 * jax.random.normal(ks[i + 2], (bn_dims[i],)),
                0.5 + 0.5 * jnp.abs(jax.random.normal(ks[i + 3], (bn_dims[i],))))

    return {
        'w1': 0.3 * jax.random.normal(ks[0], (F1, K1), jnp.float32),
        'bn1': bn(1),
        'w2': 0.3 * jax.random.normal(ks[5], (2 * F1, C), jnp.float32),
        'bn2': bn(6),
        'w3': 0.3 * jax.random.normal(ks[10], (4 * F1, K3), jnp.float32),
        'bn3': bn(11),
        'wc': 0.3 * jax.random.normal(ks[15], (NC, 4 * F1), jnp.float32),
        'bc': 0.1 * jax.random.normal(ks[16], (NC,), jnp.float32),
    }


if __name__ == "__main__":
    key = jax.random.PRNGKey(0)
    kp, kx = jax.random.split(key)
    params = init_params(kp)
    x = jax.random.normal(kx, (B, C, T), jnp.float32)   # (batch, eeg_channels, time)

    out = eegnet_forward_pallas(x, params)
    out = jax.block_until_ready(out)

    ref = reference_forward(x, params)
    assert out.shape == (B, NC)
    if not jnp.allclose(out, ref, atol=1e-2, rtol=1e-2):
        raise AssertionError(
            f"Pallas/reference mismatch, max abs err = {float(jnp.max(jnp.abs(out - ref)))}")
    print("KERNEL_OK")
</pallas_src>

<mosaic_0001>
module attributes {stable_mosaic.version = 11 : i64} {
  func.func @eegnet_kernel(%arg0: i32, %arg1: memref<32x128xf32, #tpu.memory_space<vmem>>, %arg2: memref<64x32xf32, #tpu.memory_space<vmem>>, %arg3: memref<64x27xf32, #tpu.memory_space<vmem>>, %arg4: memref<9x128xf32, #tpu.memory_space<vmem>>, %arg5: memref<128x128xf32, #tpu.memory_space<vmem>>, %arg6: memref<8x64xf32, #tpu.memory_space<vmem>>, %arg7: memref<8x1xf32, #tpu.memory_space<vmem>>) attributes {dimension_semantics = [#tpu.dimension_semantics<parallel>], iteration_bounds = array<i64: 2>, scalar_prefetch = 0 : i64, scratch_operands = 0 : i64, tpu.core_type = #tpu.core_type<tc>, window_params = [{transform_indices = @transform_0, window_bounds = array<i64: 32, 128>}, {pipeline_mode = #tpu.pipeline_mode<synchronous>, transform_indices = @transform_1, window_bounds = array<i64: 64, 32>}, {pipeline_mode = #tpu.pipeline_mode<synchronous>, transform_indices = @transform_2, window_bounds = array<i64: 64, 27>}, {pipeline_mode = #tpu.pipeline_mode<synchronous>, transform_indices = @transform_3, window_bounds = array<i64: 9, 128>}, {pipeline_mode = #tpu.pipeline_mode<synchronous>, transform_indices = @transform_4, window_bounds = array<i64: 128, 128>}, {pipeline_mode = #tpu.pipeline_mode<synchronous>, transform_indices = @transform_5, window_bounds = array<i64: 8, 64>}, {transform_indices = @transform_6, window_bounds = array<i64: 8, 1>}]} {
    %c0 = arith.constant 0 : index
    %c0_0 = arith.constant 0 : index
    %0 = vector.load %arg2[%c0, %c0_0] : memref<64x32xf32, #tpu.memory_space<vmem>>, vector<64x32xf32>
    %c0_1 = arith.constant 0 : index
    %c0_2 = arith.constant 0 : index
    %1 = vector.load %arg1[%c0_1, %c0_2] : memref<32x128xf32, #tpu.memory_space<vmem>>, vector<32x128xf32>
    %cst = arith.constant dense<0.000000e+00> : vector<64x128xf32>
    %2 = tpu.matmul %0, %1, %cst {dimension_numbers = #tpu.dot_dimension_numbers<[1], [0], [0], [1], [0, 0, 1, 1], [], []>} : vector<64x32xf32>, vector<32x128xf32>, vector<64x128xf32> -> vector<64x128xf32>
    %c0_3 = arith.constant 0 : index
    %c3 = arith.constant 3 : index
    %3 = vector.load %arg3[%c0_3, %c3] : memref<64x27xf32, #tpu.memory_space<vmem>>, vector<64x1xf32>
    %4 = vector.broadcast %3 : vector<64x1xf32> to vector<64x128xf32>
    %5 = arith.mulf %2, %4 : vector<64x128xf32>
    %c3_i32 = arith.constant 3 : i32
    %6 = tpu.dynamic_rotate %2 by %c3_i32 dim 1 : vector<64x128xf32>, i32 -> vector<64x128xf32>
    %c0_4 = arith.constant 0 : index
    %c0_5 = arith.constant 0 : index
    %7 = vector.load %arg4[%c0_4, %c0_5] : memref<9x128xf32, #tpu.memory_space<vmem>>, vector<1x128xf32>
    %8 = vector.broadcast %7 : vector<1x128xf32> to vector<64x128xf32>
    %9 = arith.mulf %6, %8 : vector<64x128xf32>
    %c0_6 = arith.constant 0 : index
    %c0_7 = arith.constant 0 : index
    %10 = vector.load %arg3[%c0_6, %c0_7] : memref<64x27xf32, #tpu.memory_space<vmem>>, vector<64x1xf32>
    %11 = vector.broadcast %10 : vector<64x1xf32> to vector<64x128xf32>
    %12 = arith.mulf %9, %11 : vector<64x128xf32>
    %13 = arith.addf %5, %12 : vector<64x128xf32>
    %c2_i32 = arith.constant 2 : i32
    %14 = tpu.dynamic_rotate %2 by %c2_i32 dim 1 : vector<64x128xf32>, i32 -> vector<64x128xf32>
    %c1 = arith.constant 1 : index
    %c0_8 = arith.constant 0 : index
    %15 = vector.load %arg4[%c1, %c0_8] : memref<9x128xf32, #tpu.memory_space<vmem>>, vector<1x128xf32>
    %16 = vector.broadcast %15 : vector<1x128xf32> to vector<64x128xf32>
    %17 = arith.mulf %14, %16 : vector<64x128xf32>
    %c0_9 = arith.constant 0 : index
    %c1_10 = arith.constant 1 : index
    %18 = vector.load %arg3[%c0_9, %c1_10] : memref<64x27xf32, #tpu.memory_space<vmem>>, vector<64x1xf32>
    %19 = vector.broadcast %18 : vector<64x1xf32> to vector<64x128xf32>
    %20 = arith.mulf %17, %19 : vector<64x128xf32>
    %21 = arith.addf %13, %20 : vector<64x128xf32>
    %c1_i32 = arith.constant 1 : i32
    %22 = tpu.dynamic_rotate %2 by %c1_i32 dim 1 : vector<64x128xf32>, i32 -> vector<64x128xf32>
    %c2 = arith.constant 2 : index
    %c0_11 = arith.constant 0 : index
    %23 = vector.load %arg4[%c2, %c0_11] : memref<9x128xf32, #tpu.memory_space<vmem>>, vector<1x128xf32>
    %24 = vector.broadcast %23 : vector<1x128xf32> to vector<64x128xf32>
    %25 = arith.mulf %22, %24 : vector<64x128xf32>
    %c0_12 = arith.constant 0 : index
    %c2_13 = arith.constant 2 : index
    %26 = vector.load %arg3[%c0_12, %c2_13] : memref<64x27xf32, #tpu.memory_space<vmem>>, vector<64x1xf32>
    %27 = vector.broadcast %26 : vector<64x1xf32> to vector<64x128xf32>
    %28 = arith.mulf %25, %27 : vector<64x128xf32>
    %29 = arith.addf %21, %28 : vector<64x128xf32>
    %c127_i32 = arith.constant 127 : i32
    %30 = tpu.dynamic_rotate %2 by %c127_i32 dim 1 : vector<64x128xf32>, i32 -> vector<64x128xf32>
    %c4 = arith.constant 4 : index
    %c0_14 = arith.constant 0 : index
    %31 = vector.load %arg4[%c4, %c0_14] : memref<9x128xf32, #tpu.memory_space<vmem>>, vector<1x128xf32>
    %32 = vector.broadcast %31 : vector<1x128xf32> to vector<64x128xf32>
    %33 = arith.mulf %30, %32 : vector<64x128xf32>
    %c0_15 = arith.constant 0 : index
    %c4_16 = arith.constant 4 : index
    %34 = vector.load %arg3[%c0_15, %c4_16] : memref<64x27xf32, #tpu.memory_space<vmem>>, vector<64x1xf32>
    %35 = vector.broadcast %34 : vector<64x1xf32> to vector<64x128xf32>
    %36 = arith.mulf %33, %35 : vector<64x128xf32>
    %37 = arith.addf %29, %36 : vector<64x128xf32>
    %c126_i32 = arith.constant 126 : i32
    %38 = tpu.dynamic_rotate %2 by %c126_i32 dim 1 : vector<64x128xf32>, i32 -> vector<64x128xf32>
    %c5 = arith.constant 5 : index
    %c0_17 = arith.constant 0 : index
    %39 = vector.load %arg4[%c5, %c0_17] : memref<9x128xf32, #tpu.memory_space<vmem>>, vector<1x128xf32>
    %40 = vector.broadcast %39 : vector<1x128xf32> to vector<64x128xf32>
    %41 = arith.mulf %38, %40 : vector<64x128xf32>
    %c0_18 = arith.constant 0 : index
    %c5_19 = arith.constant 5 : index
    %42 = vector.load %arg3[%c0_18, %c5_19] : memref<64x27xf32, #tpu.memory_space<vmem>>, vector<64x1xf32>
    %43 = vector.broadcast %42 : vector<64x1xf32> to vector<64x128xf32>
    %44 = arith.mulf %41, %43 : vector<64x128xf32>
    %45 = arith.addf %37, %44 : vector<64x128xf32>
    %c125_i32 = arith.constant 125 : i32
    %46 = tpu.dynamic_rotate %2 by %c125_i32 dim 1 : vector<64x128xf32>, i32 -> vector<64x128xf32>
    %c6 = arith.constant 6 : index
    %c0_20 = arith.constant 0 : index
    %47 = vector.load %arg4[%c6, %c0_20] : memref<9x128xf32, #tpu.memory_space<vmem>>, vector<1x128xf32>
    %48 = vector.broadcast %47 : vector<1x128xf32> to vector<64x128xf32>
    %49 = arith.mulf %46, %48 : vector<64x128xf32>
    %c0_21 = arith.constant 0 : index
    %c6_22 = arith.constant 6 : index
    %50 = vector.load %arg3[%c0_21, %c6_22] : memref<64x27xf32, #tpu.memory_space<vmem>>, vector<64x1xf32>
    %51 = vector.broadcast %50 : vector<64x1xf32> to vector<64x128xf32>
    %52 = arith.mulf %49, %51 : vector<64x128xf32>
    %53 = arith.addf %45, %52 : vector<64x128xf32>
    %c124_i32 = arith.constant 124 : i32
    %54 = tpu.dynamic_rotate %2 by %c124_i32 dim 1 : vector<64x128xf32>, i32 -> vector<64x128xf32>
    %c7 = arith.constant 7 : index
    %c0_23 = arith.constant 0 : index
    %55 = vector.load %arg4[%c7, %c0_23] : memref<9x128xf32, #tpu.memory_space<vmem>>, vector<1x128xf32>
    %56 = vector.broadcast %55 : vector<1x128xf32> to vector<64x128xf32>
    %57 = arith.mulf %54, %56 : vector<64x128xf32>
    %c0_24 = arith.constant 0 : index
    %c7_25 = arith.constant 7 : index
    %58 = vector.load %arg3[%c0_24, %c7_25] : memref<64x27xf32, #tpu.memory_space<vmem>>, vector<64x1xf32>
    %59 = vector.broadcast %58 : vector<64x1xf32> to vector<64x128xf32>
    %60 = arith.mulf %57, %59 : vector<64x128xf32>
    %61 = arith.addf %53, %60 : vector<64x128xf32>
    %c0_26 = arith.constant 0 : index
    %c24 = arith.constant 24 : index
    %62 = vector.load %arg3[%c0_26, %c24] : memref<64x27xf32, #tpu.memory_space<vmem>>, vector<64x1xf32>
    %63 = vector.broadcast %62 : vector<64x1xf32> to vector<64x128xf32>
    %64 = arith.addf %61, %63 : vector<64x128xf32>
    %cst_27 = arith.constant 0.000000e+00 : f32
    %65 = vector.broadcast %cst_27 : f32 to vector<64x128xf32>
    %66 = arith.cmpf ogt, %64, %65 : vector<64x128xf32>
    %67 = math.exp %64 : vector<64x128xf32>
    %cst_28 = arith.constant 1.000000e+00 : f32
    %68 = vector.broadcast %cst_28 : f32 to vector<64x128xf32>
    %69 = arith.subf %67, %68 : vector<64x128xf32>
    %70 = arith.select %66, %64, %69 : vector<64x128xi1>, vector<64x128xf32>
    %c0_29 = arith.constant 0 : index
    %c0_30 = arith.constant 0 : index
    %71 = vector.load %arg5[%c0_29, %c0_30] : memref<128x128xf32, #tpu.memory_space<vmem>>, vector<128x128xf32>
    %cst_31 = arith.constant dense<0.000000e+00> : vector<64x128xf32>
    %72 = tpu.matmul %70, %71, %cst_31 {dimension_numbers = #tpu.dot_dimension_numbers<[1], [0], [0], [1], [0, 0, 1, 1], [], []>} : vector<64x128xf32>, vector<128x128xf32>, vector<64x128xf32> -> vector<64x128xf32>
    %c0_32 = arith.constant 0 : index
    %c8 = arith.constant 8 : index
    %73 = vector.load %arg3[%c0_32, %c8] : memref<64x27xf32, #tpu.memory_space<vmem>>, vector<64x1xf32>
    %74 = vector.broadcast %73 : vector<64x1xf32> to vector<64x128xf32>
    %75 = arith.mulf %72, %74 : vector<64x128xf32>
    %c127_i32_33 = arith.constant 127 : i32
    %76 = tpu.dynamic_rotate %72 by %c127_i32_33 dim 1 : vector<64x128xf32>, i32 -> vector<64x128xf32>
    %c0_34 = arith.constant 0 : index
    %c9 = arith.constant 9 : index
    %77 = vector.load %arg3[%c0_34, %c9] : memref<64x27xf32, #tpu.memory_space<vmem>>, vector<64x1xf32>
    %78 = vector.broadcast %77 : vector<64x1xf32> to vector<64x128xf32>
    %79 = arith.mulf %76, %78 : vector<64x128xf32>
    %80 = arith.addf %75, %79 : vector<64x128xf32>
    %c126_i32_35 = arith.constant 126 : i32
    %81 = tpu.dynamic_rotate %72 by %c126_i32_35 dim 1 : vector<64x128xf32>, i32 -> vector<64x128xf32>
    %c0_36 = arith.constant 0 : index
    %c10 = arith.constant 10 : index
    %82 = vector.load %arg3[%c0_36, %c10] : memref<64x27xf32, #tpu.memory_space<vmem>>, vector<64x1xf32>
    %83 = vector.broadcast %82 : vector<64x1xf32> to vector<64x128xf32>
    %84 = arith.mulf %81, %83 : vector<64x128xf32>
    %85 = arith.addf %80, %84 : vector<64x128xf32>
    %c125_i32_37 = arith.constant 125 : i32
    %86 = tpu.dynamic_rotate %72 by %c125_i32_37 dim 1 : vector<64x128xf32>, i32 -> vector<64x128xf32>
    %c0_38 = arith.constant 0 : index
    %c11 = arith.constant 11 : index
    %87 = vector.load %arg3[%c0_38, %c11] : memref<64x27xf32, #tpu.memory_space<vmem>>, vector<64x1xf32>
    %88 = vector.broadcast %87 : vector<64x1xf32> to vector<64x128xf32>
    %89 = arith.mulf %86, %88 : vector<64x128xf32>
    %90 = arith.addf %85, %89 : vector<64x128xf32>
    %c124_i32_39 = arith.constant 124 : i32
    %91 = tpu.dynamic_rotate %72 by %c124_i32_39 dim 1 : vector<64x128xf32>, i32 -> vector<64x128xf32>
    %c0_40 = arith.constant 0 : index
    %c12 = arith.constant 12 : index
    %92 = vector.load %arg3[%c0_40, %c12] : memref<64x27xf32, #tpu.memory_space<vmem>>, vector<64x1xf32>
    %93 = vector.broadcast %92 : vector<64x1xf32> to vector<64x128xf32>
    %94 = arith.mulf %91, %93 : vector<64x128xf32>
    %95 = arith.addf %90, %94 : vector<64x128xf32>
    %c123_i32 = arith.constant 123 : i32
    %96 = tpu.dynamic_rotate %72 by %c123_i32 dim 1 : vector<64x128xf32>, i32 -> vector<64x128xf32>
    %c0_41 = arith.constant 0 : index
    %c13 = arith.constant 13 : index
    %97 = vector.load %arg3[%c0_41, %c13] : memref<64x27xf32, #tpu.memory_space<vmem>>, vector<64x1xf32>
    %98 = vector.broadcast %97 : vector<64x1xf32> to vector<64x128xf32>
    %99 = arith.mulf %96, %98 : vector<64x128xf32>
    %100 = arith.addf %95, %99 : vector<64x128xf32>
    %c122_i32 = arith.constant 122 : i32
    %101 = tpu.dynamic_rotate %72 by %c122_i32 dim 1 : vector<64x128xf32>, i32 -> vector<64x128xf32>
    %c0_42 = arith.constant 0 : index
    %c14 = arith.constant 14 : index
    %102 = vector.load %arg3[%c0_42, %c14] : memref<64x27xf32, #tpu.memory_space<vmem>>, vector<64x1xf32>
    %103 = vector.broadcast %102 : vector<64x1xf32> to vector<64x128xf32>
    %104 = arith.mulf %101, %103 : vector<64x128xf32>
    %105 = arith.addf %100, %104 : vector<64x128xf32>
    %c121_i32 = arith.constant 121 : i32
    %106 = tpu.dynamic_rotate %72 by %c121_i32 dim 1 : vector<64x128xf32>, i32 -> vector<64x128xf32>
    %c0_43 = arith.constant 0 : index
    %c15 = arith.constant 15 : index
    %107 = vector.load %arg3[%c0_43, %c15] : memref<64x27xf32, #tpu.memory_space<vmem>>, vector<64x1xf32>
    %108 = vector.broadcast %107 : vector<64x1xf32> to vector<64x128xf32>
    %109 = arith.mulf %106, %108 : vector<64x128xf32>
    %110 = arith.addf %105, %109 : vector<64x128xf32>
    %c120_i32 = arith.constant 120 : i32
    %111 = tpu.dynamic_rotate %72 by %c120_i32 dim 1 : vector<64x128xf32>, i32 -> vector<64x128xf32>
    %c0_44 = arith.constant 0 : index
    %c16 = arith.constant 16 : index
    %112 = vector.load %arg3[%c0_44, %c16] : memref<64x27xf32, #tpu.memory_space<vmem>>, vector<64x1xf32>
    %113 = vector.broadcast %112 : vector<64x1xf32> to vector<64x128xf32>
    %114 = arith.mulf %111, %113 : vector<64x128xf32>
    %115 = arith.addf %110, %114 : vector<64x128xf32>
    %c119_i32 = arith.constant 119 : i32
    %116 = tpu.dynamic_rotate %72 by %c119_i32 dim 1 : vector<64x128xf32>, i32 -> vector<64x128xf32>
    %c0_45 = arith.constant 0 : index
    %c17 = arith.constant 17 : index
    %117 = vector.load %arg3[%c0_45, %c17] : memref<64x27xf32, #tpu.memory_space<vmem>>, vector<64x1xf32>
    %118 = vector.broadcast %117 : vector<64x1xf32> to vector<64x128xf32>
    %119 = arith.mulf %116, %118 : vector<64x128xf32>
    %120 = arith.addf %115, %119 : vector<64x128xf32>
    %c118_i32 = arith.constant 118 : i32
    %121 = tpu.dynamic_rotate %72 by %c118_i32 dim 1 : vector<64x128xf32>, i32 -> vector<64x128xf32>
    %c0_46 = arith.constant 0 : index
    %c18 = arith.constant 18 : index
    %122 = vector.load %arg3[%c0_46, %c18] : memref<64x27xf32, #tpu.memory_space<vmem>>, vector<64x1xf32>
    %123 = vector.broadcast %122 : vector<64x1xf32> to vector<64x128xf32>
    %124 = arith.mulf %121, %123 : vector<64x128xf32>
    %125 = arith.addf %120, %124 : vector<64x128xf32>
    %c117_i32 = arith.constant 117 : i32
    %126 = tpu.dynamic_rotate %72 by %c117_i32 dim 1 : vector<64x128xf32>, i32 -> vector<64x128xf32>
    %c0_47 = arith.constant 0 : index
    %c19 = arith.constant 19 : index
    %127 = vector.load %arg3[%c0_47, %c19] : memref<64x27xf32, #tpu.memory_space<vmem>>, vector<64x1xf32>
    %128 = vector.broadcast %127 : vector<64x1xf32> to vector<64x128xf32>
    %129 = arith.mulf %126, %128 : vector<64x128xf32>
    %130 = arith.addf %125, %129 : vector<64x128xf32>
    %c116_i32 = arith.constant 116 : i32
    %131 = tpu.dynamic_rotate %72 by %c116_i32 dim 1 : vector<64x128xf32>, i32 -> vector<64x128xf32>
    %c0_48 = arith.constant 0 : index
    %c20 = arith.constant 20 : index
    %132 = vector.load %arg3[%c0_48, %c20] : memref<64x27xf32, #tpu.memory_space<vmem>>, vector<64x1xf32>
    %133 = vector.broadcast %132 : vector<64x1xf32> to vector<64x128xf32>
    %134 = arith.mulf %131, %133 : vector<64x128xf32>
    %135 = arith.addf %130, %134 : vector<64x128xf32>
    %c115_i32 = arith.constant 115 : i32
    %136 = tpu.dynamic_rotate %72 by %c115_i32 dim 1 : vector<64x128xf32>, i32 -> vector<64x128xf32>
    %c0_49 = arith.constant 0 : index
    %c21 = arith.constant 21 : index
    %137 = vector.load %arg3[%c0_49, %c21] : memref<64x27xf32, #tpu.memory_space<vmem>>, vector<64x1xf32>
    %138 = vector.broadcast %137 : vector<64x1xf32> to vector<64x128xf32>
    %139 = arith.mulf %136, %138 : vector<64x128xf32>
    %140 = arith.addf %135, %139 : vector<64x128xf32>
    %c114_i32 = arith.constant 114 : i32
    %141 = tpu.dynamic_rotate %72 by %c114_i32 dim 1 : vector<64x128xf32>, i32 -> vector<64x128xf32>
    %c0_50 = arith.constant 0 : index
    %c22 = arith.constant 22 : index
    %142 = vector.load %arg3[%c0_50, %c22] : memref<64x27xf32, #tpu.memory_space<vmem>>, vector<64x1xf32>
    %143 = vector.broadcast %142 : vector<64x1xf32> to vector<64x128xf32>
    %144 = arith.mulf %141, %143 : vector<64x128xf32>
    %145 = arith.addf %140, %144 : vector<64x128xf32>
    %c113_i32 = arith.constant 113 : i32
    %146 = tpu.dynamic_rotate %72 by %c113_i32 dim 1 : vector<64x128xf32>, i32 -> vector<64x128xf32>
    %c0_51 = arith.constant 0 : index
    %c23 = arith.constant 23 : index
    %147 = vector.load %arg3[%c0_51, %c23] : memref<64x27xf32, #tpu.memory_space<vmem>>, vector<64x1xf32>
    %148 = vector.broadcast %147 : vector<64x1xf32> to vector<64x128xf32>
    %149 = arith.mulf %146, %148 : vector<64x128xf32>
    %150 = arith.addf %145, %149 : vector<64x128xf32>
    %c0_52 = arith.constant 0 : index
    %c25 = arith.constant 25 : index
    %151 = vector.load %arg3[%c0_52, %c25] : memref<64x27xf32, #tpu.memory_space<vmem>>, vector<64x1xf32>
    %152 = vector.broadcast %151 : vector<64x1xf32> to vector<64x128xf32>
    %153 = arith.addf %150, %152 : vector<64x128xf32>
    %cst_53 = arith.constant 0.000000e+00 : f32
    %154 = vector.broadcast %cst_53 : f32 to vector<64x128xf32>
    %155 = arith.cmpf ogt, %153, %154 : vector<64x128xf32>
    %156 = math.exp %153 : vector<64x128xf32>
    %cst_54 = arith.constant 1.000000e+00 : f32
    %157 = vector.broadcast %cst_54 : f32 to vector<64x128xf32>
    %158 = arith.subf %156, %157 : vector<64x128xf32>
    %159 = arith.select %155, %153, %158 : vector<64x128xi1>, vector<64x128xf32>
    %c0_55 = arith.constant 0 : index
    %c0_56 = arith.constant 0 : index
    %160 = vector.load %arg6[%c0_55, %c0_56] : memref<8x64xf32, #tpu.memory_space<vmem>>, vector<8x64xf32>
    %cst_57 = arith.constant dense<0.000000e+00> : vector<8x128xf32>
    %161 = tpu.matmul %160, %159, %cst_57 {dimension_numbers = #tpu.dot_dimension_numbers<[1], [0], [0], [1], [0, 0, 1, 1], [], []>} : vector<8x64xf32>, vector<64x128xf32>, vector<8x128xf32> -> vector<8x128xf32>
    %c8_58 = arith.constant 8 : index
    %c0_59 = arith.constant 0 : index
    %162 = vector.load %arg4[%c8_58, %c0_59] : memref<9x128xf32, #tpu.memory_space<vmem>>, vector<1x128xf32>
    %163 = vector.broadcast %162 : vector<1x128xf32> to vector<8x128xf32>
    %164 = arith.mulf %161, %163 : vector<8x128xf32>
    %cst_60 = arith.constant dense<0.000000e+00> : vector<8xf32>
    %165 = vector.multi_reduction <add>, %164, %cst_60 [1] : vector<8x128xf32> to vector<8xf32>
    %166 = vector.shape_cast %165 : vector<8xf32> to vector<8x1xf32>
    %c0_61 = arith.constant 0 : index
    %c26 = arith.constant 26 : index
    %167 = vector.load %arg3[%c0_61, %c26] : memref<64x27xf32, #tpu.memory_space<vmem>>, vector<8x1xf32>
    %168 = arith.addf %166, %167 : vector<8x1xf32>
    %c0_62 = arith.constant 0 : index
    %c0_63 = arith.constant 0 : index
    %169 = vector.load %arg7[%c0_62, %c0_63] : memref<8x1xf32, #tpu.memory_space<vmem>>, vector<8x1xf32>
    tpu.vector_store %arg7[%c0_62, %c0_63], %168 {strides = array<i32>} : memref<8x1xf32, #tpu.memory_space<vmem>>, vector<8x1xf32>,
    return
  }
  func.func @transform_0(%arg0: i32) -> (i32, i32) {
    %c0_i32 = arith.constant 0 : i32
    %c0_i32_0 = arith.constant 0 : i32
    return %arg0, %c0_i32 : i32, i32
  }
  func.func @transform_1(%arg0: i32) -> (i32, i32) {
    %c0_i32 = arith.constant 0 : i32
    %c0_i32_0 = arith.constant 0 : i32
    %c0_i32_1 = arith.constant 0 : i32
    return %c0_i32, %c0_i32_0 : i32, i32
  }
  func.func @transform_2(%arg0: i32) -> (i32, i32) {
    %c0_i32 = arith.constant 0 : i32
    %c0_i32_0 = arith.constant 0 : i32
    %c0_i32_1 = arith.constant 0 : i32
    return %c0_i32, %c0_i32_0 : i32, i32
  }
  func.func @transform_3(%arg0: i32) -> (i32, i32) {
    %c0_i32 = arith.constant 0 : i32
    %c0_i32_0 = arith.constant 0 : i32
    %c0_i32_1 = arith.constant 0 : i32
    return %c0_i32, %c0_i32_0 : i32, i32
  }
  func.func @transform_4(%arg0: i32) -> (i32, i32) {
    %c0_i32 = arith.constant 0 : i32
    %c0_i32_0 = arith.constant 0 : i32
    %c0_i32_1 = arith.constant 0 : i32
    return %c0_i32, %c0_i32_0 : i32, i32
  }
  func.func @transform_5(%arg0: i32) -> (i32, i32) {
    %c0_i32 = arith.constant 0 : i32
    %c0_i32_0 = arith.constant 0 : i32
    %c0_i32_1 = arith.constant 0 : i32
    return %c0_i32, %c0_i32_0 : i32, i32
  }
  func.func @transform_6(%arg0: i32) -> (i32, i32) {
    %c0_i32 = arith.constant 0 : i32
    %c0_i32_0 = arith.constant 0 : i32
    return %arg0, %c0_i32 : i32, i32
  }
}

</mosaic_0001>

<bundles_post_ra>
// kernel: tpu_custom_call.1
= control target key start
LH: loop header
LB: loop body
LE: loop exit
PB: predicated region body
PF: predicated region fallthrough
CT: control target
= control target key end

     0   :  { %11 = vsyncpa [#allocation3], 0  ;;  %s4954_s0 = inlined_call_operand.vmem [shape: f32[64,128], index: 0, kind: input, shape index: {}]   ;;  %s4955_s1 = inlined_call_operand.vmem [shape: f32[64,32], index: 1, kind: input, shape index: {}]   ;;  %s4956_s2 = inlined_call_operand.vmem [shape: f32[64,27], index: 2, kind: input, shape index: {}]   ;;  %s4957_s3 = inlined_call_operand.hbm [shape: f32[9,128], index: 3, kind: input, shape index: {}]   ;;  %s4958_s4 = inlined_call_operand.vmem [shape: f32[128,128], index: 4, kind: input, shape index: {}]   ;;  %s4959_s5 = inlined_call_operand.hbm [shape: f32[8,64], index: 5, kind: input, shape index: {}]   ;;  %s4960_s6 = inlined_call_operand.vmem [shape: f32[16,1], index: 6, kind: output, shape index: {}]  }
   0x1   :  { %12 = vsyncpa [#allocation5], 0  ;;  %s3005_s21 = smov 0  }
   0x2 LB: > { %s3011_s22 = sadd.s32 4294967295, %s2917_s21   ;;  %p2466_p0 = scmp.ge.s32.totalorder %s2917_s21, 1  ;;  %s2917_s21 = sphi %s3005_s21, %s18_s21  }
   0x3   : > { %p180_p1 = scmp.lt.s32.totalorder %s2917_s21, 3  ;;  %s2919_s23 = smov [#allocation2]  }
   0x4   : > { %s198_s24 = sshll.u32 %s2919_s23, 4  ;;  %p2654_p3 = scmp.eq.s32.totalorder %s3011_s22, 0  ;;  %s199_s24 = int_to_ptr.vmem [resolvable:$true] %s198_s24 }
   0x5   : > { %p3015_p2 = pnand %p2466_p0, %p180_p1  ;;  %s2920_s26 = smov [#allocation4]  }
   0x6   : > { %s215_s27 = sshll.u32 %s2920_s26, 4  ;;  %s2862_s29 = scalar_lea.vmem %s199_s24, 256  ;;  %s216_s27 = int_to_ptr.vmem [resolvable:$true] %s215_s27 }
   0x7   : > { %p2647_p4 = pneg %p3015_p2  ;;  %p2863_p7 = scmp.ne.s32.totalorder %s199_s24, %s2862_s29 }
   0x8   : > { %p2870_p10 = scmp.lt.s32.totalorder %s199_s24, %s199_s24  ;;  %p2871_p11 = scmp.lt.s32.totalorder %s2862_s29, %s2862_s29 }
   0x9   : > { %p3024_p5 = pnand %p2654_p3, %p2647_p4 }
   0xa   : > { %p2872_p12 = por %p2871_p11, %p2870_p10 }
   0xb   : > { %p2853_p6 = pneg %p3024_p5 }
   0xd   : > { %p2865_p8 = pnand %p2863_p7, %p2853_p6 }
   0xf   : > { %p2866_p9 = pneg %p2865_p8 }
  0x11   : > { %p2873_p13 = pnand %p2872_p12, %p2866_p9 }
  0x13   : > { %2876 = shalt.err (!%p2873_p13)
}
  0x14   : > { %s2921_s30 = smov 128   ;;  %s2922_s7 = smov 8  }
  0x15   : > { %2650 = dma.hbm_to_vmem [thread:$0]  (!%p3024_p5), %s4957_s3, 256, %s199_s24, [#allocation3], %s2921_s30, %s2921_s30, %s2922_s7  }
  0x16   : > { %s2888_s10 = scalar_lea.vmem %s216_s27, 128  ;;  %p2896_p7 = scmp.lt.s32.totalorder %s216_s27, %s216_s27 }
  0x17   : > { %p2889_p0 = scmp.ne.s32.totalorder %s216_s27, %s2888_s10  ;;  %p2897_p8 = scmp.lt.s32.totalorder %s2888_s10, %s2888_s10 }
  0x19   : > { %p2891_p1 = pnand %p2889_p0, %p2853_p6  ;;  %p2898_p10 = por %p2897_p8, %p2896_p7 }
  0x1b   : > { %p2892_p4 = pneg %p2891_p1 }
  0x1d   : > { %p2899_p9 = pnand %p2898_p10, %p2892_p4 }
  0x1f   : > { %2902 = shalt.err (!%p2899_p9)
}
  0x20   : > { %2653 = dma.hbm_to_vmem [thread:$0]  (!%p3024_p5), %s4959_s5, 128, %s216_s27, [#allocation5]  }
  0x21   : > { %237 = sbr.rel (%p3015_p2) target bundleno = 1739 (0x6cb), region = 44 }
  0x26   : > { %2908 = dma.done.wait (%p2654_p3), [#allocation3], 256  }
  0x27   : > { %2910 = vsyncadd (%p2654_p3), [#allocation3], 4294967040 }
  0x28   : > { %2912 = dma.done.wait (%p2654_p3), [#allocation5], 128  }
  0x29   : > { %2914 = vsyncadd (%p2654_p3), [#allocation5], 4294967168  ;;  %s2473_s13 = sshll.u32 %s3011_s22, 2  ;;  %v2923_v0 = vmov 3   ;;  %vm292_vm0 = vcmask 261120   ;;  %v280_v3 = vld [vmem:[%s4955_s1] sm:$0xff] }
  0x2a   : > { %p271_p6 = scmp.lt.s32.totalorder %s2473_s13, 7  ;;  %2718 = vset.pattern.permute.xlu1 %v2923_v0  ;;  %2717 = vset.pattern.permute.xlu0 %v2923_v0  ;;  %v3067_v6 = vld [vmem:[%s4956_s2 + $0x10] sm:$0xff]  ;;  %v3073_v7 = vld [vmem:[%s4956_s2] sm:$0xff]  ;;  %v281_v8 = vld [vmem:[%s4955_s1 + $0x8] sm:$0xff]  ;;  %v2924_v21 = vmov 0   ;;  %v2925_v22 = vmov 1  }
  0x2b   : > { %2564 = vmatprep.mubr.msk.f32.mxu0 %vm292_vm0, %v280_v3  ;;  %442 = vperm.xlu1 %2718, %v3067_v6   ;;  %v3081_v9 = vld [vmem:[%s4956_s2 + $0x18] sm:$0xff]  ;;  %v282_v10 = vld [vmem:[%s4955_s1 + $0x10] sm:$0xff]  ;;  %v3092_v11 = vld [vmem:[%s4956_s2 + $0x8] sm:$0xff]  ;;  %v2926_v23 = vmov 2   ;;  %v2927_v24 = vmov 4   ;;  %v2928_v25 = vmov 5  }
  0x2c   : > { %s5323_s13 = smov (!%p271_p6, %s2473_s13), 7  ;;  %432 = vperm.xlu0 %2717, %v3073_v7   ;;  %v283_v12 = vld [vmem:[%s4955_s1 + $0x18] sm:$0xff]  ;;  %v3101_v13 = vld [vmem:[%s4956_s2 + $0x28] sm:$0xff]  ;;  %v284_v14 = vld [vmem:[%s4955_s1 + $0x20] sm:$0xff]  ;;  %v2929_v26 = vmov 6   ;;  %v2930_v37 = vmov 7  }
  0x2d   : > { %s2474_s14 = sshll.u32 %s5323_s13, 3  ;;  %v3112_v15 = vld [vmem:[%s4956_s2 + $0x20] sm:$0xff]  ;;  %v285_v16 = vld [vmem:[%s4955_s1 + $0x28] sm:$0xff]  ;;  %v3121_v17 = vld [vmem:[%s4956_s2 + $0x38] sm:$0xff]  ;;  %s2931_s30 = smov 2   ;;  %vm2968_vm10 = vmmov 0  }
  0x2e   : > { %s274_s17 = scalar_lea.vmem %s4954_s0, %s2474_s14  ;;  %v286_v18 = vld [vmem:[%s4955_s1 + $0x30] sm:$0xff]  ;;  %v287_v20 = vld [vmem:[%s4955_s1 + $0x38] sm:$0xff]  ;;  %s2932_s7 = smov 3  }
  0x2f   : > { %v291_v1 = vld [vmem:[%s274_s17 + $0x18] sm:$0xff]  ;;  %v290_v2 = vld [vmem:[%s274_s17 + $0x10] sm:$0xff]  ;;  %v289_v4 = vld [vmem:[%s274_s17 + $0x8] sm:$0xff]  ;;  %447 = vperm.xlu1 %2718, %v3081_v9   ;;  %s2933_s8 = smov 127   ;;  %s2934_s9 = smov 1  }
  0x30   : > { %2556 = vmatprep.subr.mxu0 %v291_v1  ;;  %v288_v5 = vld [vmem:[%s274_s17] sm:$0xff]  ;;  %437 = vperm.xlu0 %2717, %v3092_v11   ;;  %v3132_v19 = vld [vmem:[%s4956_s2 + $0x30] sm:$0xff]  ;;  %s2935_s10 = smov 125   ;;  %s2936_s11 = smov 126  }
  0x31   : > { %2557 = vmatpush3.msra.mxu0 %v291_v1  ;;  %4985 = vst [vmem:[#allocation8_spill] sm:$0xff] %v3132_v19  ;;  %s2937_s12 = smov 124   ;;  %s2951_s27 = smov 122  }
  0x32   : > { %2558 = vmatprep.subr.mxu0 %v290_v2  ;;  %s2952_s28 = smov 123   ;;  %s2953_s29 = smov 121  }
  0x33   : > { %2559 = vmatpush3.msra.mxu0 %v290_v2  ;;  %457 = vperm.xlu1 %2718, %v3101_v13   ;;  %s2964_s13 = smov 113   ;;  %p276_p2 = scmp.lt.s32.totalorder %s3011_s22, 1 }
  0x34   : > { %2560 = vmatprep.subr.mxu0 %v289_v4  ;;  %452 = vperm.xlu0 %2717, %v3112_v15  }
  0x35   : > { %2561 = vmatpush3.msra.mxu0 %v289_v4  ;;  %s5325_s22 = smov (!%p276_p2, %s3011_s22), 1 }
  0x36   : > { %2562 = vmatprep.subr.mxu0 %v288_v5 }
  0x37   : > { %2563 = vmatpush3.msra.mxu0 %v288_v5  ;;  %467 = vperm.xlu1 %2718, %v3121_v17  }
  0x38   : > { %2565 = vmatmul.mubr.msk.f32.vlgmr.msra.gmra.mxu0 %vm292_vm0, %v281_v8  ;;  %462 = vperm.xlu0 %2717, %v3132_v19  }
  0x39   : > { %2567 = vmatprep.mubr.msk.f32.mxu0 %vm292_vm0, %v282_v10 }
  0x3b   : > { %2720 = vset.pattern.permute.xlu1 %v2924_v21 }
  0x3c   : > { %2568 = vmatmul.mubr.msk.f32.gmra.mxu0 %vm292_vm0, %v283_v12  ;;  %512 = vperm.xlu1 %2720, %v3092_v11  }
  0x3d   : > { %2570 = vmatprep.mubr.msk.f32.mxu0 %vm292_vm0, %v284_v14  ;;  %2719 = vset.pattern.permute.xlu0 %v2924_v21 }
  0x3e   : > { %508 = vperm.xlu0 %2719, %v3073_v7  }
  0x40   : > { %2571 = vmatmul.mubr.msk.f32.gmra.mxu0 %vm292_vm0, %v285_v16  ;;  %516 = vperm.xlu1 %2720, %v3067_v6  }
  0x41   : > { %2573 = vmatprep.mubr.msk.f32.mxu0 %vm292_vm0, %v286_v18 }
  0x42   : > { %520 = vperm.xlu0 %2719, %v3081_v9  }
  0x44   : > { %2574 = vmatmul.mubr.msk.f32.gmra.mxu0 %vm292_vm0, %v287_v20  ;;  %524 = vperm.xlu1 %2720, %v3112_v15  }
  0x46   : > { %528 = vperm.xlu0 %2719, %v3101_v13  }
  0x48   : > { %532 = vperm.xlu1 %2720, %v3132_v19  }
  0x4a   : > { %536 = vperm.xlu0 %2719, %v3121_v17  }
  0x4c   : > { %2721 = vset.pattern.permute.xlu1 %v2925_v22 }
  0x4d   : > { %585 = vperm.xlu1 %2721, %v3073_v7  }
  0x4e   : > { %2722 = vset.pattern.permute.xlu0 %v2925_v22 }
  0x4f   : > { %589 = vperm.xlu0 %2722, %v3092_v11  }
  0x51   : > { %593 = vperm.xlu1 %2721, %v3067_v6  }
  0x53   : > { %601 = vperm.xlu0 %2722, %v3112_v15  }
  0x55   : > { %597 = vperm.xlu1 %2721, %v3081_v9  }
  0x57   : > { %609 = vperm.xlu0 %2722, %v3132_v19  }
  0x59   : > { %605 = vperm.xlu1 %2721, %v3101_v13  }
  0x5b   : > { %2723 = vset.pattern.permute.xlu0 %v2926_v23 }
  0x5c   : > { %662 = vperm.xlu0 %2723, %v3073_v7  }
  0x5d   : > { %613 = vperm.xlu1 %2721, %v3121_v17  }
  0x60   : > { %674 = vperm.xlu0 %2723, %v3081_v9  }
  0x61   : > { %2724 = vset.pattern.permute.xlu1 %v2926_v23 }
  0x62   : > { %666 = vperm.xlu1 %2724, %v3092_v11  }
  0x64   : > { %682 = vperm.xlu0 %2723, %v3101_v13  }
  0x66   : > { %670 = vperm.xlu1 %2724, %v3067_v6  }
  0x68   : > { %690 = vperm.xlu0 %2723, %v3121_v17  }
  0x6a   : > { %678 = vperm.xlu1 %2724, %v3112_v15  }
  0x6c   : > { %2726 = vset.pattern.permute.xlu0 %v2927_v24 }
  0x6d   : > { %743 = vperm.xlu0 %2726, %v3092_v11  }
  0x6e   : > { %686 = vperm.xlu1 %2724, %v3132_v19  }
  0x71   : > { %755 = vperm.xlu0 %2726, %v3112_v15  }
  0x72   : > { %2725 = vset.pattern.permute.xlu1 %v2927_v24 }
  0x73   : > { %739 = vperm.xlu1 %2725, %v3073_v7  }
  0x75   : > { %763 = vperm.xlu0 %2726, %v3132_v19  }
  0x77   : > { %747 = vperm.xlu1 %2725, %v3067_v6  }
  0x79   : > { %2727 = vset.pattern.permute.xlu0 %v2928_v25 }
  0x7a   : > { %816 = vperm.xlu0 %2727, %v3073_v7  }
  0x7b   : > { %751 = vperm.xlu1 %2725, %v3081_v9  }
  0x7e   : > { %828 = vperm.xlu0 %2727, %v3081_v9  }
  0x7f   : > { %759 = vperm.xlu1 %2725, %v3101_v13  }
  0x82   : > { %836 = vperm.xlu0 %2727, %v3101_v13  }
  0x83   : > { %767 = vperm.xlu1 %2725, %v3121_v17  }
  0x86   : > { %844 = vperm.xlu0 %2727, %v3121_v17  }
  0x87   : > { %2728 = vset.pattern.permute.xlu1 %v2928_v25 }
  0x88   : > { %820 = vperm.xlu1 %2728, %v3092_v11  }
  0x8a   : > { %2730 = vset.pattern.permute.xlu0 %v2929_v26 }
  0x8b   : > { %897 = vperm.xlu0 %2730, %v3092_v11  }
  0x8c   : > { %824 = vperm.xlu1 %2728, %v3067_v6  }
  0x8f   : > { %909 = vperm.xlu0 %2730, %v3112_v15  }
  0x90   : > { %832 = vperm.xlu1 %2728, %v3112_v15  }
  0x93   : > { %917 = vperm.xlu0 %2730, %v3132_v19  }
  0x94   : > { %840 = vperm.xlu1 %2728, %v3132_v19  }
  0x97   : > { %2731 = vset.pattern.permute.xlu0 %v2930_v37 }
  0x98   : > { %2729 = vset.pattern.permute.xlu1 %v2929_v26 }
  0x99   : > { %893 = vperm.xlu1 %2729, %v3073_v7  }
  0x9d   : > { %901 = vperm.xlu1 %2729, %v3067_v6  }
  0xa1   : > { %905 = vperm.xlu1 %2729, %v3081_v9  }
  0xa5   : > { %913 = vperm.xlu1 %2729, %v3101_v13  }
  0xa6   : > { %v3188_v27 = vpop.permute.xlu1 %442 }
  0xa7   : > { %v3202_v34 = vpop.permute.xlu0 %432 }
  0xa9   : > { %921 = vperm.xlu1 %2729, %v3121_v17  }
  0xaa   : > { %v3190_v28 = vpop.permute.xlu1 %447 }
  0xab   : > { %v3206_v36 = vpop.permute.xlu0 %437 }
  0xad   : > { %2732 = vset.pattern.permute.xlu1 %v2930_v37 }
  0xae   : > { %v3192_v29 = vpop.permute.xlu1 %457 }
  0xaf   : > { %v3210_v39 = vpop.permute.xlu0 %452 }
  0xb2   : > { %v3194_v30 = vpop.permute.xlu1 %467 }
  0xb3   : > { %v3214_v41 = vpop.permute.xlu0 %462 }
  0xb7   : > { %v3196_v31 = vpop.permute.xlu1 %512 }
  0xb9   : > { %v3218_v43 = vpop.permute.xlu0 %508 }
  0xbb   : > { %v3198_v32 = vpop.permute.xlu1 %516 }
  0xbd   : > { %v3228_v46 = vpop.permute.xlu0 %520 }
  0xbf   : > { %v3200_v33 = vpop.permute.xlu1 %524 }
  0xc0   : > { %4986 = vst [vmem:[#allocation9_spill] sm:$0xff] %v3200_v33 }
  0xc1   : > { %v3236_v48 = vpop.permute.xlu0 %528 }
  0xc2   : > { %4991 = vst [vmem:[#allocation14_spill] sm:$0xff] %v3236_v48 }
  0xc3   : > { %v3204_v35 = vpop.permute.xlu1 %532 }
  0xc4   : > { %4987 = vst [vmem:[#allocation10_spill] sm:$0xff] %v3204_v35  ;;  %v2939_v35 = vmov 8  }
  0xc5   : > { %v3250_v51 = vpop.permute.xlu0 %536 }
  0xc6   : > { %4992 = vst [vmem:[#allocation15_spill] sm:$0xff] %v3250_v51  ;;  %v1108_v51 = vld [vmem:[%s4958_s4 + $0x58] sm:$0xff] }
  0xc8   : > { %v3208_v38 = vpop.permute.xlu1 %585 }
  0xca   : > { %v3258_v53 = vpop.permute.xlu0 %589 }
  0xcc   : > { %v3212_v40 = vpop.permute.xlu1 %593 }
  0xcd   : > { %4988 = vst [vmem:[#allocation11_spill] sm:$0xff] %v3212_v40 }
  0xce   : > { %v3266_v55 = vpop.permute.xlu0 %601 }
  0xcf   : > { %4995 = vst [vmem:[#allocation18_spill] sm:$0xff] %v3266_v55  ;;  %v1102_v55 = vld [vmem:[%s4958_s4 + $0x28] sm:$0xff] }
  0xd0   : > { %v3216_v42 = vpop.permute.xlu1 %597 }
  0xd2   : > { %v3280_v58 = vpop.permute.xlu0 %609 }
  0xd3   : > { %4997 = vst [vmem:[#allocation20_spill] sm:$0xff] %v3280_v58  ;;  %v2938_v58 = vmov 24  }
  0xd4   : > { %v3226_v45 = vpop.permute.xlu1 %605 }
  0xd5   : > { %4989 = vst [vmem:[#allocation12_spill] sm:$0xff] %v3226_v45 }
  0xd7   : > { %v3288_v60 = vpop.permute.xlu0 %662 }
  0xd8   : > { %v3234_v47 = vpop.permute.xlu1 %613 }
  0xd9   : > { %4990 = vst [vmem:[#allocation13_spill] sm:$0xff] %v3234_v47 }
  0xdb   : > { %v3302_v63 = vpop.permute.xlu0 %674 }
  0xdc   : > { %4999 = vst [vmem:[#allocation22_spill] sm:$0xff] %v3302_v63 }
  0xdd   : > { %v3242_v49 = vpop.permute.xlu1 %666 }
  0xdf   : > { %v3310_v1 = vpop.permute.xlu0 %682 }
  0xe0   : > { %5001 = vst [vmem:[#allocation24_spill] sm:$0xff] %v3310_v1 }
  0xe1   : > { %v3256_v52 = vpop.permute.xlu1 %670 }
  0xe2   : > { %4993 = vst [vmem:[#allocation16_spill] sm:$0xff] %v3256_v52  ;;  %v1098_v52 = vld [vmem:[%s4958_s4 + $0x8] sm:$0xff] }
  0xe3   : > { %v3324_v4 = vpop.permute.xlu0 %690 }
  0xe4   : > { %5003 = vst [vmem:[#allocation26_spill] sm:$0xff] %v3324_v4 }
  0xe5   : > { %v3264_v54 = vpop.permute.xlu1 %678 }
  0xe6   : > { %4994 = vst [vmem:[#allocation17_spill] sm:$0xff] %v3264_v54 }
  0xe8   : > { %v3330_v5 = vpop.permute.xlu0 %743 }
  0xe9   : > { %v3278_v57 = vpop.permute.xlu1 %686 }
  0xea   : > { %4996 = vst [vmem:[#allocation19_spill] sm:$0xff] %v3278_v57 }
  0xec   : > { %v3340_v12 = vpop.permute.xlu0 %755 }
  0xed   : > { %5005 = vst [vmem:[#allocation28_spill] sm:$0xff] %v3340_v12 }
  0xee   : > { %v3286_v59 = vpop.permute.xlu1 %739 }
  0xf0   : > { %v3354_v18 = vpop.permute.xlu0 %763 }
  0xf1   : > { %5007 = vst [vmem:[#allocation30_spill] sm:$0xff] %v3354_v18 }
  0xf2   : > { %v3300_v62 = vpop.permute.xlu1 %747 }
  0xf3   : > { %4998 = vst [vmem:[#allocation21_spill] sm:$0xff] %v3300_v62 }
  0xf5   : > { %v3362_v21 = vpop.permute.xlu0 %816 }
  0xf6   : > { %v3308_v0 = vpop.permute.xlu1 %751  ;;  %5009 = vst [vmem:[#allocation32_spill] sm:$0xff] %v3362_v21 }
  0xf7   : > { %5000 = vst [vmem:[#allocation23_spill] sm:$0xff] %v3308_v0 }
  0xf8   : > { %v3220_v44 = vpop.f32.mrf.mxu0 }
  0xf9   : > { %557 = vrot.lane.b32.xlu0 %v3220_v44, %s2931_s30  ;;  %480 = vrot.lane.b32.xlu1 %v3220_v44, %s2932_s7  ;;  %v3376_v24 = vpop.permute.xlu0 %828 }
  0xfa   : > { %v3244_v50 = vpop.f32.mrf.mxu0  ;;  %v3322_v3 = vpop.permute.xlu1 %759  ;;  %5011 = vst [vmem:[#allocation34_spill] sm:$0xff] %v3376_v24 }
  0xfb   : > { %5002 = vst [vmem:[#allocation25_spill] sm:$0xff] %v3322_v3 }
  0xfc   : > { %v3272_v56 = vpop.f32.mrf.mxu0 }
  0xfd   : > { %711 = vrot.lane.b32.xlu0 %v3220_v44, %s2933_s8  ;;  %634 = vrot.lane.b32.xlu1 %v3220_v44, %s2934_s9  ;;  %v3384_v26 = vpop.permute.xlu0 %836 }
  0xfe   : > { %v3294_v61 = vpop.f32.mrf.mxu0  ;;  %v3332_v8 = vpop.permute.xlu1 %767  ;;  %5013 = vst [vmem:[#allocation36_spill] sm:$0xff] %v3384_v26 }
  0xff   : > { %5004 = vst [vmem:[#allocation27_spill] sm:$0xff] %v3332_v8 }
 0x100   : > { %v3316_v2 = vpop.f32.mrf.mxu0 }
 0x101   : > { %865 = vrot.lane.b32.xlu0 %v3220_v44, %s2935_s10  ;;  %788 = vrot.lane.b32.xlu1 %v3220_v44, %s2936_s11 }
 0x102   : > { %v3342_v14 = vpop.f32.mrf.mxu0 }
 0x103   : > { %v3338_v10 = vpop.permute.xlu1 %820 }
 0x104   : > { %v3364_v22 = vpop.f32.mrf.mxu0 }
 0x105   : > { %942 = vrot.lane.b32.xlu1 %v3220_v44, %s2937_s12  ;;  %478 = vrot.lane.b32.xlu0 %v3244_v50, %s2932_s7 }
 0x106   : > { %v3386_v37 = vpop.f32.mrf.mxu0 }
 0x107   : > { %v3352_v16 = vpop.permute.xlu1 %824 }
 0x108   : > { %5006 = vst [vmem:[#allocation29_spill] sm:$0xff] %v3352_v16 }
 0x109   : > { %555 = vrot.lane.b32.xlu1 %v3244_v50, %s2931_s30  ;;  %632 = vrot.lane.b32.xlu0 %v3244_v50, %s2934_s9 }
 0x10b   : > { %v3360_v20 = vpop.permute.xlu1 %832 }
 0x10c   : > { %5008 = vst [vmem:[#allocation31_spill] sm:$0xff] %v3360_v20 }
 0x10d   : > { %709 = vrot.lane.b32.xlu1 %v3244_v50, %s2933_s8  ;;  %786 = vrot.lane.b32.xlu0 %v3244_v50, %s2936_s11 }
 0x10f   : > { %v3374_v23 = vpop.permute.xlu1 %840 }
 0x110   : > { %5010 = vst [vmem:[#allocation33_spill] sm:$0xff] %v3374_v23  ;;  %v3398_v23 = vpop.permute.xlu0 %844 }
 0x111   : > { %863 = vrot.lane.b32.xlu1 %v3244_v50, %s2935_s10  ;;  %940 = vrot.lane.b32.xlu0 %v3244_v50, %s2937_s12  ;;  %5015 = vst [vmem:[#allocation38_spill] sm:$0xff] %v3398_v23 }
 0x114   : > { %v3382_v25 = vpop.permute.xlu1 %893  ;;  %v3404_v26 = vpop.permute.xlu0 %897 }
 0x115   : > { %561 = vrot.lane.b32.xlu0 %v3272_v56, %s2931_s30  ;;  %484 = vrot.lane.b32.xlu1 %v3272_v56, %s2932_s7  ;;  %5012 = vst [vmem:[#allocation35_spill] sm:$0xff] %v3382_v25 }
 0x118   : > { %v3392_v8 = vpop.permute.xlu1 %901  ;;  %v3412_v18 = vpop.permute.xlu0 %909 }
 0x119   : > { %715 = vrot.lane.b32.xlu0 %v3272_v56, %s2933_s8  ;;  %638 = vrot.lane.b32.xlu1 %v3272_v56, %s2934_s9  ;;  %5014 = vst [vmem:[#allocation37_spill] sm:$0xff] %v3392_v8  ;;  %5017 = vst [vmem:[#allocation40_spill] sm:$0xff] %v3412_v18 }
 0x11c   : > { %v3406_v4 = vpop.permute.xlu1 %905  ;;  %v3424_v23 = vpop.permute.xlu0 %917 }
 0x11d   : > { %869 = vrot.lane.b32.xlu0 %v3272_v56, %s2935_s10  ;;  %792 = vrot.lane.b32.xlu1 %v3272_v56, %s2936_s11  ;;  %5016 = vst [vmem:[#allocation39_spill] sm:$0xff] %v3406_v4  ;;  %5019 = vst [vmem:[#allocation42_spill] sm:$0xff] %v3424_v23  ;;  %v1110_v23 = vld [vmem:[%s4958_s4 + $0x68] sm:$0xff] }
 0x120   : > { %v3414_v3 = vpop.permute.xlu1 %913 }
 0x121   : > { %559 = vrot.lane.b32.xlu1 %v3294_v61, %s2931_s30  ;;  %482 = vrot.lane.b32.xlu0 %v3294_v61, %s2932_s7  ;;  %5018 = vst [vmem:[#allocation41_spill] sm:$0xff] %v3414_v3  ;;  %v1112_v3 = vld [vmem:[%s4958_s4 + $0x78] sm:$0xff] }
 0x122   : > { %2576 = vmatprep.subr.mxu1 %v1112_v3 }
 0x123   : > { %2577 = vmatpush3.msra.mxu1 %v1112_v3  ;;  %v1109_v3 = vld [vmem:[%s4958_s4 + $0x60] sm:$0xff] }
 0x124   : > { %v3426_v47 = vpop.permute.xlu1 %921 }
 0x125   : > { %713 = vrot.lane.b32.xlu1 %v3294_v61, %s2933_s8  ;;  %636 = vrot.lane.b32.xlu0 %v3294_v61, %s2934_s9  ;;  %5020 = vst [vmem:[#allocation43_spill] sm:$0xff] %v3426_v47  ;;  %v1111_v47 = vld [vmem:[%s4958_s4 + $0x70] sm:$0xff] }
 0x126   : > { %2578 = vmatprep.subr.mxu1 %v1111_v47 }
 0x127   : > { %2579 = vmatpush3.msra.mxu1 %v1111_v47  ;;  %v1107_v47 = vld [vmem:[%s4958_s4 + $0x50] sm:$0xff] }
 0x128   : > { %2580 = vmatprep.subr.mxu1 %v1110_v23 }
 0x129   : > { %867 = vrot.lane.b32.xlu1 %v3294_v61, %s2935_s10  ;;  %790 = vrot.lane.b32.xlu0 %v3294_v61, %s2936_s11 }
 0x12a   : > { %2581 = vmatpush3.msra.mxu1 %v1110_v23 }
 0x12b   : > { %2582 = vmatprep.subr.mxu1 %v1109_v3 }
 0x12c   : > { %2583 = vmatpush3.msra.mxu1 %v1109_v3  ;;  %v1106_v3 = vld [vmem:[%s4958_s4 + $0x48] sm:$0xff] }
 0x12d   : > { %565 = vrot.lane.b32.xlu0 %v3316_v2, %s2931_s30  ;;  %488 = vrot.lane.b32.xlu1 %v3316_v2, %s2932_s7 }
 0x12e   : > { %2584 = vmatprep.subr.mxu1 %v1108_v51 }
 0x12f   : > { %2585 = vmatpush3.msra.mxu1 %v1108_v51  ;;  %v1105_v51 = vld [vmem:[%s4958_s4 + $0x40] sm:$0xff] }
 0x130   : > { %2586 = vmatprep.subr.mxu1 %v1107_v47 }
 0x131   : > { %719 = vrot.lane.b32.xlu0 %v3316_v2, %s2933_s8  ;;  %642 = vrot.lane.b32.xlu1 %v3316_v2, %s2934_s9 }
 0x132   : > { %2587 = vmatpush3.msra.mxu1 %v1107_v47  ;;  %v1103_v47 = vld [vmem:[%s4958_s4 + $0x30] sm:$0xff] }
 0x133   : > { %2588 = vmatprep.subr.mxu1 %v1106_v3 }
 0x134   : > { %2589 = vmatpush3.msra.mxu1 %v1106_v3 }
 0x135   : > { %873 = vrot.lane.b32.xlu0 %v3316_v2, %s2935_s10  ;;  %796 = vrot.lane.b32.xlu1 %v3316_v2, %s2936_s11 }
 0x136   : > { %2590 = vmatprep.subr.mxu1 %v1105_v51 }
 0x137   : > { %2591 = vmatpush3.msra.mxu1 %v1105_v51  ;;  %v1101_v51 = vld [vmem:[%s4958_s4 + $0x20] sm:$0xff] }
 0x139   : > { %563 = vrot.lane.b32.xlu1 %v3342_v14, %s2931_s30  ;;  %486 = vrot.lane.b32.xlu0 %v3342_v14, %s2932_s7 }
 0x13d   : > { %717 = vrot.lane.b32.xlu1 %v3342_v14, %s2933_s8  ;;  %640 = vrot.lane.b32.xlu0 %v3342_v14, %s2934_s9 }
 0x141   : > { %871 = vrot.lane.b32.xlu1 %v3342_v14, %s2935_s10  ;;  %794 = vrot.lane.b32.xlu0 %v3342_v14, %s2936_s11 }
 0x145   : > { %569 = vrot.lane.b32.xlu0 %v3364_v22, %s2931_s30  ;;  %492 = vrot.lane.b32.xlu1 %v3364_v22, %s2932_s7 }
 0x149   : > { %723 = vrot.lane.b32.xlu0 %v3364_v22, %s2933_s8  ;;  %646 = vrot.lane.b32.xlu1 %v3364_v22, %s2934_s9 }
 0x14d   : > { %877 = vrot.lane.b32.xlu0 %v3364_v22, %s2935_s10  ;;  %800 = vrot.lane.b32.xlu1 %v3364_v22, %s2936_s11 }
 0x151   : > { %567 = vrot.lane.b32.xlu1 %v3386_v37, %s2931_s30  ;;  %490 = vrot.lane.b32.xlu0 %v3386_v37, %s2932_s7  ;;  %s2954_s30 = smov 120   ;;  %s2955_s7 = smov 119  }
 0x155   : > { %721 = vrot.lane.b32.xlu1 %v3386_v37, %s2933_s8  ;;  %644 = vrot.lane.b32.xlu0 %v3386_v37, %s2934_s9  ;;  %s2963_s9 = smov 115  }
 0x159   : > { %875 = vrot.lane.b32.xlu1 %v3386_v37, %s2935_s10  ;;  %798 = vrot.lane.b32.xlu0 %v3386_v37, %s2936_s11 }
 0x15d   : > { %946 = vrot.lane.b32.xlu1 %v3272_v56, %s2937_s12  ;;  %944 = vrot.lane.b32.xlu0 %v3294_v61, %s2937_s12 }
 0x161   : > { %950 = vrot.lane.b32.xlu1 %v3316_v2, %s2937_s12  ;;  %948 = vrot.lane.b32.xlu0 %v3342_v14, %s2937_s12 }
 0x165   : > { %954 = vrot.lane.b32.xlu1 %v3364_v22, %s2937_s12  ;;  %952 = vrot.lane.b32.xlu0 %v3386_v37, %s2937_s12 }
 0x169   : > { %974 = vperm.xlu1 %2732, %v3092_v11   ;;  %970 = vperm.xlu0 %2731, %v3073_v7  }
 0x16b   : > { %v3433_v18 = vpop.permute.xlu0 %557  ;;  %v3435_v20 = vpop.permute.xlu1 %480 }
 0x16d   : > { %978 = vperm.xlu1 %2732, %v3067_v6   ;;  %982 = vperm.xlu0 %2731, %v3081_v9  }
 0x16f   : > { %v3445_v8 = vpop.permute.xlu0 %711  ;;  %v3447_v12 = vpop.permute.xlu1 %634 }
 0x171   : > { %986 = vperm.xlu1 %2732, %v3112_v15   ;;  %990 = vperm.xlu0 %2731, %v3101_v13  }
 0x173   : > { %v3454_v1 = vpop.permute.xlu0 %865  ;;  %v3456_v57 = vpop.permute.xlu1 %788 }
 0x175   : > { %994 = vperm.xlu1 %2732, %v3132_v19   ;;  %998 = vperm.xlu0 %2731, %v3121_v17  }
 0x177   : > { %v3466_v23 = vpop.permute.xlu1 %942  ;;  %v3468_v4 = vpop.permute.xlu0 %478 }
 0x178   : > { %5021 = vst [vmem:[#allocation44_spill] sm:$0xff] %v3466_v23  ;;  %v3617_v23 = vld [vmem:[#allocation2 + $0x1] ss:$0 sm:$0xff] }
 0x179   : > { %2733 = vset.pattern.permute.xlu1 %v2938_v58  ;;  %2734 = vset.pattern.permute.xlu0 %v2938_v58  ;;  %v1104_v58 = vld [vmem:[%s4958_s4 + $0x38] sm:$0xff] }
 0x17a   : > { %1018 = vperm.xlu1 %2733, %v3073_v7   ;;  %1022 = vperm.xlu0 %2734, %v3092_v11  }
 0x17b   : > { %v3475_v45 = vpop.permute.xlu1 %555  ;;  %v3477_v16 = vpop.permute.xlu0 %632  ;;  %2592 = vmatprep.subr.mxu1 %v1104_v58 }
 0x17c   : > { %2593 = vmatpush3.msra.mxu1 %v1104_v58  ;;  %v1100_v58 = vld [vmem:[%s4958_s4 + $0x18] sm:$0xff] }
 0x17d   : > { %2594 = vmatprep.subr.mxu1 %v1103_v47 }
 0x17e   : > { %1026 = vperm.xlu1 %2733, %v3067_v6   ;;  %1034 = vperm.xlu0 %2734, %v3112_v15  }
 0x17f   : > { %v3487_v54 = vpop.permute.xlu1 %709  ;;  %v3489_v25 = vpop.permute.xlu0 %786  ;;  %2595 = vmatpush3.msra.mxu1 %v1103_v47  ;;  %v1099_v47 = vld [vmem:[%s4958_s4 + $0x10] sm:$0xff] }
 0x180   : > { %2596 = vmatprep.subr.mxu1 %v1102_v55 }
 0x181   : > { %2597 = vmatpush3.msra.mxu1 %v1102_v55 }
 0x182   : > { %1030 = vperm.xlu1 %2733, %v3081_v9   ;;  %1042 = vperm.xlu0 %2734, %v3132_v19  }
 0x183   : > { %v3496_v3 = vpop.permute.xlu1 %863  ;;  %v3498_v62 = vpop.permute.xlu0 %940  ;;  %2598 = vmatprep.subr.mxu1 %v1101_v51 }
 0x184   : > { %5022 = vst [vmem:[#allocation45_spill] sm:$0xff] %v3496_v3  ;;  %5023 = vst [vmem:[#allocation46_spill] sm:$0xff] %v3498_v62  ;;  %2599 = vmatpush3.msra.mxu1 %v1101_v51  ;;  %v1097_v51 = vld [vmem:[%s4958_s4] sm:$0xff] }
 0x185   : > { %2600 = vmatprep.subr.mxu1 %v1100_v58 }
 0x186   : > { %1038 = vperm.xlu1 %2733, %v3101_v13   ;;  %2735 = vset.pattern.permute.xlu0 %v2939_v35 }
 0x187   : > { %v3507_v24 = vpop.permute.xlu0 %561  ;;  %v3509_v0 = vpop.permute.xlu1 %484  ;;  %1219 = vperm.xlu0 %2735, %v3073_v7   ;;  %2601 = vmatpush3.msra.mxu1 %v1100_v58 }
 0x188   : > { %2602 = vmatprep.subr.mxu1 %v1099_v47 }
 0x189   : > { %2603 = vmatpush3.msra.mxu1 %v1099_v47 }
 0x18a   : > { %1046 = vperm.xlu1 %2733, %v3121_v17   ;;  %2604 = vmatprep.subr.mxu1 %v1098_v52 }
 0x18b   : > { %v3519_v48 = vpop.permute.xlu0 %715  ;;  %v3521_v55 = vpop.permute.xlu1 %638  ;;  %1231 = vperm.xlu0 %2735, %v3081_v9   ;;  %2605 = vmatpush3.msra.mxu1 %v1098_v52 }
 0x18c   : > { %5024 = vst [vmem:[#allocation47_spill] sm:$0xff] %v3519_v48  ;;  %2606 = vmatprep.subr.mxu1 %v1097_v51 }
 0x18d   : > { %2607 = vmatpush3.msra.mxu1 %v1097_v51 }
 0x18e   : > { %2736 = vset.pattern.permute.xlu1 %v2939_v35 }
 0x18f   : > { %v3530_v62 = vpop.permute.xlu0 %869  ;;  %v3532_v3 = vpop.permute.xlu1 %792  ;;  %1223 = vperm.xlu1 %2736, %v3092_v11   ;;  %1239 = vperm.xlu0 %2735, %v3101_v13  }
 0x190   : > { %5025 = vst [vmem:[#allocation48_spill] sm:$0xff] %v3530_v62  ;;  %5026 = vst [vmem:[#allocation49_spill] sm:$0xff] %v3532_v3  ;;  %v2940_v3 = vmov 9  }
 0x193   : > { %v3536_v58 = vpop.permute.xlu1 %559  ;;  %v3538_v47 = vpop.permute.xlu0 %482  ;;  %1227 = vperm.xlu1 %2736, %v3067_v6   ;;  %1247 = vperm.xlu0 %2735, %v3121_v17  }
 0x197   : > { %v3542_v35 = vpop.permute.xlu1 %713  ;;  %v3544_v62 = vpop.permute.xlu0 %636  ;;  %1235 = vperm.xlu1 %2736, %v3112_v15   ;;  %2738 = vset.pattern.permute.xlu0 %v2940_v3 }
 0x198   : > { %5027 = vst [vmem:[#allocation50_spill] sm:$0xff] %v3542_v35  ;;  %1279 = vperm.xlu0 %2738, %v3092_v11  }
 0x19b   : > { %v3548_v52 = vpop.permute.xlu1 %867  ;;  %v3550_v51 = vpop.permute.xlu0 %790  ;;  %1243 = vperm.xlu1 %2736, %v3132_v19  }
 0x19c   : > { %5028 = vst [vmem:[#allocation51_spill] sm:$0xff] %v3548_v52  ;;  %5029 = vst [vmem:[#allocation52_spill] sm:$0xff] %v3550_v51  ;;  %1291 = vperm.xlu0 %2738, %v3112_v15   ;;  %v2941_v52 = vmov 10  }
 0x19f   : > { %v3554_v33 = vpop.permute.xlu0 %565  ;;  %v3556_v48 = vpop.permute.xlu1 %488  ;;  %2737 = vset.pattern.permute.xlu1 %v2940_v3 }
 0x1a0   : > { %5030 = vst [vmem:[#allocation53_spill] sm:$0xff] %v3554_v33  ;;  %5031 = vst [vmem:[#allocation54_spill] sm:$0xff] %v3556_v48  ;;  %1275 = vperm.xlu1 %2737, %v3073_v7   ;;  %1299 = vperm.xlu0 %2738, %v3132_v19  }
 0x1a3   : > { %v3560_v35 = vpop.permute.xlu0 %719  ;;  %v3562_v21 = vpop.permute.xlu1 %642 }
 0x1a4   : > { %5032 = vst [vmem:[#allocation55_spill] sm:$0xff] %v3560_v35  ;;  %5033 = vst [vmem:[#allocation56_spill] sm:$0xff] %v3562_v21  ;;  %1283 = vperm.xlu1 %2737, %v3067_v6   ;;  %2739 = vset.pattern.permute.xlu0 %v2941_v52 }
 0x1a5   : > { %1339 = vperm.xlu0 %2739, %v3073_v7  }
 0x1a7   : > { %v3566_v51 = vpop.permute.xlu0 %873  ;;  %v3568_v33 = vpop.permute.xlu1 %796 }
 0x1a8   : > { %5034 = vst [vmem:[#allocation57_spill] sm:$0xff] %v3566_v51  ;;  %5035 = vst [vmem:[#allocation58_spill] sm:$0xff] %v3568_v33  ;;  %1287 = vperm.xlu1 %2737, %v3081_v9  }
 0x1a9   : > { %1351 = vperm.xlu0 %2739, %v3081_v9  }
 0x1ab   : > { %v3572_v3 = vpop.permute.xlu1 %563  ;;  %v3574_v48 = vpop.permute.xlu0 %486 }
 0x1ac   : > { %5036 = vst [vmem:[#allocation59_spill] sm:$0xff] %v3572_v3  ;;  %1295 = vperm.xlu1 %2737, %v3101_v13   ;;  %v2942_v3 = vmov 11  }
 0x1ad   : > { %1359 = vperm.xlu0 %2739, %v3101_v13  }
 0x1af   : > { %v3578_v35 = vpop.permute.xlu1 %717  ;;  %v3580_v21 = vpop.permute.xlu0 %640 }
 0x1b0   : > { %5037 = vst [vmem:[#allocation60_spill] sm:$0xff] %v3578_v35  ;;  %5038 = vst [vmem:[#allocation61_spill] sm:$0xff] %v3580_v21  ;;  %1303 = vperm.xlu1 %2737, %v3121_v17  }
 0x1b1   : > { %1367 = vperm.xlu0 %2739, %v3121_v17  }
 0x1b3   : > { %v3584_v51 = vpop.permute.xlu1 %871  ;;  %v3586_v33 = vpop.permute.xlu0 %794 }
 0x1b4   : > { %5039 = vst [vmem:[#allocation62_spill] sm:$0xff] %v3584_v51  ;;  %5040 = vst [vmem:[#allocation63_spill] sm:$0xff] %v3586_v33  ;;  %2740 = vset.pattern.permute.xlu1 %v2941_v52  ;;  %v3601_v52 = vld [vmem:[#allocation2] ss:$0 sm:$0xff] }
 0x1b5   : > { %1343 = vperm.xlu1 %2740, %v3092_v11   ;;  %2742 = vset.pattern.permute.xlu0 %v2942_v3 }
 0x1b6   : > { %1407 = vperm.xlu0 %2742, %v3092_v11  }
 0x1b7   : > { %v3589_v40 = vpop.permute.xlu0 %569  ;;  %v3591_v63 = vpop.permute.xlu1 %492 }
 0x1b8   : > { %5041 = vst [vmem:[#allocation64_spill] sm:$0xff] %v3589_v40  ;;  %5042 = vst [vmem:[#allocation65_spill] sm:$0xff] %v3591_v63  ;;  %v500_v40 = vmul.f32 %v3601_v52, %v3435_v20  ;;  %v4963_v63 = vmov 12   ;;  %v577_v20 = vmul.f32 %v3617_v23, %v3433_v18 }
 0x1b9   : > { %1347 = vperm.xlu1 %2740, %v3067_v6  }
 0x1ba   : > { %1419 = vperm.xlu0 %2742, %v3112_v15   ;;  %v617_v18 = vmul.f32 %v3258_v53, %v577_v20  ;;  %v502_v20 = vmul.f32 %v3601_v52, %v3509_v0  ;;  %v501_v0 = vmul.f32 %v3601_v52, %v3538_v47 }
 0x1bb   : > { %v3595_v35 = vpop.permute.xlu0 %723  ;;  %v3597_v21 = vpop.permute.xlu1 %646 }
 0x1bc   : > { %5043 = vst [vmem:[#allocation66_spill] sm:$0xff] %v3595_v35  ;;  %5044 = vst [vmem:[#allocation67_spill] sm:$0xff] %v3597_v21 }
 0x1bd   : > { %1355 = vperm.xlu1 %2740, %v3112_v15  }
 0x1be   : > { %1427 = vperm.xlu0 %2742, %v3132_v19  }
 0x1bf   : > { %v3603_v51 = vpop.permute.xlu0 %877  ;;  %v3605_v33 = vpop.permute.xlu1 %800 }
 0x1c0   : > { %5045 = vst [vmem:[#allocation68_spill] sm:$0xff] %v3603_v51  ;;  %5046 = vst [vmem:[#allocation69_spill] sm:$0xff] %v3605_v33  ;;  %v540_v51 = vmul.f32 %v3196_v31, %v500_v40  ;;  %v3621_v33 = vld [vmem:[#allocation2 + $0x2] ss:$0 sm:$0xff]  ;;  %v499_v40 = vmul.f32 %v3601_v52, %v3468_v4 }
 0x1c1   : > { %1363 = vperm.xlu1 %2740, %v3132_v19   ;;  %v654_v31 = vmul.f32 %v3621_v33, %v3447_v12 }
 0x1c2   : > { %2743 = vset.pattern.permute.xlu0 %v4963_v63  ;;  %v539_v53 = vmul.f32 %v3218_v43, %v499_v40 }
 0x1c3   : > { %v3611_v35 = vpop.permute.xlu1 %567  ;;  %v3613_v21 = vpop.permute.xlu0 %490  ;;  %1467 = vperm.xlu0 %2743, %v3073_v7  }
 0x1c4   : > { %5047 = vst [vmem:[#allocation70_spill] sm:$0xff] %v3611_v35  ;;  %5048 = vst [vmem:[#allocation71_spill] sm:$0xff] %v3613_v21  ;;  %v471_v35 = vmul.f32 %v3220_v44, %v3206_v36  ;;  %v3639_v36 = vld [vmem:[#allocation2 + $0x4] ss:$0 sm:$0xff]  ;;  %v576_v44 = vmul.f32 %v3617_v23, %v3475_v45  ;;  %v470_v45 = vmul.f32 %v3202_v34, %v3244_v50  ;;  %v2944_v50 = vmov 13  }
 0x1c5   : > { %2741 = vset.pattern.permute.xlu1 %v2942_v3  ;;  %v731_v4 = vmul.f32 %v3639_v36, %v3445_v8  ;;  %v653_v8 = vmul.f32 %v3621_v33, %v3477_v16  ;;  %v730_v16 = vmul.f32 %v3639_v36, %v3487_v54  ;;  %v541_v54 = vmul.f32 %v3198_v32, %v501_v0  ;;  %v5058_v0 = vld [vmem:[#allocation47_spill] sm:$0xff] }
 0x1c6   : > { %1403 = vperm.xlu1 %2741, %v3073_v7   ;;  %v548_v21 = vadd.f32 %v540_v51, %v471_v35  ;;  %v694_v35 = vmul.f32 %v3242_v49, %v654_v31  ;;  %v616_v49 = vmul.f32 %v3208_v38, %v576_v44  ;;  %v547_v43 = vadd.f32 %v539_v53, %v470_v45 }
 0x1c7   : > { %v3627_v19 = vpop.permute.xlu1 %721  ;;  %v3629_v63 = vpop.permute.xlu0 %644  ;;  %1479 = vperm.xlu0 %2743, %v3081_v9   ;;  %v771_v40 = vmul.f32 %v3330_v5, %v731_v4  ;;  %v473_v44 = vmul.f32 %v3272_v56, %v3190_v28  ;;  %v3699_v28 = vld [vmem:[#allocation2 + $0x7] ss:$0 sm:$0xff]  ;;  %v578_v32 = vmul.f32 %v3617_v23, %v3536_v58  ;;  %v3719_v58 = vmul.f32 %v3364_v22, %v3194_v30 }
 0x1c8   : > { %5049 = vst [vmem:[#allocation72_spill] sm:$0xff] %v3627_v19  ;;  %v625_v3 = vadd.f32 %v617_v18, %v548_v21  ;;  %v3649_v19 = vld [vmem:[#allocation2 + $0x5] ss:$0 sm:$0xff]  ;;  %v542_v18 = vmul.f32 %v3228_v46, %v502_v20  ;;  %v579_v46 = vmul.f32 %v3617_v23, %v3507_v24  ;;  %v3695_v24 = vmul.f32 %v3316_v2, %v3192_v29 }
 0x1c9   : > { %v808_v31 = vmul.f32 %v3649_v19, %v3456_v57  ;;  %v3674_v57 = vld [vmem:[#allocation2 + $0x6] ss:$0 sm:$0xff] }
 0x1ca   : > { %1411 = vperm.xlu1 %2741, %v3067_v6   ;;  %v702_v21 = vadd.f32 %v694_v35, %v625_v3  ;;  %v693_v3 = vmul.f32 %v3288_v60, %v653_v8  ;;  %v472_v35 = vmul.f32 %v3188_v27, %v3294_v61  ;;  %v885_v53 = vmul.f32 %v3674_v57, %v3454_v1  ;;  %v5054_v8 = vld [vmem:[#allocation54_spill] sm:$0xff] }
 0x1cb   : > { %1487 = vperm.xlu0 %2743, %v3101_v13   ;;  %v3644_v51 = vpop.permute.xlu1 %875  ;;  %v3646_v12 = vpop.permute.xlu0 %798  ;;  %v848_v5 = vmul.f32 %v3338_v10, %v808_v31  ;;  %v550_v4 = vadd.f32 %v542_v18, %v473_v44  ;;  %v656_v10 = vmul.f32 %v3621_v33, %v3521_v55  ;;  %v770_v27 = vmul.f32 %v3286_v59, %v730_v16  ;;  %v5055_v22 = vld [vmem:[#allocation71_spill] sm:$0xff]  ;;  %v5059_v18 = vld [vmem:[#allocation9_spill] sm:$0xff] }
 0x1cc   : > { %v779_v47 = vadd.f32 %v771_v40, %v702_v21  ;;  %v807_v61 = vmul.f32 %v3649_v19, %v3489_v25  ;;  %v619_v29 = vmul.f32 %v3216_v42, %v579_v46  ;;  %v503_v1 = vmul.f32 %v3601_v52, %v3574_v48  ;;  %v5051_v25 = vld [vmem:[#allocation44_spill] sm:$0xff]  ;;  %v5061_v46 = vld [vmem:[#allocation46_spill] sm:$0xff] }
 0x1cd   : > { %v549_v59 = vadd.f32 %v541_v54, %v472_v35  ;;  %v655_v55 = vmul.f32 %v3621_v33, %v3544_v62  ;;  %v476_v42 = vmul.f32 %v3214_v41, %v3386_v37  ;;  %v925_v48 = vmul.f32 %v3404_v26, %v885_v53  ;;  %v5053_v62 = vld [vmem:[#allocation11_spill] sm:$0xff]  ;;  %v5056_v37 = vld [vmem:[#allocation8_spill] sm:$0xff] }
 0x1ce   : > { %1415 = vperm.xlu1 %2741, %v3081_v9   ;;  %v856_v60 = vadd.f32 %v848_v5, %v779_v47  ;;  %v3727_v20 = vmul.f32 %v3699_v28, %v5051_v25  ;;  %v627_v45 = vadd.f32 %v619_v29, %v550_v4  ;;  %v504_v30 = vmul.f32 %v3601_v52, %v5054_v8  ;;  %v5060_v47 = vld [vmem:[#allocation45_spill] sm:$0xff]  ;;  %v5062_v35 = vld [vmem:[#allocation16_spill] sm:$0xff]  ;;  %v5065_v29 = vld [vmem:[#allocation50_spill] sm:$0xff] }
 0x1cf   : > { %1495 = vperm.xlu0 %2743, %v3121_v17   ;;  %v3669_v34 = vpop.permute.xlu1 %946  ;;  %v3671_v38 = vpop.permute.xlu0 %944  ;;  %v505_v41 = vmul.f32 %v3601_v52, %v5055_v22  ;;  %v733_v40 = vmul.f32 %v3639_v36, %v5058_v0  ;;  %v884_v5 = vmul.f32 %v3674_v57, %v5060_v47  ;;  %v3746_v44 = vmul.f32 %v3699_v28, %v5061_v46  ;;  %v5063_v4 = vld [vmem:[#allocation49_spill] sm:$0xff]  ;;  %v5068_v25 = vld [vmem:[#allocation23_spill] sm:$0xff]  ;;  %v5071_v22 = vld [vmem:[#allocation52_spill] sm:$0xff] }
 0x1d0   : > { %v3740_v16 = vadd.f32 %v925_v48, %v856_v60  ;;  %v695_v54 = vmul.f32 %v5062_v35, %v655_v55  ;;  %v5067_v55 = vld [vmem:[#allocation10_spill] sm:$0xff]  ;;  %v5076_v46 = vld [vmem:[#allocation65_spill] sm:$0xff] }
 0x1d1   : > { %v545_v48 = vmul.f32 %v5067_v55, %v505_v41  ;;  %v5078_v55 = vld [vmem:[#allocation35_spill] sm:$0xff] }
 0x1d2   : > { %1423 = vperm.xlu1 %2741, %v3101_v13   ;;  %v624_v13 = vadd.f32 %v616_v49, %v547_v43  ;;  %v5052_v49 = vld [vmem:[#allocation22_spill] sm:$0xff]  ;;  %v618_v43 = vmul.f32 %v5053_v62, %v578_v32 }
 0x1d3   : > { %2746 = vset.pattern.permute.xlu0 %v2944_v50  ;;  %v3712_v2 = vpop.permute.xlu0 %948  ;;  %v696_v21 = vmul.f32 %v5052_v49, %v656_v10  ;;  %v810_v10 = vmul.f32 %v3649_v19, %v5063_v4  ;;  %v5069_v49 = vld [vmem:[#allocation48_spill] sm:$0xff] }
 0x1d4   : > { %1535 = vperm.xlu0 %2746, %v3092_v11   ;;  %v701_v56 = vadd.f32 %v693_v3, %v624_v13  ;;  %v543_v13 = vmul.f32 %v5059_v18, %v503_v1  ;;  %v626_v3 = vadd.f32 %v618_v43, %v549_v59  ;;  %v732_v1 = vmul.f32 %v3639_v36, %v5065_v29  ;;  %v5070_v43 = vld [vmem:[#allocation61_spill] sm:$0xff]  ;;  %v5074_v18 = vld [vmem:[#allocation34_spill] sm:$0xff] }
 0x1d5   : > { %v704_v53 = vadd.f32 %v696_v21, %v627_v45  ;;  %v773_v45 = vmul.f32 %v5068_v25, %v733_v40  ;;  %v887_v21 = vmul.f32 %v3674_v57, %v5069_v49  ;;  %v657_v8 = vmul.f32 %v3621_v33, %v5070_v43  ;;  %v5081_v49 = vld [vmem:[#allocation29_spill] sm:$0xff] }
 0x1d6   : > { %1431 = vperm.xlu1 %2741, %v3121_v17   ;;  %v474_v17 = vmul.f32 %v3210_v39, %v3342_v14  ;;  %v3710_v39 = vpop.permute.xlu1 %950  ;;  %v5050_v14 = vmov 12   ;;  %v778_v31 = vadd.f32 %v770_v27, %v701_v56  ;;  %v5064_v56 = vld [vmem:[#allocation59_spill] sm:$0xff]  ;;  %v553_v29 = vadd.f32 %v545_v48, %v476_v42  ;;  %v5085_v48 = vld [vmem:[#allocation60_spill] sm:$0xff] }
 0x1d7   : > { %v580_v27 = vmul.f32 %v3617_v23, %v5064_v56  ;;  %v3756_v60 = vpop.permute.xlu0 %952  ;;  %v781_v40 = vadd.f32 %v773_v45, %v704_v53  ;;  %v5079_v53 = vld [vmem:[#allocation56_spill] sm:$0xff] }
 0x1d8   : > { %1547 = vperm.xlu0 %2746, %v3112_v15   ;;  %v551_v62 = vadd.f32 %v543_v13, %v474_v17  ;;  %v850_v17 = vmul.f32 %v5074_v18, %v810_v10  ;;  %v5075_v13 = vld [vmem:[#allocation18_spill] sm:$0xff]  ;;  %v658_v10 = vmul.f32 %v3621_v33, %v5079_v53 }
 0x1d9   : > { %v620_v47 = vmul.f32 %v5075_v13, %v580_v27  ;;  %v5080_v27 = vld [vmem:[#allocation17_spill] sm:$0xff]  ;;  %v5088_v13 = vld [vmem:[#allocation19_spill] sm:$0xff] }
 0x1da   : > { %2744 = vset.pattern.permute.xlu1 %v5050_v14  ;;  %v3754_v32 = vpop.permute.xlu1 %954  ;;  %v5066_v14 = vld [vmem:[#allocation14_spill] sm:$0xff]  ;;  %v697_v45 = vmul.f32 %v5080_v27, %v657_v8 }
 0x1db   : > { %1471 = vperm.xlu1 %2744, %v3092_v11   ;;  %v5057_v11 = vld [vmem:[#allocation32_spill] sm:$0xff]  ;;  %v544_v59 = vmul.f32 %v5066_v14, %v504_v30  ;;  %v809_v30 = vmul.f32 %v3649_v19, %v5071_v22  ;;  %v659_v14 = vmul.f32 %v3621_v33, %v3629_v63  ;;  %v628_v25 = vadd.f32 %v620_v47, %v551_v62  ;;  %v5084_v63 = vld [vmem:[#allocation39_spill] sm:$0xff] }
 0x1dc   : > { %1555 = vperm.xlu0 %2746, %v5056_v37   ;;  %v847_v26 = vmul.f32 %v5057_v11, %v807_v61  ;;  %v5072_v11 = vld [vmem:[#allocation53_spill] sm:$0xff]  ;;  %v5086_v62 = vld [vmem:[#allocation15_spill] sm:$0xff]  ;;  %v5089_v47 = vld [vmem:[#allocation24_spill] sm:$0xff] }
 0x1dd   : > { %v581_v41 = vmul.f32 %v3617_v23, %v5072_v11  ;;  %v552_v56 = vadd.f32 %v544_v59, %v3695_v24  ;;  %v849_v43 = vmul.f32 %v5081_v49, %v809_v30  ;;  %v5083_v24 = vld [vmem:[#allocation20_spill] sm:$0xff]  ;;  %v927_v59 = vmul.f32 %v5084_v63, %v887_v21  ;;  %v5090_v21 = vld [vmem:[#allocation63_spill] sm:$0xff] }
 0x1de   : > { %v855_v61 = vadd.f32 %v847_v26, %v778_v31  ;;  %v703_v31 = vadd.f32 %v695_v54, %v626_v3  ;;  %v5073_v26 = vld [vmem:[#allocation70_spill] sm:$0xff]  ;;  %v5077_v54 = vld [vmem:[#allocation21_spill] sm:$0xff]  ;;  %v734_v11 = vmul.f32 %v3639_v36, %v5085_v48  ;;  %v3840_v48 = vld [vmem:[%s4956_s2 + $0x38] sm:$0xff] }
 0x1df   : > { %1475 = vperm.xlu1 %2744, %v3067_v6   ;;  %v2945_v6 = vmov 14   ;;  %v582_v0 = vmul.f32 %v3617_v23, %v5073_v26  ;;  %v772_v4 = vmul.f32 %v5077_v54, %v732_v1  ;;  %v5082_v1 = vld [vmem:[#allocation12_spill] sm:$0xff] }
 0x1e0   : > { %2747 = vset.pattern.permute.xlu0 %v2945_v6  ;;  %v621_v22 = vmul.f32 %v5082_v1, %v581_v41 }
 0x1e1   : > { %1595 = vperm.xlu0 %2747, %v3073_v7   ;;  %v506_v7 = vmul.f32 %v3601_v52, %v5076_v46  ;;  %v780_v52 = vadd.f32 %v772_v4, %v703_v31  ;;  %v622_v42 = vmul.f32 %v5083_v24, %v582_v0  ;;  %v699_v0 = vmul.f32 %v5088_v13, %v659_v14  ;;  %v5093_v14 = vld [vmem:[#allocation72_spill] sm:$0xff] }
 0x1e2   : > { %v629_v30 = vadd.f32 %v621_v22, %v552_v56  ;;  %v705_v46 = vadd.f32 %v697_v45, %v628_v25  ;;  %v5092_v56 = vld [vmem:[#allocation55_spill] sm:$0xff] }
 0x1e3   : > { %1483 = vperm.xlu1 %2744, %v3112_v15   ;;  %v924_v15 = vmul.f32 %v5078_v55, %v884_v5  ;;  %v858_v5 = vadd.f32 %v850_v17, %v781_v40  ;;  %v546_v26 = vmul.f32 %v5086_v62, %v506_v7  ;;  %v630_v41 = vadd.f32 %v622_v42, %v553_v29  ;;  %v5091_v17 = vld [vmem:[#allocation64_spill] sm:$0xff]  ;;  %v3810_v7 = vld [vmem:[%s4956_s2 + $0x28] sm:$0xff]  ;;  %v5097_v42 = vld [vmem:[#allocation31_spill] sm:$0xff] }
 0x1e4   : > { %v975_v3 = vpop.permute.xlu1 %974  ;;  %v971_v35 = vpop.permute.xlu0 %970  ;;  %v811_v40 = vmul.f32 %v3649_v19, %v5090_v21  ;;  %v583_v54 = vmul.f32 %v3617_v23, %v5091_v17  ;;  %v857_v4 = vadd.f32 %v849_v43, %v780_v52  ;;  %v735_v29 = vmul.f32 %v3639_v36, %v5092_v56  ;;  %v3827_v52 = vld [vmem:[%s4956_s2] sm:$0xff]  ;;  %v3856_v21 = vld [vmem:[%s4956_s2 + $0x10] sm:$0xff] }
 0x1e5   : > { %1607 = vperm.xlu0 %2747, %v3081_v9   ;;  %v5087_v9 = vld [vmem:[#allocation51_spill] sm:$0xff]  ;;  %v736_v55 = vmul.f32 %v3639_v36, %v5093_v14  ;;  %v932_v53 = vadd.f32 %v924_v15, %v855_v61  ;;  %v554_v23 = vadd.f32 %v546_v26, %v3719_v58  ;;  %v3822_v49 = vadd.f32 %v927_v59, %v858_v5  ;;  %v5095_v43 = vld [vmem:[#allocation37_spill] sm:$0xff] }
 0x1e6   : > { %v886_v31 = vmul.f32 %v3674_v57, %v5087_v9  ;;  %v5096_v15 = vld [vmem:[#allocation67_spill] sm:$0xff]  ;;  %v707_v1 = vadd.f32 %v699_v0, %v630_v41  ;;  %v813_v58 = vmul.f32 %v3649_v19, %v3646_v12  ;;  %v851_v63 = vmul.f32 %v5097_v42, %v811_v40  ;;  %v5098_v59 = vld [vmem:[#allocation13_spill] sm:$0xff]  ;;  %v5101_v9 = vld [vmem:[#allocation30_spill] sm:$0xff] }
 0x1e7   : > { %1491 = vperm.xlu1 %2744, %v5056_v37   ;;  %v698_v37 = vmul.f32 %v5089_v47, %v658_v10  ;;  %v5094_v10 = vld [vmem:[#allocation28_spill] sm:$0xff]  ;;  %v623_v5 = vmul.f32 %v5098_v59, %v583_v54  ;;  %v776_v12 = vmul.f32 %v5101_v9, %v736_v55  ;;  %v1002_v0 = vmul.f32 %v975_v3, %v3727_v20  ;;  %v5103_v40 = vld [vmem:[#allocation26_spill] sm:$0xff]  ;;  %v5105_v3 = vld [vmem:[#allocation57_spill] sm:$0xff] }
 0x1e8   : > { %v979_v8 = vpop.permute.xlu1 %978  ;;  %v3797_v18 = vpop.permute.xlu0 %982  ;;  %v774_v25 = vmul.f32 %v5094_v10, %v734_v11  ;;  %v926_v61 = vmul.f32 %v5095_v43, %v886_v31  ;;  %v5099_v11 = vld [vmem:[#allocation25_spill] sm:$0xff]  ;;  %v1001_v47 = vmul.f32 %v971_v35, %v3746_v44  ;;  %v963_v20 = vmul.f32 %v3699_v28, %v3671_v38  ;;  %v5106_v10 = vld [vmem:[#allocation36_spill] sm:$0xff] }
 0x1e9   : > { %1615 = vperm.xlu0 %2747, %v3810_v7   ;;  %v706_v22 = vadd.f32 %v698_v37, %v629_v30  ;;  %v775_v62 = vmul.f32 %v5099_v11, %v735_v29  ;;  %v5102_v30 = vld [vmem:[#allocation62_spill] sm:$0xff]  ;;  %v631_v13 = vadd.f32 %v623_v5, %v554_v23  ;;  %v784_v54 = vadd.f32 %v776_v12, %v707_v1 }
 0x1ea   : > { %v782_v24 = vadd.f32 %v774_v25, %v705_v46  ;;  %v934_v31 = vadd.f32 %v926_v61, %v857_v4  ;;  %v888_v41 = vmul.f32 %v3674_v57, %v5102_v30  ;;  %v5104_v4 = vld [vmem:[#allocation33_spill] sm:$0xff]  ;;  %v889_v44 = vmul.f32 %v3674_v57, %v5105_v3  ;;  %v5107_v23 = vld [vmem:[#allocation66_spill] sm:$0xff] }
 0x1eb   : > { %2745 = vset.pattern.permute.xlu1 %v2944_v50  ;;  %v660_v50 = vmul.f32 %v3621_v33, %v5096_v15  ;;  %v5100_v33 = vld [vmem:[#allocation58_spill] sm:$0xff]  ;;  %v853_v56 = vmul.f32 %v5104_v4, %v813_v58  ;;  %v783_v35 = vadd.f32 %v775_v62, %v706_v22  ;;  %v965_v14 = vmul.f32 %v3699_v28, %v3712_v2  ;;  %v5108_v2 = vld [vmem:[#allocation40_spill] sm:$0xff]  ;;  %v5110_v62 = vld [vmem:[#allocation27_spill] sm:$0xff] }
 0x1ec   : > { %v987_v27 = vpop.permute.xlu1 %986  ;;  %v3820_v45 = vpop.permute.xlu0 %990  ;;  %1531 = vperm.xlu1 %2745, %v3827_v52   ;;  %v812_v26 = vmul.f32 %v3649_v19, %v5100_v33  ;;  %v859_v29 = vadd.f32 %v851_v63, %v782_v24  ;;  %v2946_v55 = vmov 15   ;;  %v737_v43 = vmul.f32 %v3639_v36, %v5107_v23  ;;  %v3876_v15 = vld [vmem:[%s4956_s2 + $0x8] sm:$0xff]  ;;  %v3884_v36 = vld [vmem:[%s4956_s2 + $0x18] sm:$0xff] }
 0x1ed   : > { %1623 = vperm.xlu0 %2747, %v3840_v48   ;;  %v700_v17 = vmul.f32 %v5103_v40, %v660_v50  ;;  %v890_v61 = vmul.f32 %v3674_v57, %v3644_v51  ;;  %v1003_v38 = vmul.f32 %v979_v8, %v963_v20  ;;  %v928_v50 = vmul.f32 %v5108_v2, %v888_v41  ;;  %v5109_v8 = vld [vmem:[#allocation69_spill] sm:$0xff]  ;;  %v5112_v40 = vld [vmem:[#allocation38_spill] sm:$0xff] }
 0x1ee   : > { %v852_v25 = vmul.f32 %v5106_v10, %v812_v26  ;;  %v1005_v1 = vmul.f32 %v987_v27, %v965_v14  ;;  %v1009_v58 = vadd.f32 %v1001_v47, %v932_v53  ;;  %v1010_v22 = vadd.f32 %v1002_v0, %v3740_v16  ;;  %v5111_v26 = vld [vmem:[#allocation42_spill] sm:$0xff]  ;;  %v5113_v20 = vld [vmem:[#allocation41_spill] sm:$0xff]  ;;  %v3923_v10 = vld [vmem:[%s4956_s2 + $0x30] sm:$0xff] }
 0x1ef   : > { %v708_v51 = vadd.f32 %v700_v17, %v631_v13  ;;  %v814_v24 = vmul.f32 %v3649_v19, %v5109_v8  ;;  %v861_v42 = vadd.f32 %v853_v56, %v784_v54  ;;  %v964_v63 = vmul.f32 %v3699_v28, %v3669_v34  ;;  %v3903_v34 = vld [vmem:[%s4956_s2 + $0x20] sm:$0xff] }
 0x1f0   : > { %v995_v37 = vpop.permute.xlu1 %994  ;;  %v3851_v46 = vpop.permute.xlu0 %998  ;;  %1539 = vperm.xlu1 %2745, %v3856_v21   ;;  %v967_v16 = vmul.f32 %v3699_v28, %v3756_v60  ;;  %v936_v11 = vadd.f32 %v928_v50, %v859_v29  ;;  %v777_v33 = vmul.f32 %v5110_v62, %v737_v43  ;;  %v930_v9 = vmul.f32 %v5111_v26, %v890_v61  ;;  %v5114_v29 = vld [vmem:[#allocation68_spill] sm:$0xff] }
 0x1f1   : > { %2750 = vset.pattern.permute.xlu0 %v2946_v55  ;;  %v1004_v19 = vmul.f32 %v3797_v18, %v964_v63  ;;  %v1011_v12 = vadd.f32 %v1003_v38, %v934_v31  ;;  %v860_v0 = vadd.f32 %v852_v25, %v783_v35  ;;  %v854_v18 = vmul.f32 %v5112_v40, %v814_v24 }
 0x1f2   : > { %1663 = vperm.xlu0 %2750, %v3876_v15   ;;  %v1007_v60 = vmul.f32 %v995_v37, %v967_v16  ;;  %v1013_v13 = vadd.f32 %v1005_v1, %v936_v11  ;;  %v785_v47 = vadd.f32 %v777_v33, %v708_v51  ;;  %v938_v54 = vadd.f32 %v930_v9, %v861_v42  ;;  %v5115_v1 = vld [vmem:[#allocation43_spill] sm:$0xff] }
 0x1f3   : > { %v966_v4 = vmul.f32 %v3699_v28, %v3710_v39  ;;  %v929_v3 = vmul.f32 %v5113_v20, %v889_v44  ;;  %v891_v14 = vmul.f32 %v3674_v57, %v5114_v29  ;;  %v1012_v35 = vadd.f32 %v1004_v19, %v3822_v49 }
 0x1f4   : > { %1543 = vperm.xlu1 %2745, %v3884_v36   ;;  %v1015_v44 = vadd.f32 %v1007_v60, %v938_v54  ;;  %v862_v57 = vadd.f32 %v854_v18, %v785_v47  ;;  %v968_v38 = vmul.f32 %v3699_v28, %v3754_v32  ;;  %v4967_v20 = vmov 18  }
 0x1f5   : > { %v1019_v59 = vpop.permute.xlu1 %1018  ;;  %v1023_v27 = vpop.permute.xlu0 %1022  ;;  %v1006_v39 = vmul.f32 %v3820_v45, %v966_v4  ;;  %v937_v49 = vadd.f32 %v929_v3, %v860_v0  ;;  %v931_v45 = vmul.f32 %v5115_v1, %v891_v14 }
 0x1f6   : > { %v3893_v53 = vadd.f32 %v1019_v59, %v1009_v58  ;;  %v3895_v5 = vadd.f32 %v1023_v27, %v1010_v22  ;;  %1675 = vperm.xlu0 %2750, %v3903_v34   ;;  %v4964_v58 = vmov 16   ;;  %v1008_v22 = vmul.f32 %v3851_v46, %v968_v38 }
 0x1f7   : > { %v1014_v24 = vadd.f32 %v1006_v39, %v937_v49  ;;  %v939_v42 = vadd.f32 %v931_v45, %v862_v57  ;;  %v4965_v39 = vmov 20  }
 0x1f8   : > { %v1065_v30 = vmul.f32 1.442695, %v3893_v53  ;;  %v1067_v41 = vmul.f32 1.442695, %v3895_v5  ;;  %1551 = vperm.xlu1 %2745, %v3810_v7   ;;  %vm1057_vm1 = vcmp.gt.f32.partialorder %v3893_v53, 0.0  ;;  %vm1058_vm2 = vcmp.gt.f32.partialorder %v3895_v5, 0.0 }
 0x1f9   : > { %v1027_v31 = vpop.permute.xlu1 %1026  ;;  %v1035_v17 = vpop.permute.xlu0 %1034  ;;  %v1016_v59 = vadd.f32 %v1008_v22, %v939_v42 }
 0x1fa   : > { %2803 = vpow2.f32 %v1065_v30  ;;  %v3912_v56 = vadd.f32 %v1027_v31, %v1011_v12  ;;  %v3914_v37 = vadd.f32 %v1035_v17, %v1013_v13  ;;  %1683 = vperm.xlu0 %2750, %v3923_v10  }
 0x1fb   : > { %2805 = vpow2.f32 %v1067_v41 }
 0x1fc   : > { %v1069_v25 = vmul.f32 1.442695, %v3912_v56  ;;  %v1073_v23 = vmul.f32 1.442695, %v3914_v37  ;;  %1559 = vperm.xlu1 %2745, %v3840_v48   ;;  %vm1059_vm3 = vcmp.gt.f32.partialorder %v3912_v56, 0.0  ;;  %vm1061_vm5 = vcmp.gt.f32.partialorder %v3914_v37, 0.0 }
 0x1fd   : > { %v1031_v43 = vpop.permute.xlu1 %1030  ;;  %v1043_v61 = vpop.permute.xlu0 %1042 }
 0x1fe   : > { %2807 = vpow2.f32 %v1069_v25  ;;  %v1052_v2 = vadd.f32 %v1031_v43, %v1012_v35  ;;  %v3932_v50 = vadd.f32 %v1043_v61, %v1015_v44  ;;  %2752 = vset.pattern.permute.xlu0 %v4964_v58 }
 0x1ff   : > { %2809 = vpow2.f32 %v1073_v23  ;;  %1747 = vperm.xlu0 %2752, %v3923_v10  }
 0x200   : > { %v1071_v51 = vmul.f32 1.442695, %v1052_v2  ;;  %v1077_v8 = vmul.f32 1.442695, %v3932_v50  ;;  %2748 = vset.pattern.permute.xlu1 %v2945_v6  ;;  %vm1060_vm4 = vcmp.gt.f32.partialorder %v1052_v2, 0.0  ;;  %vm1063_vm7 = vcmp.gt.f32.partialorder %v3932_v50, 0.0 }
 0x201   : > { %v1039_v28 = vpop.permute.xlu1 %1038  ;;  %1599 = vperm.xlu1 %2748, %v3876_v15  }
 0x202   : > { %2811 = vpow2.f32 %v1071_v51  ;;  %v1054_v32 = vadd.f32 %v1039_v28, %v1014_v24  ;;  %v4009_v1 = vpop.permute.xlu0 %1219 }
 0x203   : > { %2813 = vpow2.f32 %v1077_v8  ;;  %1739 = vperm.xlu0 %2752, %v3903_v34   ;;  %5127 = vst [vmem:[#allocation16_spill] sm:$0xff] %v4009_v1 }
 0x204   : > { %v1075_v63 = vmul.f32 1.442695, %v1054_v32  ;;  %vm1062_vm6 = vcmp.gt.f32.partialorder %v1054_v32, 0.0 }
 0x205   : > { %v1047_v46 = vpop.permute.xlu1 %1046  ;;  %1603 = vperm.xlu1 %2748, %v3856_v21  }
 0x206   : > { %2815 = vpow2.f32 %v1075_v63  ;;  %v1056_v27 = vadd.f32 %v1047_v46, %v1016_v59  ;;  %v4013_v22 = vpop.permute.xlu0 %1231 }
 0x207   : > { %v2804_v16 = vpop.eup %2803  ;;  %1735 = vperm.xlu0 %2752, %v3884_v36   ;;  %5129 = vst [vmem:[#allocation59_spill] sm:$0xff] %v4013_v22 }
 0x208   : > { %v2806_v6 = vpop.eup %2805  ;;  %v1079_v11 = vmul.f32 1.442695, %v1056_v27  ;;  %v2491_v62 = vadd.f32 -1.0, %v2804_v16  ;;  %vm1064_vm8 = vcmp.gt.f32.partialorder %v1056_v27, 0.0 }
 0x209   : > { %v2492_v33 = vadd.f32 -1.0, %v2806_v6  ;;  %1611 = vperm.xlu1 %2748, %v3903_v34  }
 0x20a   : > { %2817 = vpow2.f32 %v1079_v11  ;;  %v1089_v26 = vsel %vm1057_vm1, %v3893_v53, %v2491_v62  ;;  %v3970_v3 = vpop.permute.xlu1 %1223  ;;  %v4017_v8 = vpop.permute.xlu0 %1239 }
 0x20b   : > { %v2808_v9 = vpop.eup %2807  ;;  %2608 = vmatprep.mubr.f32.mxu1 %v1089_v26  ;;  %v1090_v19 = vsel %vm1058_vm2, %v3895_v5, %v2492_v33  ;;  %5116 = vst [vmem:[#allocation44_spill] sm:$0xff] %v3970_v3  ;;  %5131 = vst [vmem:[#allocation14_spill] sm:$0xff] %v4017_v8  ;;  %vm2299_vm2 = vcmask 523264  }
 0x20c   : > { %v2810_v12 = vpop.eup %2809  ;;  %2609 = vmatmul.mubr.f32.vlgmr.msra.gmra.mxu1 %v1090_v19  ;;  %v2493_v60 = vadd.f32 -1.0, %v2808_v9 }
 0x20d   : > { %1619 = vperm.xlu1 %2748, %v3923_v10   ;;  %v2495_v13 = vadd.f32 -1.0, %v2810_v12 }
 0x20e   : > { %v1091_v30 = vsel %vm1059_vm3, %v3912_v56, %v2493_v60  ;;  %v3974_v29 = vpop.permute.xlu1 %1227  ;;  %v4021_v28 = vpop.permute.xlu0 %1247  ;;  %vm2387_vm3 = vcmask 7168  }
 0x20f   : > { %v2812_v41 = vpop.eup %2811  ;;  %2611 = vmatprep.mubr.f32.mxu1 %v1091_v30  ;;  %v1093_v40 = vsel %vm1061_vm5, %v3914_v37, %v2495_v13  ;;  %v4969_v37 = vmov 17   ;;  %5117 = vst [vmem:[#allocation22_spill] sm:$0xff] %v3974_v29 }
 0x210   : > { %v2814_v0 = vpop.eup %2813  ;;  %v2494_v53 = vadd.f32 -1.0, %v2812_v41 }
 0x211   : > { %2749 = vset.pattern.permute.xlu1 %v2946_v55  ;;  %v2497_v18 = vadd.f32 -1.0, %v2814_v0 }
 0x212   : > { %v1092_v47 = vsel %vm1060_vm4, %v1052_v2, %v2494_v53  ;;  %1659 = vperm.xlu1 %2749, %v3827_v52   ;;  %v3979_v14 = vpop.permute.xlu1 %1235 }
 0x213   : > { %v2816_v5 = vpop.eup %2815  ;;  %2612 = vmatmul.mubr.f32.gmra.mxu1 %v1092_v47  ;;  %v1095_v55 = vsel %vm1063_vm7, %v3932_v50, %v2497_v18  ;;  %5118 = vst [vmem:[#allocation11_spill] sm:$0xff] %v3979_v14  ;;  %v4025_v42 = vpop.permute.xlu0 %1279 }
 0x214   : > { %2614 = vmatprep.mubr.f32.mxu1 %v1093_v40  ;;  %v2496_v31 = vadd.f32 -1.0, %v2816_v5  ;;  %5133 = vst [vmem:[#allocation23_spill] sm:$0xff] %v4025_v42 }
 0x216   : > { %v1094_v17 = vsel %vm1062_vm6, %v1054_v32, %v2496_v31  ;;  %1667 = vperm.xlu1 %2749, %v3856_v21   ;;  %v3984_v35 = vpop.permute.xlu1 %1243 }
 0x217   : > { %v2818_v54 = vpop.eup %2817  ;;  %2615 = vmatmul.mubr.f32.gmra.mxu1 %v1094_v17  ;;  %v4029_v59 = vpop.permute.xlu0 %1291 }
 0x218   : > { %2617 = vmatprep.mubr.f32.mxu1 %v1095_v55  ;;  %v2498_v4 = vadd.f32 -1.0, %v2818_v54  ;;  %5135 = vst [vmem:[#allocation61_spill] sm:$0xff] %v4029_v59 }
 0x21a   : > { %v1096_v56 = vsel %vm1064_vm8, %v1056_v27, %v2498_v4  ;;  %1671 = vperm.xlu1 %2749, %v3884_v36  }
 0x21b   : > { %2618 = vmatmul.mubr.f32.gmra.mxu1 %v1096_v56  ;;  %v3988_v25 = vpop.permute.xlu1 %1275  ;;  %v4033_v27 = vpop.permute.xlu0 %1299 }
 0x21c   : > { %5119 = vst [vmem:[#allocation54_spill] sm:$0xff] %v3988_v25 }
 0x21e   : > { %1679 = vperm.xlu1 %2749, %v3810_v7  }
 0x21f   : > { %v3991_v23 = vpop.permute.xlu1 %1283 }
 0x220   : > { %5120 = vst [vmem:[#allocation71_spill] sm:$0xff] %v3991_v23  ;;  %v4037_v6 = vpop.permute.xlu0 %1339 }
 0x221   : > { %5138 = vst [vmem:[#allocation70_spill] sm:$0xff] %v4037_v6 }
 0x222   : > { %1687 = vperm.xlu1 %2749, %v3840_v48  }
 0x223   : > { %v3993_v44 = vpop.permute.xlu1 %1287 }
 0x224   : > { %5121 = vst [vmem:[#allocation8_spill] sm:$0xff] %v3993_v44  ;;  %v4041_v62 = vpop.permute.xlu0 %1351 }
 0x225   : > { %5139 = vst [vmem:[#allocation34_spill] sm:$0xff] %v4041_v62 }
 0x226   : > { %2751 = vset.pattern.permute.xlu1 %v4964_v58 }
 0x227   : > { %1751 = vperm.xlu1 %2751, %v3840_v48   ;;  %v3995_v57 = vpop.permute.xlu1 %1295 }
 0x228   : > { %5122 = vst [vmem:[#allocation32_spill] sm:$0xff] %v3995_v57  ;;  %v4045_v26 = vpop.permute.xlu0 %1359 }
 0x229   : > { %5141 = vst [vmem:[#allocation65_spill] sm:$0xff] %v4045_v26 }
 0x22b   : > { %2753 = vset.pattern.permute.xlu1 %v4969_v37  ;;  %v3997_v43 = vpop.permute.xlu1 %1303 }
 0x22c   : > { %1815 = vperm.xlu1 %2753, %v3840_v48   ;;  %v4049_v19 = vpop.permute.xlu0 %1367 }
 0x230   : > { %2754 = vset.pattern.permute.xlu1 %v4964_v58  ;;  %v3999_v61 = vpop.permute.xlu1 %1343 }
 0x231   : > { %1743 = vperm.xlu1 %2754, %v3810_v7   ;;  %5123 = vst [vmem:[#allocation47_spill] sm:$0xff] %v3999_v61  ;;  %v4053_v60 = vpop.permute.xlu0 %1407 }
 0x232   : > { %5144 = vst [vmem:[#allocation56_spill] sm:$0xff] %v4053_v60 }
 0x234   : > { %v4001_v49 = vpop.permute.xlu1 %1347 }
 0x235   : > { %2755 = vset.pattern.permute.xlu1 %v4967_v20  ;;  %5124 = vst [vmem:[#allocation9_spill] sm:$0xff] %v4001_v49  ;;  %v4063_v13 = vpop.permute.xlu0 %1419 }
 0x236   : > { %1879 = vperm.xlu1 %2755, %v3840_v48   ;;  %5146 = vst [vmem:[#allocation29_spill] sm:$0xff] %v4063_v13 }
 0x238   : > { %v4003_v38 = vpop.permute.xlu1 %1355 }
 0x239   : > { %5125 = vst [vmem:[#allocation45_spill] sm:$0xff] %v4003_v38  ;;  %v4071_v53 = vpop.permute.xlu0 %1427 }
 0x23a   : > { %2756 = vset.pattern.permute.xlu1 %v4969_v37 }
 0x23b   : > { %1807 = vperm.xlu1 %2756, %v3810_v7  }
 0x23c   : > { %v4005_v2 = vpop.permute.xlu1 %1363 }
 0x23e   : > { %v4085_v40 = vpop.permute.xlu0 %1467 }
 0x23f   : > { %2757 = vset.pattern.permute.xlu1 %v4967_v20  ;;  %5148 = vst [vmem:[#allocation20_spill] sm:$0xff] %v4085_v40 }
 0x240   : > { %1875 = vperm.xlu1 %2757, %v3923_v10  }
 0x241   : > { %v4007_v50 = vpop.permute.xlu1 %1403 }
 0x242   : > { %5126 = vst [vmem:[#allocation46_spill] sm:$0xff] %v4007_v50  ;;  %v4093_v31 = vpop.permute.xlu0 %1479 }
 0x243   : > { %5150 = vst [vmem:[#allocation60_spill] sm:$0xff] %v4093_v31 }
 0x244   : > { %2758 = vset.pattern.permute.xlu1 %v4969_v37 }
 0x245   : > { %1803 = vperm.xlu1 %2758, %v3903_v34   ;;  %v4011_v45 = vpop.permute.xlu1 %1411 }
 0x246   : > { %5128 = vst [vmem:[#allocation49_spill] sm:$0xff] %v4011_v45  ;;  %v4105_v54 = vpop.permute.xlu0 %1487 }
 0x247   : > { %5152 = vst [vmem:[#allocation51_spill] sm:$0xff] %v4105_v54 }
 0x249   : > { %2759 = vset.pattern.permute.xlu1 %v4967_v20  ;;  %v4015_v51 = vpop.permute.xlu1 %1415 }
 0x24a   : > { %1871 = vperm.xlu1 %2759, %v3810_v7   ;;  %5130 = vst [vmem:[#allocation50_spill] sm:$0xff] %v4015_v51  ;;  %v4115_v56 = vpop.permute.xlu0 %1495 }
 0x24d   : > { %v4019_v24 = vpop.permute.xlu1 %1423 }
 0x24e   : > { %2760 = vset.pattern.permute.xlu1 %v4965_v39  ;;  %5132 = vst [vmem:[#allocation10_spill] sm:$0xff] %v4019_v24 }
 0x24f   : > { %2007 = vperm.xlu1 %2760, %v3840_v48   ;;  %v4127_v39 = vpop.permute.xlu0 %1535 }
 0x250   : > { %5154 = vst [vmem:[#allocation24_spill] sm:$0xff] %v4127_v39 }
 0x251   : > { %v4023_v32 = vpop.permute.xlu1 %1431 }
 0x253   : > { %2761 = vset.pattern.permute.xlu1 %v4969_v37 }
 0x256   : > { %v4027_v63 = vpop.permute.xlu1 %1471 }
 0x257   : > { %5134 = vst [vmem:[#allocation48_spill] sm:$0xff] %v4027_v63 }
 0x25a   : > { %v4031_v46 = vpop.permute.xlu1 %1475 }
 0x25b   : > { %5136 = vst [vmem:[#allocation52_spill] sm:$0xff] %v4031_v46 }
 0x25e   : > { %v4035_v16 = vpop.permute.xlu1 %1483 }
 0x25f   : > { %5137 = vst [vmem:[#allocation53_spill] sm:$0xff] %v4035_v16 }
 0x262   : > { %v4039_v11 = vpop.permute.xlu1 %1491 }
 0x267   : > { %v4043_v33 = vpop.permute.xlu1 %1531 }
 0x268   : > { %5140 = vst [vmem:[#allocation18_spill] sm:$0xff] %v4043_v33  ;;  %v4137_v33 = vpop.permute.xlu0 %1547 }
 0x269   : > { %5156 = vst [vmem:[#allocation64_spill] sm:$0xff] %v4137_v33 }
 0x26b   : > { %v4047_v9 = vpop.permute.xlu1 %1539 }
 0x26c   : > { %5142 = vst [vmem:[#allocation21_spill] sm:$0xff] %v4047_v9  ;;  %v4149_v40 = vpop.permute.xlu0 %1555 }
 0x26f   : > { %v4051_v12 = vpop.permute.xlu1 %1543 }
 0x270   : > { %5143 = vst [vmem:[#allocation35_spill] sm:$0xff] %v4051_v12  ;;  %v4157_v6 = vpop.permute.xlu0 %1595 }
 0x271   : > { %5159 = vst [vmem:[#allocation28_spill] sm:$0xff] %v4157_v6 }
 0x273   : > { %v4055_v30 = vpop.permute.xlu1 %1551 }
 0x274   : > { %5145 = vst [vmem:[#allocation17_spill] sm:$0xff] %v4055_v30 }
 0x277   : > { %v4069_v0 = vpop.permute.xlu1 %1559 }
 0x27c   : > { %v4077_v47 = vpop.permute.xlu1 %1599 }
 0x27d   : > { %5147 = vst [vmem:[#allocation12_spill] sm:$0xff] %v4077_v47 }
 0x280   : > { %v4087_v18 = vpop.permute.xlu1 %1603 }
 0x281   : > { %5149 = vst [vmem:[#allocation39_spill] sm:$0xff] %v4087_v18  ;;  %v4173_v18 = vpop.permute.xlu0 %1607 }
 0x282   : > { %5160 = vst [vmem:[#allocation37_spill] sm:$0xff] %v4173_v18  ;;  %v4973_v18 = vmov 19  }
 0x284   : > { %v4099_v17 = vpop.permute.xlu1 %1611 }
 0x285   : > { %5151 = vst [vmem:[#allocation15_spill] sm:$0xff] %v4099_v17  ;;  %v4181_v9 = vpop.permute.xlu0 %1615 }
 0x286   : > { %5161 = vst [vmem:[#allocation67_spill] sm:$0xff] %v4181_v9 }
 0x288   : > { %v4107_v55 = vpop.permute.xlu1 %1619 }
 0x289   : > { %v4195_v49 = vpop.permute.xlu0 %1623 }
 0x28d   : > { %v4121_v58 = vpop.permute.xlu1 %1659  ;;  %v4203_v23 = vpop.permute.xlu0 %1663 }
 0x28e   : > { %5153 = vst [vmem:[#allocation19_spill] sm:$0xff] %v4121_v58  ;;  %5163 = vst [vmem:[#allocation13_spill] sm:$0xff] %v4203_v23 }
 0x291   : > { %v4129_v20 = vpop.permute.xlu1 %1667  ;;  %v4217_v33 = vpop.permute.xlu0 %1675 }
 0x292   : > { %5155 = vst [vmem:[#allocation63_spill] sm:$0xff] %v4129_v20  ;;  %5165 = vst [vmem:[#allocation58_spill] sm:$0xff] %v4217_v33 }
 0x295   : > { %v4143_v58 = vpop.permute.xlu1 %1671  ;;  %v4225_v39 = vpop.permute.xlu0 %1683 }
 0x296   : > { %5157 = vst [vmem:[#allocation55_spill] sm:$0xff] %v4143_v58 }
 0x299   : > { %v4151_v50 = vpop.permute.xlu1 %1679  ;;  %v4237_v63 = vpop.permute.xlu0 %1747 }
 0x29a   : > { %5158 = vst [vmem:[#allocation72_spill] sm:$0xff] %v4151_v50 }
 0x29d   : > { %v4165_v25 = vpop.permute.xlu1 %1687  ;;  %v4245_v13 = vpop.permute.xlu0 %1739 }
 0x29e   : > { %5168 = vst [vmem:[#allocation26_spill] sm:$0xff] %v4245_v13 }
 0x2a1   : > { %v4259_v61 = vpop.permute.xlu0 %1735 }
 0x2a2   : > { %v4171_v20 = vpop.permute.xlu1 %1751  ;;  %5169 = vst [vmem:[#allocation33_spill] sm:$0xff] %v4259_v61 }
 0x2a7   : > { %v4179_v6 = vpop.permute.xlu1 %1815 }
 0x2ac   : > { %v4193_v45 = vpop.permute.xlu1 %1743 }
 0x2ad   : > { %5162 = vst [vmem:[#allocation31_spill] sm:$0xff] %v4193_v45 }
 0x2b1   : > { %v4201_v29 = vpop.permute.xlu1 %1879 }
 0x2b6   : > { %v4215_v17 = vpop.permute.xlu1 %1807 }
 0x2b7   : > { %5164 = vst [vmem:[#allocation25_spill] sm:$0xff] %v4215_v17 }
 0x2bb   : > { %v4223_v23 = vpop.permute.xlu1 %1875 }
 0x2c0   : > { %v4235_v33 = vpop.permute.xlu1 %1803 }
 0x2c1   : > { %5166 = vst [vmem:[#allocation30_spill] sm:$0xff] %v4235_v33 }
 0x2c5   : > { %v4243_v16 = vpop.permute.xlu1 %1871 }
 0x2c6   : > { %5167 = vst [vmem:[#allocation62_spill] sm:$0xff] %v4243_v16 }
 0x2ca   : > { %v4257_v33 = vpop.permute.xlu1 %2007 }
 0x2cc   : > { %v4057_v41 = vpop.f32.mrf.mxu1 }
 0x2cd   : > { %1324 = vrot.lane.b32.xlu1 %v4057_v41, %s2936_s11  ;;  %1260 = vrot.lane.b32.xlu0 %v4057_v41, %s2933_s8 }
 0x2ce   : > { %v4079_v5 = vpop.f32.mrf.mxu1 }
 0x2d1   : > { %1452 = vrot.lane.b32.xlu1 %v4057_v41, %s2937_s12  ;;  %1388 = vrot.lane.b32.xlu0 %v4057_v41, %s2935_s10 }
 0x2d3   : > { %v4109_v4 = vpop.f32.mrf.mxu1 }
 0x2d5   : > { %1580 = vrot.lane.b32.xlu1 %v4057_v41, %s2951_s27  ;;  %1516 = vrot.lane.b32.xlu0 %v4057_v41, %s2952_s28  ;;  %v4131_v37 = vpop.f32.mrf.mxu1 }
 0x2d7   : > { %v4159_v1 = vpop.f32.mrf.mxu1 }
 0x2d9   : > { %1644 = vrot.lane.b32.xlu0 %v4057_v41, %s2953_s29  ;;  %1258 = vrot.lane.b32.xlu1 %v4079_v5, %s2933_s8  ;;  %v4183_v46 = vpop.f32.mrf.mxu1 }
 0x2db   : > { %v4209_v47 = vpop.f32.mrf.mxu1 }
 0x2dd   : > { %1322 = vrot.lane.b32.xlu0 %v4079_v5, %s2936_s11  ;;  %1386 = vrot.lane.b32.xlu1 %v4079_v5, %s2935_s10  ;;  %v4247_v60 = vpop.f32.mrf.mxu1 }
 0x2e1   : > { %1450 = vrot.lane.b32.xlu0 %v4079_v5, %s2937_s12  ;;  %1514 = vrot.lane.b32.xlu1 %v4079_v5, %s2952_s28 }
 0x2e5   : > { %1578 = vrot.lane.b32.xlu0 %v4079_v5, %s2951_s27  ;;  %1642 = vrot.lane.b32.xlu1 %v4079_v5, %s2953_s29 }
 0x2e9   : > { %1706 = vrot.lane.b32.xlu0 %v4079_v5, %s2954_s30  ;;  %1328 = vrot.lane.b32.xlu1 %v4109_v4, %s2936_s11 }
 0x2ed   : > { %1456 = vrot.lane.b32.xlu1 %v4109_v4, %s2937_s12  ;;  %1264 = vrot.lane.b32.xlu0 %v4109_v4, %s2933_s8 }
 0x2f1   : > { %1584 = vrot.lane.b32.xlu1 %v4109_v4, %s2951_s27  ;;  %1392 = vrot.lane.b32.xlu0 %v4109_v4, %s2935_s10 }
 0x2f5   : > { %1520 = vrot.lane.b32.xlu0 %v4109_v4, %s2952_s28  ;;  %1262 = vrot.lane.b32.xlu1 %v4131_v37, %s2933_s8 }
 0x2f9   : > { %1648 = vrot.lane.b32.xlu0 %v4109_v4, %s2953_s29  ;;  %1390 = vrot.lane.b32.xlu1 %v4131_v37, %s2935_s10 }
 0x2fd   : > { %1326 = vrot.lane.b32.xlu0 %v4131_v37, %s2936_s11  ;;  %1518 = vrot.lane.b32.xlu1 %v4131_v37, %s2952_s28 }
 0x301   : > { %1454 = vrot.lane.b32.xlu0 %v4131_v37, %s2937_s12  ;;  %1646 = vrot.lane.b32.xlu1 %v4131_v37, %s2953_s29 }
 0x305   : > { %1582 = vrot.lane.b32.xlu0 %v4131_v37, %s2951_s27  ;;  %1332 = vrot.lane.b32.xlu1 %v4159_v1, %s2936_s11 }
 0x309   : > { %1460 = vrot.lane.b32.xlu1 %v4159_v1, %s2937_s12  ;;  %1268 = vrot.lane.b32.xlu0 %v4159_v1, %s2933_s8 }
 0x30d   : > { %1588 = vrot.lane.b32.xlu1 %v4159_v1, %s2951_s27  ;;  %1396 = vrot.lane.b32.xlu0 %v4159_v1, %s2935_s10 }
 0x311   : > { %1266 = vrot.lane.b32.xlu1 %v4183_v46, %s2933_s8  ;;  %1524 = vrot.lane.b32.xlu0 %v4159_v1, %s2952_s28 }
 0x315   : > { %1394 = vrot.lane.b32.xlu1 %v4183_v46, %s2935_s10  ;;  %1652 = vrot.lane.b32.xlu0 %v4159_v1, %s2953_s29 }
 0x319   : > { %1522 = vrot.lane.b32.xlu1 %v4183_v46, %s2952_s28  ;;  %1330 = vrot.lane.b32.xlu0 %v4183_v46, %s2936_s11 }
 0x31d   : > { %1650 = vrot.lane.b32.xlu1 %v4183_v46, %s2953_s29  ;;  %1458 = vrot.lane.b32.xlu0 %v4183_v46, %s2937_s12 }
 0x321   : > { %1586 = vrot.lane.b32.xlu0 %v4183_v46, %s2951_s27  ;;  %1336 = vrot.lane.b32.xlu1 %v4209_v47, %s2936_s11 }
 0x325   : > { %1464 = vrot.lane.b32.xlu1 %v4209_v47, %s2937_s12  ;;  %1272 = vrot.lane.b32.xlu0 %v4209_v47, %s2933_s8 }
 0x329   : > { %1592 = vrot.lane.b32.xlu1 %v4209_v47, %s2951_s27  ;;  %1400 = vrot.lane.b32.xlu0 %v4209_v47, %s2935_s10 }
 0x32d   : > { %1720 = vrot.lane.b32.xlu1 %v4209_v47, %s2954_s30  ;;  %1528 = vrot.lane.b32.xlu0 %v4209_v47, %s2952_s28 }
 0x331   : > { %1784 = vrot.lane.b32.xlu1 %v4209_v47, %s2955_s7  ;;  %1656 = vrot.lane.b32.xlu0 %v4209_v47, %s2953_s29 }
 0x335   : > { %1334 = vrot.lane.b32.xlu0 %v4247_v60, %s2936_s11  ;;  %1270 = vrot.lane.b32.xlu1 %v4247_v60, %s2933_s8  ;;  %s2956_s8 = smov 118   ;;  %s2959_s11 = smov 117  }
 0x339   : > { %1462 = vrot.lane.b32.xlu0 %v4247_v60, %s2937_s12  ;;  %1398 = vrot.lane.b32.xlu1 %v4247_v60, %s2935_s10  ;;  %s2957_s10 = smov 116   ;;  %s2961_s12 = smov 114  }
 0x33d   : > { %1590 = vrot.lane.b32.xlu0 %v4247_v60, %s2951_s27  ;;  %1526 = vrot.lane.b32.xlu1 %v4247_v60, %s2952_s28 }
 0x33f   : > { %v4265_v13 = vpop.permute.xlu1 %1324  ;;  %v4267_v38 = vpop.permute.xlu0 %1260 }
 0x340   : > { %5170 = vst [vmem:[#allocation57_spill] sm:$0xff] %v4265_v13  ;;  %5171 = vst [vmem:[#allocation36_spill] sm:$0xff] %v4267_v38  ;;  %v5183_v38 = vmov 18  }
 0x341   : > { %1731 = vperm.xlu0 %2752, %v3856_v21   ;;  %1654 = vrot.lane.b32.xlu1 %v4247_v60, %s2953_s29 }
 0x343   : > { %v4272_v14 = vpop.permute.xlu1 %1452  ;;  %v4274_v59 = vpop.permute.xlu0 %1388 }
 0x344   : > { %5172 = vst [vmem:[#allocation66_spill] sm:$0xff] %v4272_v14  ;;  %5173 = vst [vmem:[#allocation40_spill] sm:$0xff] %v4274_v59 }
 0x345   : > { %1714 = vrot.lane.b32.xlu0 %v4183_v46, %s2954_s30  ;;  %1718 = vrot.lane.b32.xlu1 %v4247_v60, %s2954_s30 }
 0x347   : > { %v4280_v3 = vpop.permute.xlu1 %1580  ;;  %v4282_v13 = vpop.permute.xlu0 %1516 }
 0x348   : > { %5174 = vst [vmem:[#allocation69_spill] sm:$0xff] %v4280_v3  ;;  %5175 = vst [vmem:[#allocation27_spill] sm:$0xff] %v4282_v13 }
 0x349   : > { %1782 = vrot.lane.b32.xlu0 %v4247_v60, %s2955_s7  ;;  %1716 = vrot.lane.b32.xlu1 %v4159_v1, %s2954_s30 }
 0x34b   : > { %v4288_v42 = vpop.permute.xlu1 %1258  ;;  %v4290_v14 = vpop.permute.xlu0 %1644 }
 0x34c   : > { %5176 = vst [vmem:[#allocation42_spill] sm:$0xff] %v4288_v42  ;;  %5177 = vst [vmem:[#allocation38_spill] sm:$0xff] %v4290_v14  ;;  %v5182_v14 = vmov 17  }
 0x34d   : > { %1846 = vrot.lane.b32.xlu0 %v4247_v60, %s2956_s8  ;;  %1848 = vrot.lane.b32.xlu1 %v4209_v47, %s2956_s8 }
 0x34f   : > { %v4296_v3 = vpop.permute.xlu1 %1386  ;;  %v4298_v13 = vpop.permute.xlu0 %1322 }
 0x350   : > { %5178 = vst [vmem:[#allocation41_spill] sm:$0xff] %v4296_v3  ;;  %5179 = vst [vmem:[#allocation68_spill] sm:$0xff] %v4298_v13  ;;  %v5186_v13 = vmov 20  }
 0x351   : > { %1727 = vperm.xlu0 %2752, %v3876_v15   ;;  %1799 = vperm.xlu1 %2761, %v3884_v36  }
 0x353   : > { %v4302_v59 = vpop.permute.xlu1 %1514  ;;  %v4304_v42 = vpop.permute.xlu0 %1450 }
 0x354   : > { %5180 = vst [vmem:[#allocation43_spill] sm:$0xff] %v4302_v59  ;;  %5181 = vst [vmem:[#allocation73_spill] sm:$0xff] %v4304_v42 }
 0x355   : > { %2765 = vset.pattern.permute.xlu0 %v5182_v14  ;;  %2762 = vset.pattern.permute.xlu1 %v5183_v38 }
 0x356   : > { %1811 = vperm.xlu0 %2765, %v3923_v10   ;;  %1867 = vperm.xlu1 %2762, %v3903_v34  }
 0x357   : > { %v4310_v16 = vpop.permute.xlu1 %1642  ;;  %v4312_v3 = vpop.permute.xlu0 %1578 }
 0x358   : > { %5184 = vst [vmem:[#allocation74_spill] sm:$0xff] %v4310_v16  ;;  %5185 = vst [vmem:[#allocation75_spill] sm:$0xff] %v4312_v3  ;;  %v4971_v3 = vmov 21  }
 0x35a   : > { %1844 = vrot.lane.b32.xlu0 %v4159_v1, %s2956_s8  ;;  %2763 = vset.pattern.permute.xlu1 %v5186_v13 }
 0x35b   : > { %v4317_v59 = vpop.permute.xlu1 %1328  ;;  %v4319_v42 = vpop.permute.xlu0 %1706  ;;  %2003 = vperm.xlu1 %2763, %v3923_v10  }
 0x35c   : > { %5187 = vst [vmem:[#allocation76_spill] sm:$0xff] %v4317_v59  ;;  %5188 = vst [vmem:[#allocation77_spill] sm:$0xff] %v4319_v42 }
 0x35e   : > { %1976 = vrot.lane.b32.xlu0 %v4209_v47, %s2957_s10 }
 0x35f   : > { %v4324_v61 = vpop.permute.xlu1 %1456  ;;  %v4326_v16 = vpop.permute.xlu0 %1264  ;;  %2764 = vset.pattern.permute.xlu1 %v4971_v3 }
 0x360   : > { %5189 = vst [vmem:[#allocation78_spill] sm:$0xff] %v4324_v61  ;;  %5190 = vst [vmem:[#allocation79_spill] sm:$0xff] %v4326_v16  ;;  %2071 = vperm.xlu1 %2764, %v3840_v48   ;;  %v4975_v61 = vmov 22  }
 0x362   : > { %1791 = vperm.xlu0 %2765, %v3876_v15  }
 0x363   : > { %v4331_v17 = vpop.permute.xlu1 %1584  ;;  %v4333_v42 = vpop.permute.xlu0 %1392 }
 0x364   : > { %5191 = vst [vmem:[#allocation80_spill] sm:$0xff] %v4331_v17  ;;  %5192 = vst [vmem:[#allocation81_spill] sm:$0xff] %v4333_v42  ;;  %1780 = vrot.lane.b32.xlu1 %v4159_v1, %s2955_s7 }
 0x365   : > { %2766 = vset.pattern.permute.xlu1 %v5182_v14 }
 0x366   : > { %1842 = vrot.lane.b32.xlu0 %v4183_v46, %s2956_s8 }
 0x367   : > { %v4340_v45 = vpop.permute.xlu1 %1262  ;;  %v4342_v58 = vpop.permute.xlu0 %1520 }
 0x368   : > { %5193 = vst [vmem:[#allocation82_spill] sm:$0xff] %v4340_v45  ;;  %5194 = vst [vmem:[#allocation83_spill] sm:$0xff] %v4342_v58  ;;  %1912 = vrot.lane.b32.xlu1 %v4209_v47, %s2959_s11 }
 0x36a   : > { %1974 = vrot.lane.b32.xlu0 %v4247_v60, %s2957_s10 }
 0x36b   : > { %v4348_v3 = vpop.permute.xlu1 %1390  ;;  %v4350_v50 = vpop.permute.xlu0 %1648 }
 0x36c   : > { %5195 = vst [vmem:[#allocation84_spill] sm:$0xff] %v4348_v3  ;;  %5196 = vst [vmem:[#allocation85_spill] sm:$0xff] %v4350_v50  ;;  %1795 = vperm.xlu1 %2766, %v3856_v21   ;;  %v5203_v50 = vmov 21  }
 0x36e   : > { %1787 = vperm.xlu0 %2765, %v3827_v52  }
 0x36f   : > { %v4354_v14 = vpop.permute.xlu1 %1518  ;;  %v4356_v45 = vpop.permute.xlu0 %1326 }
 0x370   : > { %5197 = vst [vmem:[#allocation86_spill] sm:$0xff] %v4354_v14  ;;  %5198 = vst [vmem:[#allocation87_spill] sm:$0xff] %v4356_v45  ;;  %2767 = vset.pattern.permute.xlu1 %v5183_v38 }
 0x371   : > { %1863 = vperm.xlu1 %2767, %v3884_v36  }
 0x372   : > { %2775 = vset.pattern.permute.xlu0 %v4973_v18 }
 0x373   : > { %v4361_v17 = vpop.permute.xlu1 %1646  ;;  %v4363_v3 = vpop.permute.xlu0 %1454  ;;  %1943 = vperm.xlu0 %2775, %v3840_v48  }
 0x374   : > { %5199 = vst [vmem:[#allocation88_spill] sm:$0xff] %v4361_v17  ;;  %5200 = vst [vmem:[#allocation89_spill] sm:$0xff] %v4363_v3 }
 0x375   : > { %2768 = vset.pattern.permute.xlu1 %v5186_v13 }
 0x376   : > { %1999 = vperm.xlu1 %2768, %v3810_v7  }
 0x377   : > { %v4368_v14 = vpop.permute.xlu1 %1332  ;;  %v4370_v45 = vpop.permute.xlu0 %1582  ;;  %1939 = vperm.xlu0 %2775, %v3923_v10  }
 0x378   : > { %5201 = vst [vmem:[#allocation90_spill] sm:$0xff] %v4368_v14  ;;  %5202 = vst [vmem:[#allocation91_spill] sm:$0xff] %v4370_v45  ;;  %v5208_v45 = vmov 16   ;;  %v1256_v14 = vmul.f32 %v3984_v35, %v4247_v60 }
 0x37a   : > { %2769 = vset.pattern.permute.xlu1 %v5203_v50 }
 0x37b   : > { %v4374_v9 = vpop.permute.xlu1 %1460  ;;  %v4376_v18 = vpop.permute.xlu0 %1268  ;;  %1935 = vperm.xlu0 %2775, %v3810_v7   ;;  %2067 = vperm.xlu1 %2769, %v3923_v10  }
 0x37c   : > { %5204 = vst [vmem:[#allocation92_spill] sm:$0xff] %v4374_v9  ;;  %5205 = vst [vmem:[#allocation93_spill] sm:$0xff] %v4376_v18 }
 0x37f   : > { %v4380_v17 = vpop.permute.xlu1 %1588  ;;  %v4382_v3 = vpop.permute.xlu0 %1396  ;;  %1931 = vperm.xlu0 %2775, %v3903_v34   ;;  %1712 = vrot.lane.b32.xlu1 %v4109_v4, %s2954_s30 }
 0x380   : > { %5206 = vst [vmem:[#allocation94_spill] sm:$0xff] %v4380_v17  ;;  %5207 = vst [vmem:[#allocation95_spill] sm:$0xff] %v4382_v3  ;;  %2770 = vset.pattern.permute.xlu1 %v5208_v45 }
 0x383   : > { %v4388_v12 = vpop.permute.xlu1 %1266  ;;  %v4390_v58 = vpop.permute.xlu0 %1524  ;;  %1840 = vrot.lane.b32.xlu0 %v4109_v4, %s2956_s8  ;;  %1778 = vrot.lane.b32.xlu1 %v4183_v46, %s2955_s7 }
 0x384   : > { %5209 = vst [vmem:[#allocation96_spill] sm:$0xff] %v4388_v12  ;;  %5210 = vst [vmem:[#allocation97_spill] sm:$0xff] %v4390_v58 }
 0x387   : > { %v4396_v17 = vpop.permute.xlu1 %1394  ;;  %v4398_v30 = vpop.permute.xlu0 %1652  ;;  %1972 = vrot.lane.b32.xlu0 %v4159_v1, %s2957_s10  ;;  %1910 = vrot.lane.b32.xlu1 %v4247_v60, %s2959_s11 }
 0x388   : > { %5211 = vst [vmem:[#allocation98_spill] sm:$0xff] %v4396_v17  ;;  %5212 = vst [vmem:[#allocation99_spill] sm:$0xff] %v4398_v30 }
 0x38b   : > { %v4404_v45 = vpop.permute.xlu1 %1522  ;;  %v4406_v12 = vpop.permute.xlu0 %1330  ;;  %2104 = vrot.lane.b32.xlu0 %v4209_v47, %s2961_s12  ;;  %1723 = vperm.xlu1 %2770, %v3827_v52  }
 0x38c   : > { %5213 = vst [vmem:[#allocation100_spill] sm:$0xff] %v4404_v45  ;;  %5214 = vst [vmem:[#allocation101_spill] sm:$0xff] %v4406_v12  ;;  %v5218_v12 = vmov 19  }
 0x38f   : > { %v4411_v58 = vpop.permute.xlu1 %1650  ;;  %v4413_v17 = vpop.permute.xlu0 %1458  ;;  %1919 = vperm.xlu0 %2775, %v3876_v15   ;;  %2771 = vset.pattern.permute.xlu1 %v5183_v38 }
 0x390   : > { %5215 = vst [vmem:[#allocation102_spill] sm:$0xff] %v4411_v58  ;;  %5216 = vst [vmem:[#allocation103_spill] sm:$0xff] %v4413_v17  ;;  %1859 = vperm.xlu1 %2771, %v3856_v21  }
 0x393   : > { %v4418_v30 = vpop.permute.xlu0 %1586  ;;  %v4420_v45 = vpop.permute.xlu1 %1336  ;;  %2781 = vset.pattern.permute.xlu0 %v5186_v13 }
 0x394   : > { %5217 = vst [vmem:[#allocation104_spill] sm:$0xff] %v4418_v30  ;;  %1995 = vperm.xlu0 %2781, %v3903_v34   ;;  %2772 = vset.pattern.permute.xlu1 %v5218_v12 }
 0x395   : > { %1927 = vperm.xlu1 %2772, %v3884_v36  }
 0x397   : > { %v4426_v58 = vpop.permute.xlu1 %1464  ;;  %v4428_v17 = vpop.permute.xlu0 %1272 }
 0x398   : > { %1991 = vperm.xlu0 %2781, %v3884_v36  }
 0x399   : > { %2773 = vset.pattern.permute.xlu1 %v5203_v50 }
 0x39a   : > { %2063 = vperm.xlu1 %2773, %v3810_v7  }
 0x39b   : > { %v4433_v30 = vpop.permute.xlu1 %1592  ;;  %v4435_v31 = vpop.permute.xlu0 %1400 }
 0x39c   : > { %1772 = vrot.lane.b32.xlu0 %v4057_v41, %s2955_s7 }
 0x39e   : > { %2774 = vset.pattern.permute.xlu1 %v4975_v61 }
 0x39f   : > { %v4440_v54 = vpop.permute.xlu1 %1720  ;;  %2131 = vperm.xlu1 %2774, %v3923_v10   ;;  %v4443_v9 = vpop.permute.xlu0 %1528 }
 0x3a0   : > { %1904 = vrot.lane.b32.xlu0 %v4109_v4, %s2959_s11 }
 0x3a3   : > { %v4447_v51 = vpop.permute.xlu1 %1784  ;;  %1710 = vrot.lane.b32.xlu1 %v4131_v37, %s2954_s30  ;;  %v4454_v61 = vpop.permute.xlu0 %1656 }
 0x3a4   : > { %2036 = vrot.lane.b32.xlu0 %v4159_v1, %s2963_s9  ;;  %2776 = vset.pattern.permute.xlu1 %v5183_v38 }
 0x3a7   : > { %1776 = vrot.lane.b32.xlu1 %v4109_v4, %s2955_s7  ;;  %v1271_v42 = vpop.permute.xlu1 %1270  ;;  %v1335_v3 = vpop.permute.xlu0 %1334 }
 0x3a8   : > { %2168 = vrot.lane.b32.xlu0 %v4209_v47, %s2964_s13  ;;  %v1312_v26 = vmul.f32 %v4033_v27, %v1271_v42  ;;  %v1376_v16 = vmul.f32 %v4005_v2, %v1335_v3 }
 0x3aa   : > { %v1320_v8 = vadd.f32 %v1312_v26, %v1256_v14  ;;  %v5219_v26 = vmov 22  }
 0x3ab   : > { %1908 = vrot.lane.b32.xlu1 %v4159_v1, %s2959_s11  ;;  %v1399_v24 = vpop.permute.xlu1 %1398  ;;  %v1463_v59 = vpop.permute.xlu0 %1462 }
 0x3ac   : > { %1983 = vperm.xlu0 %2781, %v3876_v15   ;;  %v1384_v57 = vadd.f32 %v1376_v16, %v1320_v8  ;;  %v1440_v42 = vmul.f32 %v4071_v53, %v1399_v24  ;;  %v1257_v16 = vmul.f32 %v4209_v47, %v4021_v28 }
 0x3ae   : > { %v1448_v35 = vadd.f32 %v1440_v42, %v1384_v57 }
 0x3af   : > { %2040 = vrot.lane.b32.xlu1 %v4209_v47, %s2963_s9  ;;  %v1527_v62 = vpop.permute.xlu1 %1526  ;;  %v1591_v44 = vpop.permute.xlu0 %1590 }
 0x3b0   : > { %1836 = vrot.lane.b32.xlu0 %v4057_v41, %s2956_s8  ;;  %v1568_v2 = vmul.f32 %v4149_v40, %v1527_v62 }
 0x3b3   : > { %1855 = vperm.xlu1 %2776, %v3876_v15   ;;  %v1655_v22 = vpop.permute.xlu1 %1654 }
 0x3b4   : > { %1968 = vrot.lane.b32.xlu0 %v4109_v4, %s2957_s10 }
 0x3b7   : > { %2777 = vset.pattern.permute.xlu1 %v5218_v12  ;;  %v1719_v27 = vpop.permute.xlu1 %1718 }
 0x3b8   : > { %2100 = vrot.lane.b32.xlu0 %v4159_v1, %s2961_s12  ;;  %1923 = vperm.xlu1 %2777, %v3856_v21   ;;  %v1504_v21 = vmul.f32 %v4039_v11, %v1463_v59  ;;  %v1313_v59 = vmul.f32 %v3997_v43, %v4428_v17  ;;  %v1760_v43 = vmul.f32 %v4237_v63, %v1719_v27 }
 0x3ba   : > { %v1321_v40 = vadd.f32 %v1313_v59, %v1257_v16  ;;  %v1697_v59 = vmul.f32 %v4165_v25, %v4454_v61 }
 0x3bb   : > { %v4490_v3 = vpop.permute.xlu1 %1716 }
 0x3bc   : > { %1979 = vperm.xlu0 %2781, %v3827_v52   ;;  %v4480_v18 = vpop.permute.xlu0 %1731  ;;  %2778 = vset.pattern.permute.xlu1 %v5203_v50  ;;  %v1512_v52 = vadd.f32 %v1504_v21, %v1448_v35 }
 0x3bd   : > { %2059 = vperm.xlu1 %2778, %v3903_v34  }
 0x3bf   : > { %v4498_v57 = vpop.permute.xlu1 %1848 }
 0x3c0   : > { %2790 = vset.pattern.permute.xlu0 %v5219_v26  ;;  %v4485_v14 = vpop.permute.xlu0 %1714 }
 0x3c1   : > { %2135 = vperm.xlu0 %2790, %v3840_v48   ;;  %2779 = vset.pattern.permute.xlu1 %v5219_v26  ;;  %v1576_v48 = vadd.f32 %v1568_v2, %v1512_v52  ;;  %v4979_v52 = vmov 23  }
 0x3c2   : > { %2127 = vperm.xlu1 %2779, %v3810_v7   ;;  %v1632_v7 = vmul.f32 %v4107_v55, %v1591_v44  ;;  %v1377_v44 = vmul.f32 %v4049_v19, %v4420_v45 }
 0x3c4   : > { %v1783_v8 = vpop.permute.xlu0 %1782  ;;  %v1640_v11 = vadd.f32 %v1632_v7, %v1576_v48  ;;  %v1385_v47 = vadd.f32 %v1377_v44, %v1321_v40  ;;  %v4555_v48 = vld [vmem:[%s4956_s2 + $0x10] sm:$0xff]  ;;  %v1825_v40 = vmul.f32 %v4179_v6, %v4447_v51 }
 0x3c5   : > { %2123 = vperm.xlu0 %2790, %v3903_v34  }
 0x3c6   : > { %1708 = vrot.lane.b32.xlu1 %v4057_v41, %s2954_s30 }
 0x3c7   : > { %2780 = vset.pattern.permute.xlu1 %v5183_v38  ;;  %v1696_v38 = vmul.f32 %v4225_v39, %v1655_v22  ;;  %v1441_v39 = vmul.f32 %v4023_v32, %v4435_v31  ;;  %v4538_v31 = vld [vmem:[%s4956_s2] sm:$0xff] }
 0x3c8   : > { %v1847_v24 = vpop.permute.xlu0 %1846 }
 0x3c9   : > { %1900 = vrot.lane.b32.xlu0 %v4057_v41, %s2959_s11  ;;  %v1704_v28 = vadd.f32 %v1696_v38, %v1640_v11  ;;  %v1888_v63 = vmul.f32 %v4223_v23, %v1847_v24  ;;  %v1449_v19 = vadd.f32 %v1441_v39, %v1385_v47  ;;  %v1505_v23 = vmul.f32 %v4115_v56, %v4426_v58 }
 0x3ca   : > { %1774 = vrot.lane.b32.xlu1 %v4131_v37, %s2955_s7  ;;  %v1633_v56 = vmul.f32 %v4195_v49, %v4433_v30  ;;  %v4578_v49 = vld [vmem:[%s4956_s2 + $0x28] sm:$0xff]  ;;  %v4981_v30 = vmov 25  }
 0x3cb   : > { %v1768_v55 = vadd.f32 %v1760_v43, %v1704_v28  ;;  %v1513_v21 = vadd.f32 %v1505_v23, %v1449_v19  ;;  %v1889_v43 = vmul.f32 %v4201_v29, %v4498_v57 }
 0x3cc   : > { %v4510_v62 = vpop.permute.xlu0 %1727  ;;  %v4512_v53 = vpop.permute.xlu1 %1799 }
 0x3cd   : > { %2032 = vrot.lane.b32.xlu0 %v4109_v4, %s2963_s9 }
 0x3ce   : > { %1906 = vrot.lane.b32.xlu1 %v4183_v46, %s2959_s11 }
 0x3d1   : > { %2164 = vrot.lane.b32.xlu0 %v4159_v1, %s2964_s13  ;;  %v1812_v22 = vpop.permute.xlu0 %1811  ;;  %v4525_v17 = vpop.permute.xlu1 %1867 }
 0x3d2   : > { %v1824_v42 = vmul.f32 %v1812_v22, %v1783_v8  ;;  %2038 = vrot.lane.b32.xlu1 %v4247_v60, %s2963_s9  ;;  %v2844_v8 = vld [vmem:[%s4956_s2 + $0x38] sm:$0xff]  ;;  %v4619_v22 = vld [vmem:[%s4956_s2 + $0x8] sm:$0xff] }
 0x3d4   : > { %v1832_v27 = vadd.f32 %v1824_v42, %v1768_v55 }
 0x3d5   : > { %2111 = vperm.xlu0 %2790, %v3876_v15   ;;  %v4531_v45 = vpop.permute.xlu0 %1844  ;;  %v1569_v15 = vmul.f32 %v4069_v0, %v4443_v9 }
 0x3d6   : > { %v4533_v32 = vadd.f32 %v1888_v63, %v1832_v27  ;;  %1851 = vperm.xlu1 %2780, %v4538_v31   ;;  %v4541_v35 = vpop.permute.xlu1 %2003  ;;  %v4977_v63 = vmov 0.0  }
 0x3d7   : > { %v1577_v9 = vadd.f32 %v1569_v15, %v1513_v21  ;;  %2620 = vmatprep.subr.mxu0 %v4977_v63  ;;  %v5221_v15 = vld [vmem:[#allocation93_spill] sm:$0xff] }
 0x3d9   : > { %2795 = vset.pattern.permute.xlu0 %v4979_v52  ;;  %v1977_v2 = vpop.permute.xlu0 %1976  ;;  %v1641_v24 = vadd.f32 %v1633_v56, %v1577_v9  ;;  %v5223_v56 = vld [vmem:[#allocation79_spill] sm:$0xff] }
 0x3da   : > { %2199 = vperm.xlu0 %2795, %v2844_v8   ;;  %2782 = vset.pattern.permute.xlu1 %v5186_v13  ;;  %v2017_v39 = vmul.f32 %v4257_v33, %v1977_v2  ;;  %v5222_v2 = vld [vmem:[#allocation32_spill] sm:$0xff] }
 0x3db   : > { %1987 = vperm.xlu1 %2782, %v4555_v48   ;;  %v4558_v58 = vpop.permute.xlu1 %2071 }
 0x3dd   : > { %v4560_v0 = vpop.permute.xlu0 %1791 }
 0x3de   : > { %2195 = vperm.xlu0 %2795, %v3923_v10   ;;  %v1705_v10 = vadd.f32 %v1697_v59, %v1641_v24  ;;  %v5224_v24 = vld [vmem:[#allocation8_spill] sm:$0xff] }
 0x3df   : > { %2783 = vset.pattern.permute.xlu1 %v5203_v50  ;;  %v4566_v13 = vpop.permute.xlu1 %1780  ;;  %v1309_v59 = vmul.f32 %v5224_v24, %v5223_v56 }
 0x3e0   : > { %2055 = vperm.xlu1 %2783, %v3884_v36   ;;  %v4584_v36 = vld [vmem:[%s4956_s2 + $0x18] sm:$0xff] }
 0x3e1   : > { %v4571_v7 = vpop.permute.xlu0 %1842 }
 0x3e2   : > { %2187 = vperm.xlu0 %2795, %v3903_v34   ;;  %v1761_v34 = vmul.f32 %v4171_v20, %v4440_v54 }
 0x3e3   : > { %v1913_v16 = vpop.permute.xlu1 %1912 }
 0x3e4   : > { %2784 = vset.pattern.permute.xlu1 %v4979_v52  ;;  %v1769_v61 = vadd.f32 %v1761_v34, %v1705_v10  ;;  %v5248_v52 = vld [vmem:[#allocation72_spill] sm:$0xff] }
 0x3e5   : > { %v1975_v11 = vpop.permute.xlu0 %1974  ;;  %2191 = vperm.xlu1 %2784, %v4578_v49  }
 0x3e6   : > { %2183 = vperm.xlu0 %2795, %v4584_v36   ;;  %v1833_v20 = vadd.f32 %v1825_v40, %v1769_v61  ;;  %v2016_v34 = vmul.f32 %v4541_v35, %v1975_v11  ;;  %v5228_v35 = vld [vmem:[#allocation65_spill] sm:$0xff] }
 0x3e7   : > { %v4589_v25 = vpop.permute.xlu1 %1795 }
 0x3e8   : > { %v1897_v28 = vadd.f32 %v1889_v43, %v1833_v20  ;;  %v5226_v20 = vld [vmem:[#allocation59_spill] sm:$0xff] }
 0x3e9   : > { %2785 = vset.pattern.permute.xlu1 %v4981_v30  ;;  %v4592_v38 = vpop.permute.xlu0 %1787 }
 0x3ea   : > { %5220 = vst [vmem:[#allocation105_spill] sm:$0xff] %v4592_v38  ;;  %1898 = vrot.lane.b32.xlu0 %v4079_v5, %s2959_s11  ;;  %2247 = vperm.xlu1 %2785, %v2844_v8   ;;  %v1311_v8 = vmul.f32 %v5222_v2, %v5221_v15  ;;  %v5252_v38 = vld [vmem:[#allocation25_spill] sm:$0xff] }
 0x3ec   : > { %v4600_v44 = vpop.permute.xlu1 %1863 }
 0x3ee   : > { %2030 = vrot.lane.b32.xlu0 %v4131_v37, %s2963_s9  ;;  %v1944_v54 = vpop.permute.xlu0 %1943  ;;  %1838 = vrot.lane.b32.xlu1 %v4131_v37, %s2956_s8 }
 0x3ef   : > { %v1953_v47 = vmul.f32 %v1944_v54, %v1913_v16  ;;  %2786 = vset.pattern.permute.xlu1 %v5218_v12  ;;  %v5225_v16 = vld [vmem:[#allocation14_spill] sm:$0xff]  ;;  %v1253_v54 = vmul.f32 %v4109_v4, %v5226_v20 }
 0x3f0   : > { %v1255_v10 = vmul.f32 %v4159_v1, %v5225_v16  ;;  %v5233_v16 = vld [vmem:[#allocation81_spill] sm:$0xff] }
 0x3f1   : > { %v1961_v51 = vadd.f32 %v1953_v47, %v1897_v28  ;;  %v4608_v6 = vpop.permute.xlu1 %1999  ;;  %v1317_v1 = vadd.f32 %v1309_v59, %v1253_v54 }
 0x3f2   : > { %2162 = vrot.lane.b32.xlu0 %v4183_v46, %s2964_s13  ;;  %v1940_v29 = vpop.permute.xlu0 %1939  ;;  %1970 = vrot.lane.b32.xlu1 %v4183_v46, %s2957_s10  ;;  %v1319_v28 = vadd.f32 %v1311_v8, %v1255_v10  ;;  %v5231_v8 = vld [vmem:[#allocation95_spill] sm:$0xff]  ;;  %v5234_v10 = vld [vmem:[#allocation50_spill] sm:$0xff] }
 0x3f3   : > { %v4614_v57 = vadd.f32 %v2017_v39, %v1961_v51  ;;  %v5227_v39 = vld [vmem:[#allocation90_spill] sm:$0xff] }
 0x3f4   : > { %v1375_v11 = vmul.f32 %v5228_v35, %v5227_v39  ;;  %v5235_v39 = vld [vmem:[#allocation92_spill] sm:$0xff]  ;;  %v5236_v35 = vld [vmem:[#allocation51_spill] sm:$0xff] }
 0x3f6   : > { %2175 = vperm.xlu0 %2795, %v4619_v22   ;;  %v4622_v33 = vpop.permute.xlu0 %1935  ;;  %2102 = vrot.lane.b32.xlu1 %v4247_v60, %s2961_s12  ;;  %v4626_v12 = vpop.permute.xlu1 %2067  ;;  %v1383_v2 = vadd.f32 %v1375_v11, %v1319_v28  ;;  %v1503_v11 = vmul.f32 %v5236_v35, %v5235_v39 }
 0x3fa   : > { %2028 = vrot.lane.b32.xlu0 %v4057_v41, %s2963_s9  ;;  %v4630_v55 = vpop.permute.xlu0 %1931  ;;  %1915 = vperm.xlu1 %2786, %v4538_v31   ;;  %v4633_v42 = vpop.permute.xlu1 %1712 }
 0x3fb   : > { %2801 = vset.pattern.permute.xlu0 %v4981_v30 }
 0x3fe   : > { %2160 = vrot.lane.b32.xlu0 %v4109_v4, %s2964_s13  ;;  %v4639_v27 = vpop.permute.xlu0 %1840  ;;  %2787 = vset.pattern.permute.xlu1 %v5203_v50  ;;  %v4642_v19 = vpop.permute.xlu1 %1778 }
 0x3ff   : > { %2051 = vperm.xlu1 %2787, %v4555_v48  }
 0x402   : > { %2227 = vperm.xlu0 %2801, %v4555_v48   ;;  %v4646_v23 = vpop.permute.xlu0 %1972  ;;  %v1911_v21 = vpop.permute.xlu1 %1910 }
 0x403   : > { %v1952_v9 = vmul.f32 %v1940_v29, %v1911_v21  ;;  %2788 = vset.pattern.permute.xlu1 %v5219_v26  ;;  %v5229_v29 = vld [vmem:[#allocation76_spill] sm:$0xff]  ;;  %v5230_v21 = vld [vmem:[#allocation34_spill] sm:$0xff] }
 0x404   : > { %2119 = vperm.xlu1 %2788, %v4584_v36   ;;  %v1373_v15 = vmul.f32 %v5230_v21, %v5229_v29 }
 0x405   : > { %v1960_v61 = vadd.f32 %v1952_v9, %v4533_v32  ;;  %v2849_v32 = vld [vmem:[%s4956_s2 + $0x30] sm:$0xff]  ;;  %v5232_v9 = vld [vmem:[#allocation10_spill] sm:$0xff] }
 0x406   : > { %2158 = vrot.lane.b32.xlu0 %v4131_v37, %s2964_s13  ;;  %v4660_v40 = vpop.permute.xlu0 %2104  ;;  %v4662_v43 = vpop.permute.xlu1 %1723  ;;  %v1439_v56 = vmul.f32 %v5232_v9, %v5231_v8  ;;  %v1381_v59 = vadd.f32 %v1373_v15, %v1317_v1  ;;  %v5237_v1 = vld [vmem:[#allocation78_spill] sm:$0xff]  ;;  %v5239_v15 = vld [vmem:[#allocation97_spill] sm:$0xff] }
 0x407   : > { %v4666_v47 = vadd.f32 %v2016_v34, %v1960_v61  ;;  %v1437_v34 = vmul.f32 %v5234_v10, %v5233_v16  ;;  %v5240_v8 = vld [vmem:[#allocation17_spill] sm:$0xff]  ;;  %v5242_v10 = vld [vmem:[#allocation35_spill] sm:$0xff] }
 0x408   : > { %2789 = vset.pattern.permute.xlu1 %v4981_v30  ;;  %v1447_v61 = vadd.f32 %v1439_v56, %v1383_v2  ;;  %v1567_v9 = vmul.f32 %v5240_v8, %v5239_v15  ;;  %v5241_v56 = vld [vmem:[#allocation83_spill] sm:$0xff]  ;;  %v5246_v15 = vld [vmem:[#allocation37_spill] sm:$0xff] }
 0x409   : > { %2243 = vperm.xlu1 %2789, %v2849_v32   ;;  %v1445_v28 = vadd.f32 %v1437_v34, %v1381_v59  ;;  %v5238_v32 = vld [vmem:[#allocation60_spill] sm:$0xff]  ;;  %v1565_v63 = vmul.f32 %v5242_v10, %v5241_v56  ;;  %v5247_v10 = vld [vmem:[#allocation99_spill] sm:$0xff] }
 0x40a   : > { %2090 = vrot.lane.b32.xlu0 %v4079_v5, %s2961_s12  ;;  %v4676_v51 = vpop.permute.xlu0 %1919  ;;  %v1501_v29 = vmul.f32 %v5238_v32, %v5237_v1  ;;  %v1511_v21 = vadd.f32 %v1503_v11, %v1447_v61  ;;  %v5243_v61 = vld [vmem:[#allocation94_spill] sm:$0xff]  ;;  %v5244_v11 = vld [vmem:[#allocation67_spill] sm:$0xff] }
 0x40b   : > { %v4682_v24 = vpop.permute.xlu1 %1859  ;;  %v1631_v32 = vmul.f32 %v5244_v11, %v5243_v61 }
 0x40c   : > { %v1509_v2 = vadd.f32 %v1501_v29, %v1445_v28  ;;  %v1575_v34 = vadd.f32 %v1567_v9, %v1511_v21  ;;  %v5245_v29 = vld [vmem:[#allocation80_spill] sm:$0xff]  ;;  %v1695_v21 = vmul.f32 %v5248_v52, %v5247_v10 }
 0x40d   : > { %1770 = vrot.lane.b32.xlu1 %v4079_v5, %s2955_s7  ;;  %v1629_v8 = vmul.f32 %v5246_v15, %v5245_v29  ;;  %v1823_v29 = vmul.f32 %v5252_v38, %v4566_v13  ;;  %v1885_v38 = vmul.f32 %v4600_v44, %v4639_v27  ;;  %v5259_v44 = vld [vmem:[#allocation96_spill] sm:$0xff]  ;;  %v5260_v27 = vld [vmem:[#allocation61_spill] sm:$0xff] }
 0x40e   : > { %2791 = vset.pattern.permute.xlu1 %v5203_v50  ;;  %2219 = vperm.xlu0 %2801, %v4538_v31   ;;  %v1573_v1 = vadd.f32 %v1565_v63, %v1509_v2  ;;  %v1639_v56 = vadd.f32 %v1631_v32, %v1575_v34  ;;  %v5251_v2 = vld [vmem:[#allocation31_spill] sm:$0xff]  ;;  %v5253_v34 = vld [vmem:[#allocation33_spill] sm:$0xff] }
 0x40f   : > { %v4690_v20 = vpop.permute.xlu0 %1995  ;;  %v1759_v61 = vmul.f32 %v5251_v2, %v4490_v3  ;;  %v1757_v32 = vmul.f32 %v5253_v34, %v4633_v42  ;;  %v5257_v2 = vmov 25  }
 0x410   : > { %v1928_v54 = vpop.permute.xlu1 %1927  ;;  %v1637_v30 = vadd.f32 %v1629_v8, %v1573_v1  ;;  %v1703_v11 = vadd.f32 %v1695_v21, %v1639_v56  ;;  %v5254_v56 = vld [vmem:[#allocation62_spill] sm:$0xff]  ;;  %v5256_v21 = vld [vmem:[#allocation23_spill] sm:$0xff] }
 0x411   : > { %1902 = vrot.lane.b32.xlu1 %v4131_v37, %s2959_s11  ;;  %v1887_v13 = vmul.f32 %v5254_v56, %v4531_v45  ;;  %v5258_v45 = vld [vmem:[#allocation44_spill] sm:$0xff]  ;;  %v5263_v56 = vld [vmem:[#allocation45_spill] sm:$0xff]  ;;  %s2969_s11 = smov 102  }
 0x412   : > { %v1767_v1 = vadd.f32 %v1759_v61, %v1703_v11 }
 0x413   : > { %v4700_v16 = vpop.permute.xlu0 %1991 }
 0x414   : > { %v1831_v3 = vadd.f32 %v1823_v29, %v1767_v1  ;;  %v1310_v1 = vmul.f32 %v5260_v27, %v5259_v44  ;;  %v5269_v27 = vld [vmem:[#allocation29_spill] sm:$0xff] }
 0x415   : > { %2034 = vrot.lane.b32.xlu1 %v4183_v46, %s2963_s9  ;;  %v2064_v59 = vpop.permute.xlu1 %2063 }
 0x416   : > { %v1895_v34 = vadd.f32 %v1887_v13, %v1831_v3 }
 0x417   : > { %v1773_v39 = vpop.permute.xlu0 %1772 }
 0x418   : > { %v4707_v35 = vmul.f32 %v4560_v0, %v1773_v39  ;;  %v5249_v0 = vld [vmem:[#allocation85_spill] sm:$0xff]  ;;  %v5250_v39 = vld [vmem:[#allocation55_spill] sm:$0xff] }
 0x419   : > { %2166 = vrot.lane.b32.xlu1 %v4247_v60, %s2964_s13  ;;  %v1693_v63 = vmul.f32 %v5250_v39, %v5249_v0 }
 0x41a   : > { %v4713_v28 = vpop.permute.xlu1 %2131 }
 0x41b   : > { %v1905_v9 = vpop.permute.xlu0 %1904  ;;  %v1701_v15 = vadd.f32 %v1693_v63, %v1637_v30  ;;  %v5255_v30 = vld [vmem:[#allocation36_spill] sm:$0xff] }
 0x41c   : > { %v1307_v63 = vmul.f32 %v5256_v21, %v5255_v30  ;;  %v1949_v11 = vmul.f32 %v1928_v54, %v1905_v9  ;;  %v5261_v9 = vld [vmem:[#allocation11_spill] sm:$0xff]  ;;  %v5264_v21 = vld [vmem:[#allocation57_spill] sm:$0xff] }
 0x41d   : > { %2047 = vperm.xlu1 %2791, %v4619_v22   ;;  %v1765_v10 = vadd.f32 %v1757_v32, %v1701_v15  ;;  %v1251_v15 = vmul.f32 %v4057_v41, %v5258_v45  ;;  %v1254_v3 = vmul.f32 %v5261_v9, %v4183_v46 }
 0x41e   : > { %v4724_v60 = vpop.permute.xlu1 %1710 }
 0x41f   : > { %v2037_v52 = vpop.permute.xlu0 %2036  ;;  %v1315_v54 = vadd.f32 %v1307_v63, %v1251_v15 }
 0x421   : > { %2792 = vset.pattern.permute.xlu1 %v5219_v26 }
 0x422   : > { %2115 = vperm.xlu1 %2792, %v4555_v48   ;;  %v1777_v8 = vpop.permute.xlu1 %1776 }
 0x423   : > { %v1821_v0 = vmul.f32 %v4512_v53, %v1777_v8  ;;  %v4733_v39 = vpop.permute.xlu0 %2168  ;;  %v2015_v8 = vmul.f32 %v4608_v6, %v4646_v23  ;;  %v1318_v6 = vadd.f32 %v1310_v1, %v1254_v3  ;;  %v5271_v3 = vld [vmem:[#allocation53_spill] sm:$0xff] }
 0x425   : > { %v1829_v42 = vadd.f32 %v1821_v0, %v1765_v10 }
 0x426   : > { %2793 = vset.pattern.permute.xlu1 %v5257_v2  ;;  %v1909_v61 = vpop.permute.xlu1 %1908 }
 0x427   : > { %v1893_v29 = vadd.f32 %v1885_v38, %v1829_v42  ;;  %v1951_v53 = vmul.f32 %v4622_v33, %v1909_v61  ;;  %v4743_v32 = vpop.permute.xlu0 %1983  ;;  %2239 = vperm.xlu1 %2793, %v4578_v49   ;;  %v5262_v33 = vld [vmem:[#allocation101_spill] sm:$0xff]  ;;  %v2079_v49 = vmul.f32 %v2064_v59, %v2037_v52  ;;  %v5265_v61 = vld [vmem:[#allocation47_spill] sm:$0xff]  ;;  %v5268_v52 = vld [vmem:[#allocation98_spill] sm:$0xff] }
 0x428   : > { %v1374_v13 = vmul.f32 %v5263_v56, %v5262_v33  ;;  %v1371_v45 = vmul.f32 %v5265_v61, %v5264_v21  ;;  %v5274_v61 = vld [vmem:[#allocation27_spill] sm:$0xff] }
 0x429   : > { %v1959_v10 = vadd.f32 %v1951_v53, %v1895_v34  ;;  %v1957_v0 = vadd.f32 %v1949_v11, %v1893_v29  ;;  %v5266_v11 = vld [vmem:[#allocation40_spill] sm:$0xff] }
 0x42a   : > { %v2041_v38 = vpop.permute.xlu1 %2040  ;;  %v1379_v63 = vadd.f32 %v1371_v45, %v1315_v54  ;;  %v5267_v29 = vld [vmem:[#allocation56_spill] sm:$0xff]  ;;  %v1382_v53 = vadd.f32 %v1374_v13, %v1318_v6 }
 0x42b   : > { %v2023_v42 = vadd.f32 %v2015_v8, %v1959_v10  ;;  %v1837_v30 = vpop.permute.xlu0 %1836  ;;  %1834 = vrot.lane.b32.xlu1 %v4079_v5, %s2956_s8  ;;  %v1435_v34 = vmul.f32 %v5267_v29, %v5266_v11  ;;  %v1438_v8 = vmul.f32 %v5269_v27, %v5268_v52  ;;  %v5275_v45 = vld [vmem:[#allocation24_spill] sm:$0xff]  ;;  %v5279_v52 = vld [vmem:[#allocation15_spill] sm:$0xff] }
 0x42c   : > { %2794 = vset.pattern.permute.xlu1 %v5203_v50  ;;  %v5270_v50 = vld [vmem:[#allocation103_spill] sm:$0xff]  ;;  %v5277_v11 = vld [vmem:[#allocation64_spill] sm:$0xff] }
 0x42d   : > { %v2087_v23 = vadd.f32 %v2079_v49, %v2023_v42  ;;  %v1443_v1 = vadd.f32 %v1435_v34, %v1379_v63  ;;  %v1446_v9 = vadd.f32 %v1438_v8, %v1382_v53  ;;  %v1502_v54 = vmul.f32 %v5271_v3, %v5270_v50  ;;  %v5272_v49 = vld [vmem:[#allocation66_spill] sm:$0xff]  ;;  %v5273_v42 = vld [vmem:[#allocation48_spill] sm:$0xff] }
 0x42e   : > { %v1856_v15 = vpop.permute.xlu1 %1855  ;;  %v5280_v8 = vmov 23  }
 0x42f   : > { %v1883_v44 = vmul.f32 %v1856_v15, %v1837_v30  ;;  %v1969_v59 = vpop.permute.xlu0 %1968  ;;  %1966 = vrot.lane.b32.xlu1 %v4131_v37, %s2957_s10  ;;  %v1499_v30 = vmul.f32 %v5273_v42, %v5272_v49  ;;  %v1510_v6 = vadd.f32 %v1502_v54, %v1446_v9 }
 0x430   : > { %v2013_v10 = vmul.f32 %v4700_v16, %v1969_v59  ;;  %v1563_v16 = vmul.f32 %v5275_v45, %v5274_v61  ;;  %v5278_v59 = vld [vmem:[#allocation104_spill] sm:$0xff] }
 0x431   : > { %v1507_v21 = vadd.f32 %v1499_v30, %v1443_v1  ;;  %v1630_v27 = vmul.f32 %v5279_v52, %v5278_v59  ;;  %v5282_v1 = vld [vmem:[#allocation12_spill] sm:$0xff] }
 0x432   : > { %v4770_v33 = vadd.f32 %v2013_v10, %v1957_v0  ;;  %v5276_v0 = vld [vmem:[#allocation100_spill] sm:$0xff]  ;;  %v5281_v10 = vld [vmem:[#allocation69_spill] sm:$0xff] }
 0x433   : > { %v2101_v56 = vpop.permute.xlu0 %2100  ;;  %2098 = vrot.lane.b32.xlu1 %v4183_v46, %s2961_s12  ;;  %v4774_v13 = vpop.permute.xlu1 %1923  ;;  %v1566_v29 = vmul.f32 %v5277_v11, %v5276_v0  ;;  %v2081_v46 = vmul.f32 %v4558_v58, %v2041_v38  ;;  %v1571_v53 = vadd.f32 %v1563_v16, %v1507_v21  ;;  %v1627_v9 = vmul.f32 %v5282_v1, %v5281_v10  ;;  %v5283_v58 = vld [vmem:[#allocation38_spill] sm:$0xff]  ;;  %v5284_v38 = vld [vmem:[#allocation13_spill] sm:$0xff] }
 0x434   : > { %v1691_v30 = vmul.f32 %v5284_v38, %v5283_v58  ;;  %v5285_v16 = vld [vmem:[#allocation102_spill] sm:$0xff]  ;;  %v5290_v38 = vld [vmem:[#allocation71_spill] sm:$0xff] }
 0x435   : > { %v1574_v15 = vadd.f32 %v1566_v29, %v1510_v6  ;;  %v2089_v3 = vadd.f32 %v2081_v46, %v4614_v57  ;;  %v1635_v42 = vadd.f32 %v1627_v9, %v1571_v53  ;;  %v5286_v6 = vld [vmem:[#allocation58_spill] sm:$0xff]  ;;  %v2850_v57 = vld [vmem:[%s4956_s2 + $0x20] sm:$0xff] }
 0x436   : > { %v1694_v0 = vmul.f32 %v5286_v6, %v5285_v16  ;;  %v5287_v11 = vld [vmem:[#allocation26_spill] sm:$0xff] }
 0x437   : > { %2043 = vperm.xlu1 %2794, %v4538_v31   ;;  %v4781_v63 = vpop.permute.xlu0 %1979  ;;  %v1638_v21 = vadd.f32 %v1630_v27, %v1574_v15  ;;  %v1758_v29 = vmul.f32 %v5287_v11, %v4485_v14  ;;  %v5288_v53 = vld [vmem:[#allocation30_spill] sm:$0xff]  ;;  %v5295_v11 = vld [vmem:[#allocation49_spill] sm:$0xff] }
 0x438   : > { %v4785_v34 = vpop.permute.xlu1 %2059  ;;  %v1822_v15 = vmul.f32 %v5288_v53, %v4642_v19  ;;  %v5289_v58 = vld [vmem:[#allocation82_spill] sm:$0xff] }
 0x439   : > { %v1702_v46 = vadd.f32 %v1694_v0, %v1638_v21  ;;  %v5294_v0 = vld [vmem:[#allocation84_spill] sm:$0xff] }
 0x43b   : > { %2796 = vset.pattern.permute.xlu1 %v5280_v8  ;;  %v1766_v27 = vadd.f32 %v1758_v29, %v1702_v46  ;;  %v1436_v29 = vmul.f32 %v5295_v11, %v5294_v0 }
 0x43c   : > { %v2136_v50 = vpop.permute.xlu0 %2135  ;;  %2179 = vperm.xlu1 %2796, %v4555_v48  }
 0x43d   : > { %v2145_v54 = vmul.f32 %v2136_v50, %v4660_v40  ;;  %v2128_v49 = vpop.permute.xlu1 %2127  ;;  %v1830_v9 = vadd.f32 %v1822_v15, %v1766_v27  ;;  %v5298_v27 = vld [vmem:[#allocation86_spill] sm:$0xff] }
 0x43e   : > { %v2143_v61 = vmul.f32 %v2128_v49, %v2101_v56  ;;  %v1699_v56 = vadd.f32 %v1691_v30, %v1635_v42  ;;  %v1308_v30 = vmul.f32 %v5290_v38, %v5289_v58  ;;  %v5302_v38 = vld [vmem:[#allocation88_spill] sm:$0xff] }
 0x43f   : > { %v4798_v45 = vadd.f32 %v2145_v54, %v2089_v3  ;;  %v1886_v3 = vmul.f32 %v4525_v17, %v4571_v7  ;;  %v5291_v17 = vld [vmem:[#allocation22_spill] sm:$0xff] }
 0x440   : > { %v2151_v48 = vadd.f32 %v2143_v61, %v2087_v23  ;;  %v4804_v59 = vpop.permute.xlu0 %2123  ;;  %2797 = vset.pattern.permute.xlu1 %v5257_v2  ;;  %v1252_v7 = vmul.f32 %v5291_v17, %v4131_v37 }
 0x441   : > { %2235 = vperm.xlu1 %2797, %v2850_v57   ;;  %v1709_v40 = vpop.permute.xlu1 %1708 }
 0x442   : > { %v1755_v52 = vmul.f32 %v4510_v62, %v1709_v40  ;;  %v1316_v61 = vadd.f32 %v1308_v30, %v1252_v7  ;;  %v5296_v40 = vld [vmem:[#allocation89_spill] sm:$0xff]  ;;  %v5303_v30 = vld [vmem:[#allocation63_spill] sm:$0xff] }
 0x443   : > { %v1692_v17 = vmul.f32 %v5303_v30, %v5302_v38  ;;  %v5313_v30 = vld [vmem:[#allocation20_spill] sm:$0xff] }
 0x444   : > { %v1763_v14 = vadd.f32 %v1755_v52, %v1699_v56  ;;  %v1901_v23 = vpop.permute.xlu0 %1900  ;;  %v5297_v56 = vld [vmem:[#allocation52_spill] sm:$0xff] }
 0x445   : > { %v1947_v10 = vmul.f32 %v4676_v51, %v1901_v23  ;;  %1964 = vrot.lane.b32.xlu1 %v4057_v41, %s2957_s10  ;;  %v1775_v1 = vpop.permute.xlu1 %1774  ;;  %v1894_v51 = vadd.f32 %v1886_v3, %v1830_v9  ;;  %v1500_v46 = vmul.f32 %v5297_v56, %v5296_v40  ;;  %v5300_v3 = vld [vmem:[#allocation91_spill] sm:$0xff]  ;;  %v5306_v40 = vld [vmem:[#allocation54_spill] sm:$0xff] }
 0x446   : > { %v1827_v50 = vadd.f32 %v4707_v35, %v1763_v14  ;;  %2798 = vset.pattern.permute.xlu1 %v5219_v26  ;;  %v5299_v14 = vld [vmem:[#allocation21_spill] sm:$0xff] }
 0x447   : > { %v1564_v23 = vmul.f32 %v5299_v14, %v5298_v27  ;;  %v5309_v27 = vld [vmem:[#allocation70_spill] sm:$0xff] }
 0x448   : > { %v1891_v19 = vadd.f32 %v1883_v44, %v1827_v50  ;;  %v2033_v42 = vpop.permute.xlu0 %2032  ;;  %v5292_v44 = vld [vmem:[#allocation87_spill] sm:$0xff] }
 0x449   : > { %2096 = vrot.lane.b32.xlu1 %v4109_v4, %s2961_s12  ;;  %v1907_v62 = vpop.permute.xlu1 %1906  ;;  %v5293_v4 = vld [vmem:[#allocation9_spill] sm:$0xff] }
 0x44a   : > { %v4822_v54 = vadd.f32 %v1947_v10, %v1891_v19  ;;  %v1950_v49 = vmul.f32 %v4630_v55, %v1907_v62  ;;  %v1372_v21 = vmul.f32 %v5293_v4, %v5292_v44  ;;  %v5301_v19 = vld [vmem:[#allocation39_spill] sm:$0xff]  ;;  %v1820_v44 = vmul.f32 %v4589_v25, %v1775_v1 }
 0x44b   : > { %v1628_v62 = vmul.f32 %v5301_v19, %v5300_v3 }
 0x44c   : > { %v1958_v35 = vadd.f32 %v1950_v49, %v1894_v51  ;;  %v2165_v16 = vpop.permute.xlu0 %2164  ;;  %v1380_v6 = vadd.f32 %v1372_v21, %v1316_v61 }
 0x44d   : > { %2107 = vperm.xlu1 %2798, %v4538_v31   ;;  %v4828_v26 = vpop.permute.xlu1 %2038 }
 0x44e   : > { %v1444_v57 = vadd.f32 %v1436_v29, %v1380_v6  ;;  %v5304_v29 = vmov 0.0   ;;  %v2080_v3 = vmul.f32 %v4626_v12, %v4828_v26  ;;  %v5314_v26 = vld [vmem:[#allocation43_spill] sm:$0xff] }
 0x44f   : > { %2636 = vmatprep.mubr.msk.f32.mxu0 %vm2968_vm10, %v5304_v29 }
 0x450   : > { %v4846_v15 = vpop.permute.xlu0 %2111  ;;  %v1508_v52 = vadd.f32 %v1500_v46, %v1444_v57  ;;  %v5307_v46 = vld [vmem:[#allocation16_spill] sm:$0xff] }
 0x451   : > { %2799 = vset.pattern.permute.xlu1 %v5257_v2  ;;  %v4835_v55 = vpop.permute.xlu1 %1851 }
 0x452   : > { %2231 = vperm.xlu1 %2799, %v4584_v36   ;;  %v1572_v50 = vadd.f32 %v1564_v23, %v1508_v52  ;;  %v1250_v52 = vmul.f32 %v5307_v46, %v4079_v5 }
 0x455   : > { %v2200_v9 = vpop.permute.xlu0 %2199 }
 0x456   : > { %1962 = vrot.lane.b32.xlu1 %v4079_v5, %s2957_s10  ;;  %v4844_v53 = vpop.permute.xlu1 %1987 }
 0x457   : > { %2800 = vset.pattern.permute.xlu1 %v5280_v8  ;;  %v2209_v8 = vmul.f32 %v2200_v9, %v4733_v39 }
 0x45a   : > { %2094 = vrot.lane.b32.xlu1 %v4131_v37, %s2961_s12  ;;  %v1636_v37 = vadd.f32 %v1628_v62, %v1572_v50 }
 0x45b   : > { %v2056_v36 = vpop.permute.xlu1 %2055 }
 0x45c   : > { %v2077_v10 = vmul.f32 %v2056_v36, %v2033_v42  ;;  %v1700_v39 = vadd.f32 %v1692_v17, %v1636_v37  ;;  %v5308_v36 = vld [vmem:[#allocation68_spill] sm:$0xff] }
 0x45d   : > { %v1370_v14 = vmul.f32 %v5309_v27, %v5308_v36 }
 0x45e   : > { %v4856_v51 = vadd.f32 %v2077_v10, %v4770_v33  ;;  %2171 = vperm.xlu1 %2800, %v4538_v31   ;;  %v1756_v33 = vmul.f32 %v4480_v18, %v4724_v60  ;;  %v2217_v31 = vadd.f32 %v2209_v8, %v4798_v45  ;;  %v5310_v8 = vld [vmem:[#allocation41_spill] sm:$0xff] }
 0x460   : > { %v2192_v49 = vpop.permute.xlu1 %2191  ;;  %v1764_v21 = vadd.f32 %v1756_v33, %v1700_v39  ;;  %v2088_v33 = vadd.f32 %v2080_v3, %v4666_v47 }
 0x461   : > { %v2207_v58 = vmul.f32 %v2192_v49, %v2165_v16  ;;  %v5311_v49 = vld [vmem:[#allocation46_spill] sm:$0xff] }
 0x462   : > { %2026 = vrot.lane.b32.xlu1 %v4079_v5, %s2963_s9  ;;  %v1828_v61 = vadd.f32 %v1820_v44, %v1764_v21  ;;  %v5315_v21 = vld [vmem:[#allocation18_spill] sm:$0xff] }
 0x463   : > { %2802 = vset.pattern.permute.xlu1 %v5257_v2  ;;  %v4863_v42 = vadd.f32 %v2207_v58, %v2151_v48  ;;  %v1434_v58 = vmul.f32 %v5311_v49, %v5310_v8 }
 0x465   : > { %v2248_v7 = vpop.permute.xlu1 %2247 }
 0x466   : > { %v2257_v4 = vadd.f32 %v2248_v7, %v2217_v31  ;;  %2092 = vrot.lane.b32.xlu1 %v4057_v41, %s2961_s12  ;;  %v2196_v31 = vpop.permute.xlu0 %2195  ;;  %s2475_s12 = sshll.u32 %s5325_s22, 3 }
 0x467   : > { %s279_s14 = scalar_lea.vmem %s4960_s6, %s2475_s12 }
 0x468   : > { %v2280_v2 = vmul.f32 1.442695, %v2257_v4  ;;  %vm2265_vm9 = vcmp.gt.f32.partialorder %v2257_v4, 0.0 }
 0x469   : > { %v1839_v48 = vpop.permute.xlu1 %1838 }
 0x46a   : > { %2819 = vpow2.f32 %v2280_v2  ;;  %v1884_v16 = vmul.f32 %v4682_v24, %v1839_v48  ;;  %2223 = vperm.xlu1 %2802, %v4619_v22   ;;  %v1562_v2 = vmul.f32 %v5315_v21, %v5314_v26 }
 0x46c   : > { %v1892_v18 = vadd.f32 %v1884_v16, %v1828_v61  ;;  %v2188_v61 = vpop.permute.xlu0 %2187  ;;  %v5316_v16 = vld [vmem:[#allocation75_spill] sm:$0xff] }
 0x46d   : > { %v1971_v60 = vpop.permute.xlu1 %1970 }
 0x46e   : > { %v2014_v45 = vmul.f32 %v4690_v20, %v1971_v60  ;;  %2156 = vrot.lane.b32.xlu1 %v4057_v41, %s2964_s13 }
 0x470   : > { %v4878_v25 = vadd.f32 %v2014_v45, %v1958_v35  ;;  %v5305_v35 = vld [vmem:[#allocation42_spill] sm:$0xff] }
 0x471   : > { %v2103_v1 = vpop.permute.xlu1 %2102  ;;  %v1306_v56 = vmul.f32 %v5306_v40, %v5305_v35  ;;  %v5320_v40 = vld [vmem:[#allocation77_spill] sm:$0xff] }
 0x472   : > { %2154 = vrot.lane.b32.xlu1 %v4079_v5, %s2964_s13  ;;  %v2144_v37 = vmul.f32 %v4713_v28, %v2103_v1  ;;  %v5312_v5 = vld [vmem:[#allocation73_spill] sm:$0xff] }
 0x473   : > { %v1314_v10 = vadd.f32 %v1306_v56, %v1250_v52  ;;  %v1498_v17 = vmul.f32 %v5313_v30, %v5312_v5  ;;  %v1754_v56 = vmul.f32 %v4662_v43, %v5320_v40 }
 0x475   : > { %v1916_v6 = vpop.permute.xlu1 %1915  ;;  %v1378_v50 = vadd.f32 %v1370_v14, %v1314_v10 }
 0x477   : > { %v2820_v0 = vpop.eup %2819  ;;  %v1442_v38 = vadd.f32 %v1434_v58, %v1378_v50 }
 0x478   : > { %v2506_v11 = vadd.f32 -1.0, %v2820_v0  ;;  %v2184_v0 = vpop.permute.xlu0 %2183 }
 0x479   : > { %v1506_v44 = vadd.f32 %v1498_v17, %v1442_v38 }
 0x47a   : > { %v4882_v24 = vpop.permute.xlu1 %2051  ;;  %v2297_v22 = vsel %vm2265_vm9, %v2257_v4, %v2506_v11  ;;  %v5318_v11 = vld [vmem:[#allocation74_spill] sm:$0xff] }
 0x47b   : > { %2621 = vmatpush3.msra.mxu0 %v2297_v22  ;;  %v1570_v28 = vadd.f32 %v1562_v2, %v1506_v44  ;;  %v5319_v22 = vld [vmem:[#allocation19_spill] sm:$0xff] }
 0x47c   : > { %2622 = vmatprep.subr.mxu0 %v5304_v29  ;;  %v1690_v35 = vmul.f32 %v5319_v22, %v5318_v11  ;;  %v1899_v10 = vpop.permute.xlu0 %1898 }
 0x47d   : > { %v1946_v8 = vmul.f32 %v1916_v6, %v1899_v10 }
 0x47f   : > { %v4885_v20 = vpop.permute.xlu1 %2119 }
 0x484   : > { %v2244_v57 = vpop.permute.xlu1 %2243 }
 0x488   : > { %v1771_v41 = vpop.permute.xlu1 %1770 }
 0x48c   : > { %v1903_v23 = vpop.permute.xlu1 %1902 }
 0x48d   : > { %v1948_v9 = vmul.f32 %v4774_v13, %v1903_v23  ;;  %v2152_v13 = vadd.f32 %v2144_v37, %v2088_v33 }
 0x48f   : > { %v1956_v19 = vadd.f32 %v1948_v9, %v1892_v18  ;;  %v5317_v18 = vld [vmem:[#allocation28_spill] sm:$0xff] }
 0x490   : > { %v2035_v62 = vpop.permute.xlu1 %2034  ;;  %v1626_v60 = vmul.f32 %v5317_v18, %v5316_v16 }
 0x491   : > { %v2078_v6 = vmul.f32 %v4785_v34, %v2035_v62 }
 0x492   : > { %v1634_v1 = vadd.f32 %v1626_v60, %v1570_v28 }
 0x494   : > { %v2167_v7 = vpop.permute.xlu1 %2166  ;;  %v1698_v52 = vadd.f32 %v1690_v35, %v1634_v1 }
 0x495   : > { %v2208_v39 = vmul.f32 %v2196_v31, %v2167_v7 }
 0x496   : > { %v1762_v14 = vadd.f32 %v1754_v56, %v1698_v52 }
 0x497   : > { %v2216_v4 = vadd.f32 %v2208_v39, %v2152_v13  ;;  %v2086_v39 = vadd.f32 %v2078_v6, %v4878_v25 }
 0x498   : > { %v4903_v12 = vpop.permute.xlu1 %2047 }
 0x499   : > { %v2256_v48 = vadd.f32 %v2244_v57, %v2216_v4  ;;  %v5321_v57 = vld [vmem:[#allocation105_spill] sm:$0xff] }
 0x49a   : > { %v1818_v36 = vmul.f32 %v5321_v57, %v1771_v41  ;;  %v2031_v41 = vpop.permute.xlu0 %2030 }
 0x49b   : > { %v2278_v45 = vmul.f32 1.442695, %v2256_v48  ;;  %vm2264_vm11 = vcmp.gt.f32.partialorder %v2256_v48, 0.0 }
 0x49c   : > { %v1826_v50 = vadd.f32 %v1818_v36, %v1762_v14 }
 0x49d   : > { %2821 = vpow2.f32 %v2278_v45  ;;  %v4909_v47 = vpop.permute.xlu1 %2115 }
 0x49e   : > { %v2163_v13 = vpop.permute.xlu0 %2162 }
 0x49f   : > { %v2206_v26 = vmul.f32 %v2188_v61, %v2163_v13 }
 0x4a2   : > { %v2240_v46 = vpop.permute.xlu1 %2239  ;;  %v2176_v21 = vpop.permute.xlu0 %2175 }
 0x4a3   : > { %v2255_v27 = vadd.f32 %v2240_v46, %v4863_v42  ;;  %v2076_v42 = vmul.f32 %v4882_v24, %v2031_v41 }
 0x4a5   : > { %v2276_v23 = vmul.f32 1.442695, %v2255_v27  ;;  %vm2263_vm12 = vcmp.gt.f32.partialorder %v2255_v27, 0.0 }
 0x4a6   : > { %v1835_v9 = vpop.permute.xlu1 %1834 }
 0x4a7   : > { %2823 = vpow2.f32 %v2276_v23  ;;  %v1882_v3 = vmul.f32 %v4835_v55, %v1835_v9 }
 0x4a9   : > { %v1890_v49 = vadd.f32 %v1882_v3, %v1826_v50 }
 0x4aa   : > { %v2822_v58 = vpop.eup %2821  ;;  %v1967_v37 = vpop.permute.xlu1 %1966 }
 0x4ab   : > { %v2012_v43 = vmul.f32 %v4844_v53, %v1967_v37  ;;  %v2505_v38 = vadd.f32 -1.0, %v2822_v58  ;;  %v4919_v5 = vadd.f32 %v1946_v8, %v1890_v49 }
 0x4ad   : > { %v2020_v30 = vadd.f32 %v2012_v43, %v1956_v19  ;;  %v2296_v17 = vsel %vm2264_vm11, %v2256_v48, %v2505_v38 }
 0x4ae   : > { %v2099_v33 = vpop.permute.xlu1 %2098  ;;  %2623 = vmatpush3.msra.mxu0 %v2296_v17 }
 0x4af   : > { %2624 = vmatprep.subr.mxu0 %v5304_v29  ;;  %v2084_v55 = vadd.f32 %v2076_v42, %v2020_v30  ;;  %v2142_v53 = vmul.f32 %v4804_v59, %v2099_v33  ;;  %v2029_v59 = vpop.permute.xlu0 %2028 }
 0x4b0   : > { %v2075_v25 = vmul.f32 %v4903_v12, %v2029_v59  ;;  %v2298_v59 = vld [vmem:[#allocation4] sm:$0xff] }
 0x4b1   : > { %v2150_v24 = vadd.f32 %v2142_v53, %v2086_v39 }
 0x4b2   : > { %v4924_v31 = vpop.permute.xlu1 %2043 }
 0x4b3   : > { %v2214_v2 = vadd.f32 %v2206_v26, %v2150_v24  ;;  %v2161_v1 = vpop.permute.xlu0 %2160 }
 0x4b4   : > { %v2824_v7 = vpop.eup %2823  ;;  %v2205_v35 = vmul.f32 %v2184_v0, %v2161_v1 }
 0x4b5   : > { %v2504_v44 = vadd.f32 -1.0, %v2824_v7 }
 0x4b7   : > { %v2180_v19 = vpop.permute.xlu1 %2179  ;;  %v2295_v4 = vsel %vm2263_vm12, %v2255_v27, %v2504_v44  ;;  %v2228_v36 = vpop.permute.xlu0 %2227 }
 0x4b8   : > { %2625 = vmatpush3.msra.mxu0 %v2295_v4 }
 0x4b9   : > { %2626 = vmatprep.subr.mxu0 %v5304_v29 }
 0x4bc   : > { %v2236_v34 = vpop.permute.xlu1 %2235 }
 0x4bd   : > { %v2254_v62 = vadd.f32 %v2236_v34, %v2214_v2 }
 0x4bf   : > { %v2274_v48 = vmul.f32 1.442695, %v2254_v62  ;;  %vm2262_vm13 = vcmp.gt.f32.partialorder %v2254_v62, 0.0 }
 0x4c0   : > { %v1965_v28 = vpop.permute.xlu1 %1964 }
 0x4c1   : > { %2825 = vpow2.f32 %v2274_v48  ;;  %v2011_v16 = vmul.f32 %v4743_v32, %v1965_v28 }
 0x4c3   : > { %v2019_v18 = vadd.f32 %v2011_v16, %v4822_v54 }
 0x4c4   : > { %v2097_v60 = vpop.permute.xlu1 %2096 }
 0x4c5   : > { %v2141_v45 = vmul.f32 %v4885_v20, %v2097_v60  ;;  %v2083_v61 = vadd.f32 %v2075_v25, %v2019_v18  ;;  %v2508_v25 = vld [vmem:[#allocation2 + $0x8] ss:$0 sm:$0xff] }
 0x4c7   : > { %v2149_v11 = vadd.f32 %v2141_v45, %v4856_v51  ;;  %v2159_v51 = vpop.permute.xlu0 %2158 }
 0x4c8   : > { %v2108_v22 = vpop.permute.xlu1 %2107  ;;  %v2204_v14 = vmul.f32 %v2180_v19, %v2159_v51 }
 0x4c9   : > { %v2213_v40 = vadd.f32 %v2205_v35, %v2149_v11 }
 0x4cb   : > { %v2091_v6 = vpop.permute.xlu0 %2090 }
 0x4cc   : > { %v2138_v53 = vmul.f32 %v2108_v22, %v2091_v6 }
 0x4cd   : > { %v2232_v56 = vpop.permute.xlu1 %2231 }
 0x4ce   : > { %v2826_v46 = vpop.eup %2825  ;;  %v2253_v52 = vadd.f32 %v2232_v56, %v2213_v40 }
 0x4cf   : > { %v2503_v57 = vadd.f32 -1.0, %v2826_v46 }
 0x4d0   : > { %v2272_v32 = vmul.f32 1.442695, %v2253_v52  ;;  %vm2261_vm14 = vcmp.gt.f32.partialorder %v2253_v52, 0.0 }
 0x4d1   : > { %v1963_v12 = vpop.permute.xlu1 %1962  ;;  %v2294_v27 = vsel %vm2262_vm13, %v2254_v62, %v2503_v57 }
 0x4d2   : > { %2827 = vpow2.f32 %v2272_v32  ;;  %2627 = vmatpush3.msra.mxu0 %v2294_v27  ;;  %v2010_v43 = vmul.f32 %v4781_v63, %v1963_v12 }
 0x4d3   : > { %2628 = vmatprep.subr.mxu0 %v5304_v29 }
 0x4d4   : > { %v2018_v42 = vadd.f32 %v2010_v43, %v4919_v5 }
 0x4d5   : > { %v2095_v54 = vpop.permute.xlu1 %2094 }
 0x4d6   : > { %v2140_v20 = vmul.f32 %v4909_v47, %v2095_v54 }
 0x4d8   : > { %v2148_v0 = vadd.f32 %v2140_v20, %v2084_v55 }
 0x4d9   : > { %v2172_v23 = vpop.permute.xlu1 %2171 }
 0x4da   : > { %v2212_v10 = vadd.f32 %v2204_v14, %v2148_v0 }
 0x4dc   : > { %v2252_v9 = vadd.f32 %v2228_v36, %v2212_v10 }
 0x4dd   : > { %v2027_v50 = vpop.permute.xlu1 %2026 }
 0x4de   : > { %v2270_v3 = vmul.f32 1.442695, %v2252_v9  ;;  %v2074_v38 = vmul.f32 %v4924_v31, %v2027_v50  ;;  %vm2260_vm15 = vcmp.gt.f32.partialorder %v2252_v9, 0.0 }
 0x4df   : > { %v2828_v8 = vpop.eup %2827 }
 0x4e0   : > { %v2502_v49 = vadd.f32 -1.0, %v2828_v8  ;;  %2829 = vpow2.f32 %v2270_v3  ;;  %v2082_v17 = vadd.f32 %v2074_v38, %v2018_v42 }
 0x4e1   : > { %v2093_v58 = vpop.permute.xlu1 %2092 }
 0x4e2   : > { %v2293_v37 = vsel %vm2261_vm14, %v2253_v52, %v2502_v49  ;;  %v2139_v41 = vmul.f32 %v4846_v15, %v2093_v58  ;;  %v2146_v63 = vadd.f32 %v2138_v53, %v2082_v17  ;;  %v2220_v15 = vpop.permute.xlu0 %2219 }
 0x4e3   : > { %2629 = vmatpush3.msra.mxu0 %v2293_v37 }
 0x4e4   : > { %2630 = vmatprep.subr.mxu0 %v5304_v29  ;;  %v2147_v33 = vadd.f32 %v2139_v41, %v2083_v61  ;;  %v2381_v61 = vld [vmem:[%s4956_s2] sm:$0xff] }
 0x4e5   : > { %v2224_v47 = vpop.permute.xlu1 %2223 }
 0x4e9   : > { %v2157_v30 = vpop.permute.xlu1 %2156 }
 0x4ea   : > { %v2203_v55 = vmul.f32 %v2176_v21, %v2157_v30 }
 0x4ec   : > { %v2211_v7 = vadd.f32 %v2203_v55, %v2147_v33 }
 0x4ed   : > { %v2830_v13 = vpop.eup %2829  ;;  %v2155_v39 = vpop.permute.xlu1 %2154 }
 0x4ee   : > { %v2251_v44 = vadd.f32 %v2224_v47, %v2211_v7  ;;  %v2202_v24 = vmul.f32 %v2172_v23, %v2155_v39  ;;  %v2501_v19 = vadd.f32 -1.0, %v2830_v13 }
 0x4f0   : > { %v2268_v4 = vmul.f32 1.442695, %v2251_v44  ;;  %v2210_v31 = vadd.f32 %v2202_v24, %v2146_v63  ;;  %v2292_v26 = vsel %vm2260_vm15, %v2252_v9, %v2501_v19  ;;  %vm2259_vm0 = vcmp.gt.f32.partialorder %v2251_v44, 0.0 }
 0x4f1   : > { %2631 = vmatpush3.msra.mxu0 %v2292_v26 }
 0x4f2   : > { %2831 = vpow2.f32 %v2268_v4  ;;  %v2250_v5 = vadd.f32 %v2220_v15, %v2210_v31  ;;  %2632 = vmatprep.subr.mxu0 %v5304_v29 }
 0x4f4   : > { %v2266_v21 = vmul.f32 1.442695, %v2250_v5  ;;  %vm2258_vm1 = vcmp.gt.f32.partialorder %v2250_v5, 0.0 }
 0x4f6   : > { %2833 = vpow2.f32 %v2266_v21 }
 0x4ff   : > { %v2832_v2 = vpop.eup %2831 }
 0x500   : > { %v2500_v34 = vadd.f32 -1.0, %v2832_v2 }
 0x502   : > { %v2291_v62 = vsel %vm2259_vm0, %v2251_v44, %v2500_v34 }
 0x503   : > { %v2834_v48 = vpop.eup %2833  ;;  %2633 = vmatpush3.msra.mxu0 %v2291_v62 }
 0x504   : > { %2634 = vmatprep.subr.mxu0 %v5304_v29  ;;  %v2499_v28 = vadd.f32 -1.0, %v2834_v48 }
 0x506   : > { %v2290_v16 = vsel %vm2258_vm1, %v2250_v5, %v2499_v28 }
 0x507   : > { %2635 = vmatpush3.msra.mxu0 %v2290_v16 }
 0x508   : > { %2637 = vmatmul.mubr.msk.f32.vlgmr.msra.gmra.mxu0 %vm2299_vm2, %v2298_v59 }
 0x5c8   : > { %v2369_v18 = vpop.f32.mrf.mxu0 }
 0x5c9   : > { %v2378_v60 = vmul.f32 %v2508_v25, %v2369_v18 }
 0x5ca   : > { %v2638_v45 = vpop.f32.mrf.mxu0 }
 0x5cb   : > { %2379 = vadd.xlane.f32.xlu0 %v2378_v60 }
 0x654   : > { %v2380_v1 = vpop.xlane.xlu0 %2379 }
 0x655   : > { %v2382_v29 = vadd.f32 %v2381_v61, %v2380_v1 }
 0x657   : > { %2384 = vrot.lane.b32.xlu1 %v2382_v29, %s2969_s11 }
 0x6c9   : > { %v2385_v11 = vpop.permute.xlu1 %2384 }
 0x6ca   : > { %2388 = vst.msk [vmem:[%s279_s14] sm:$0xff] %vm2387_vm3, %v2385_v11 }
 0x6cb PF: > { %s18_s21 = sadd.s32 1, %s2917_s21  }
 0x6cc   : > { %p15_p3 = scmp.ge.s32.totalorder %s18_s21, 4  }
 0x6ce   :  { %17 = sbr.rel (!%p15_p3) target bundleno = 2 (0x2), region = 83 }
 0x6d3   :  { %2408 = vsyncpa [#allocation3], 1 }
 0x6d4   :  { %2410 = vsyncpa [#allocation3 + $0x1], 1 }
 0x6d5   :  { %2411 = vsyncpa [#allocation5], 1 }

</bundles_post_ra>
